<compile_context>
chip_gen: v6e
topology: v6e:2x2x1
jax: 0.10.0
libtpu: 0.0.40
codegen_flags: <defaults>
</compile_context>

<pallas_src>
import functools
import math

import jax
import jax.numpy as jnp
from jax.experimental import pallas as pl
from jax.experimental.pallas import tpu as pltpu

# ----------------------------- model hyperparams -----------------------------
INPUT_DIM = 16
OUTPUT_DIM = 8
HIDDEN_DIM = 32
NHEAD = 4
NUM_LAYERS = 2
FFN_DIM = 2048          # nn.TransformerEncoderLayer default dim_feedforward
LN_EPS = 1e-5
SEQ = 8
BATCH = 2

# TODO(synk): dropout (p=0.5 in the module and in PositionalEncoding) is stochastic
# in train mode; implemented here as identity (eval mode).

LAYER_PARAM_ORDER = (
    "wq", "bq", "wk", "bk", "wv", "bv",
    "out_w", "out_b", "ln1_g", "ln1_b",
    "ff1_w", "ff1_b", "ff2_w", "ff2_b",
    "ln2_g", "ln2_b",
)

# ------------------------------ fused Pallas kernel ---------------------------


def _layernorm(z, gamma, beta):
    mu = jnp.mean(z, axis=-1, keepdims=True)
    var = jnp.mean(jnp.square(z - mu), axis=-1, keepdims=True)
    return (z - mu) * jax.lax.rsqrt(var + LN_EPS) * gamma + beta


def _fused_kernel(*args, seq, batch, nheads, nlayers):
    n_in = 6 + len(LAYER_PARAM_ORDER) * nlayers
    x_ref, pe_ref, enc_w, enc_b, dec_w, dec_b = args[:6]
    layer_refs = args[6:n_in]
    o_ref = args[n_in]
    attn_scr = args[n_in + 1]          # VMEM scratch for concatenated head outputs

    S, B, H = seq, batch, nheads
    E = enc_w.shape[1]
    hd = E // H
    scale = 1.0 / math.sqrt(hd)

    # --- encoder Linear + positional encoding (dropout == identity) ---
    x = jnp.dot(x_ref[...], enc_w[...], preferred_element_type=jnp.float32)
    x = x + enc_b[...] + pe_ref[...]                       # (B*S, E)

    np_ = len(LAYER_PARAM_ORDER)
    for l in range(nlayers):
        (wq, bq, wk, bk, wv, bv, ow, ob, ln1g, ln1b,
         f1w, f1b, f2w, f2b, ln2g, ln2b) = layer_refs[np_ * l: np_ * (l + 1)]

        # --- multi-head self-attention (all heads, all batches, in VMEM) ---
        q = jnp.dot(x, wq[...], preferred_element_type=jnp.float32) + bq[...]
        k = jnp.dot(x, wk[...], preferred_element_type=jnp.float32) + bk[...]
        v = jnp.dot(x, wv[...], preferred_element_type=jnp.float32) + bv[...]

        for b in range(B):                 # unrolled at trace time (B*H = 8 tiles)
            r0 = b * S
            for h in range(H):
                c0 = h * hd
                qbh = q[r0:r0 + S, c0:c0 + hd]             # (S, hd) static slices
                kbh = k[r0:r0 + S, c0:c0 + hd]
                vbh = v[r0:r0 + S, c0:c0 + hd]
                s_mat = jnp.dot(qbh, kbh.T,
                                preferred_element_type=jnp.float32) * scale
                s_mat = s_mat - jnp.max(s_mat, axis=-1, keepdims=True)
                p = jnp.exp(s_mat)
                inv = pl.reciprocal(jnp.sum(p, axis=-1, keepdims=True), approx=True)
                p = p * inv
                attn_scr[r0:r0 + S, c0:c0 + hd] = jnp.dot(
                    p, vbh, preferred_element_type=jnp.float32)

        attn = jnp.dot(attn_scr[...], ow[...],
                       preferred_element_type=jnp.float32) + ob[...]

        # --- residual + LayerNorm1 (post-LN) ---
        x = _layernorm(x + attn, ln1g[...], ln1b[...])

        # --- feed-forward (the (B*S, FFN) intermediate never leaves VMEM) ---
        hmid = jnp.dot(x, f1w[...], preferred_element_type=jnp.float32) + f1b[...]
        hmid = jnp.maximum(hmid, 0.0)
        ff = jnp.dot(hmid, f2w[...], preferred_element_type=jnp.float32) + f2b[...]

        # --- residual + LayerNorm2 ---
        x = _layernorm(x + ff, ln2g[...], ln2b[...])

    # decoder applied to output[:, -1, :]  (last BATCH index, seq-first layout,
    # faithful to the PyTorch reference).  In batch-major row layout that is the
    # final contiguous block of S rows.
    last = x[(B - 1) * S:, :]                              # (S, E)
    o_ref[...] = jnp.dot(last, dec_w[...],
                         preferred_element_type=jnp.float32) + dec_b[...]


# ------------------------------ parameter setup --------------------------------


def _init_linear(key, fan_in, fan_out):
    # matches nn.Linear default init distribution (uniform(-1/sqrt(fan_in), ...));
    # stored pre-transposed as (in, out); bias stored as (1, out).
    k1, k2 = jax.random.split(key)
    bound = 1.0 / math.sqrt(fan_in)
    w = jax.random.uniform(k1, (fan_in, fan_out), jnp.float32, -bound, bound)
    b = jax.random.uniform(k2, (1, fan_out), jnp.float32, -bound, bound)
    return w, b


def make_params(key):
    keys = jax.random.split(key, 2 + 4 * NUM_LAYERS)
    params = {}
    params["enc_w"], params["enc_b"] = _init_linear(keys[0], INPUT_DIM, HIDDEN_DIM)
    params["dec_w"], params["dec_b"] = _init_linear(keys[1], HIDDEN_DIM, OUTPUT_DIM)
    layers = []
    for l in range(NUM_LAYERS):
        k0, k1, k2, k3 = keys[2 + 4 * l: 6 + 4 * l]
        lp = {}
        ipw, ipb = _init_linear(k0, HIDDEN_DIM, 3 * HIDDEN_DIM)   # packed in_proj
        lp["wq"], lp["wk"], lp["wv"] = jnp.split(ipw, 3, axis=1)
        lp["bq"], lp["bk"], lp["bv"] = jnp.split(ipb, 3, axis=1)
        lp["out_w"], lp["out_b"] = _init_linear(k1, HIDDEN_DIM, HIDDEN_DIM)
        lp["ff1_w"], lp["ff1_b"] = _init_linear(k2, HIDDEN_DIM, FFN_DIM)
        lp["ff2_w"], lp["ff2_b"] = _init_linear(k3, FFN_DIM, HIDDEN_DIM)
        lp["ln1_g"] = jnp.ones((1, HIDDEN_DIM), jnp.float32)
        lp["ln1_b"] = jnp.zeros((1, HIDDEN_DIM), jnp.float32)
        lp["ln2_g"] = jnp.ones((1, HIDDEN_DIM), jnp.float32)
        lp["ln2_b"] = jnp.zeros((1, HIDDEN_DIM), jnp.float32)
        layers.append(lp)
    params["layers"] = layers
    return params


def make_positional_encoding(d_model, max_len=5000):
    position = jnp.arange(max_len, dtype=jnp.float32)[:, None]
    div_term = jnp.exp(
        jnp.arange(0, d_model, 2, dtype=jnp.float32) * (-math.log(10000.0) / d_model)
    )
    pe = jnp.zeros((max_len, 1, d_model), jnp.float32)
    pe = pe.at[:, 0, 0::2].set(jnp.sin(position * div_term))
    pe = pe.at[:, 0, 1::2].set(jnp.cos(position * div_term))
    return pe


# ------------------------------- forward pass ----------------------------------


def transformer_forward(src, params, pe):
    """src: (S, B, input_dim) -> (S, output_dim), matching output[:, -1, :]."""
    S, B, Din = src.shape
    E = HIDDEN_DIM

    # Batch-major token slab (row = b*S + s) so every attention slice inside the
    # fused kernel is a static contiguous slice; done once outside the kernel.
    x = src.transpose(1, 0, 2).reshape(B * S, Din)
    pe_slab = jnp.tile(pe[:S, 0, :], (B, 1))               # (B*S, E)

    flat = [x, pe_slab, params["enc_w"], params["enc_b"],
            params["dec_w"], params["dec_b"]]
    for lp in params["layers"]:
        flat += [lp[name] for name in LAYER_PARAM_ORDER]

    kernel = functools.partial(
        _fused_kernel, seq=S, batch=B, nheads=NHEAD, nlayers=NUM_LAYERS)

    in_specs = [pl.BlockSpec(a.shape, lambda i: (0, 0)) for a in flat]

    return pl.pallas_call(
        kernel,
        grid=(1,),
        in_specs=in_specs,
        out_specs=pl.BlockSpec((S, OUTPUT_DIM), lambda i: (0, 0)),
        out_shape=jax.ShapeDtypeStruct((S, OUTPUT_DIM), jnp.float32),
        scratch_shapes=[pltpu.VMEM((B * S, E), jnp.float32)],
        compiler_params=pltpu.CompilerParams(dimension_semantics=("arbitrary",)),
    )(*flat)


# ----------------------------------- main ---------------------------------------

if __name__ == "__main__":
    key = jax.random.PRNGKey(0)
    k_params, k_src = jax.random.split(key)
    params = make_params(k_params)
    pe = make_positional_encoding(HIDDEN_DIM)
    src = jax.random.normal(k_src, (SEQ, BATCH, INPUT_DIM), jnp.float32)

    fwd = jax.jit(functools.partial(transformer_forward, pe=pe))
    out = fwd(src, params)
    jax.block_until_ready(out)
    assert out.shape == (SEQ, OUTPUT_DIM), out.shape
    print("KERNEL_OK")
</pallas_src>

<mosaic_0001>
module attributes {stable_mosaic.version = 11 : i64} {
  func.func @_fused_kernel(%arg0: i32, %arg1: memref<16x16xf32, #tpu.memory_space<vmem>>, %arg2: memref<16x32xf32, #tpu.memory_space<vmem>>, %arg3: memref<16x32xf32, #tpu.memory_space<vmem>>, %arg4: memref<1x32xf32, #tpu.memory_space<vmem>>, %arg5: memref<32x8xf32, #tpu.memory_space<vmem>>, %arg6: memref<1x8xf32, #tpu.memory_space<vmem>>, %arg7: memref<32x32xf32, #tpu.memory_space<vmem>>, %arg8: memref<1x32xf32, #tpu.memory_space<vmem>>, %arg9: memref<32x32xf32, #tpu.memory_space<vmem>>, %arg10: memref<1x32xf32, #tpu.memory_space<vmem>>, %arg11: memref<32x32xf32, #tpu.memory_space<vmem>>, %arg12: memref<1x32xf32, #tpu.memory_space<vmem>>, %arg13: memref<32x32xf32, #tpu.memory_space<vmem>>, %arg14: memref<1x32xf32, #tpu.memory_space<vmem>>, %arg15: memref<1x32xf32, #tpu.memory_space<vmem>>, %arg16: memref<1x32xf32, #tpu.memory_space<vmem>>, %arg17: memref<32x2048xf32, #tpu.memory_space<vmem>>, %arg18: memref<1x2048xf32, #tpu.memory_space<vmem>>, %arg19: memref<2048x32xf32, #tpu.memory_space<vmem>>, %arg20: memref<1x32xf32, #tpu.memory_space<vmem>>, %arg21: memref<1x32xf32, #tpu.memory_space<vmem>>, %arg22: memref<1x32xf32, #tpu.memory_space<vmem>>, %arg23: memref<32x32xf32, #tpu.memory_space<vmem>>, %arg24: memref<1x32xf32, #tpu.memory_space<vmem>>, %arg25: memref<32x32xf32, #tpu.memory_space<vmem>>, %arg26: memref<1x32xf32, #tpu.memory_space<vmem>>, %arg27: memref<32x32xf32, #tpu.memory_space<vmem>>, %arg28: memref<1x32xf32, #tpu.memory_space<vmem>>, %arg29: memref<32x32xf32, #tpu.memory_space<vmem>>, %arg30: memref<1x32xf32, #tpu.memory_space<vmem>>, %arg31: memref<1x32xf32, #tpu.memory_space<vmem>>, %arg32: memref<1x32xf32, #tpu.memory_space<vmem>>, %arg33: memref<32x2048xf32, #tpu.memory_space<vmem>>, %arg34: memref<1x2048xf32, #tpu.memory_space<vmem>>, %arg35: memref<2048x32xf32, #tpu.memory_space<vmem>>, %arg36: memref<1x32xf32, #tpu.memory_space<vmem>>, %arg37: memref<1x32xf32, #tpu.memory_space<vmem>>, %arg38: memref<1x32xf32, #tpu.memory_space<vmem>>, %arg39: memref<8x8xf32, #tpu.memory_space<vmem>>, %arg40: memref<16x32xf32, #tpu.memory_space<vmem>>) attributes {dimension_semantics = [#tpu.dimension_semantics<arbitrary>], iteration_bounds = array<i64: 1>, scalar_prefetch = 0 : i64, scratch_operands = 1 : i64, tpu.core_type = #tpu.core_type<tc>, window_params = [{pipeline_mode = #tpu.pipeline_mode<synchronous>, transform_indices = @transform_0, window_bounds = array<i64: 16, 16>}, {pipeline_mode = #tpu.pipeline_mode<synchronous>, transform_indices = @transform_1, window_bounds = array<i64: 16, 32>}, {pipeline_mode = #tpu.pipeline_mode<synchronous>, transform_indices = @transform_2, window_bounds = array<i64: 16, 32>}, {pipeline_mode = #tpu.pipeline_mode<synchronous>, transform_indices = @transform_3, window_bounds = array<i64: 1, 32>}, {pipeline_mode = #tpu.pipeline_mode<synchronous>, transform_indices = @transform_4, window_bounds = array<i64: 32, 8>}, {pipeline_mode = #tpu.pipeline_mode<synchronous>, transform_indices = @transform_5, window_bounds = array<i64: 1, 8>}, {pipeline_mode = #tpu.pipeline_mode<synchronous>, transform_indices = @transform_6, window_bounds = array<i64: 32, 32>}, {pipeline_mode = #tpu.pipeline_mode<synchronous>, transform_indices = @transform_7, window_bounds = array<i64: 1, 32>}, {pipeline_mode = #tpu.pipeline_mode<synchronous>, transform_indices = @transform_8, window_bounds = array<i64: 32, 32>}, {pipeline_mode = #tpu.pipeline_mode<synchronous>, transform_indices = @transform_9, window_bounds = array<i64: 1, 32>}, {pipeline_mode = #tpu.pipeline_mode<synchronous>, transform_indices = @transform_10, window_bounds = array<i64: 32, 32>}, {pipeline_mode = #tpu.pipeline_mode<synchronous>, transform_indices = @transform_11, window_bounds = array<i64: 1, 32>}, {pipeline_mode = #tpu.pipeline_mode<synchronous>, transform_indices = @transform_12, window_bounds = array<i64: 32, 32>}, {pipeline_mode = #tpu.pipeline_mode<synchronous>, transform_indices = @transform_13, window_bounds = array<i64: 1, 32>}, {pipeline_mode = #tpu.pipeline_mode<synchronous>, transform_indices = @transform_14, window_bounds = array<i64: 1, 32>}, {pipeline_mode = #tpu.pipeline_mode<synchronous>, transform_indices = @transform_15, window_bounds = array<i64: 1, 32>}, {pipeline_mode = #tpu.pipeline_mode<synchronous>, transform_indices = @transform_16, window_bounds = array<i64: 32, 2048>}, {pipeline_mode = #tpu.pipeline_mode<synchronous>, transform_indices = @transform_17, window_bounds = array<i64: 1, 2048>}, {pipeline_mode = #tpu.pipeline_mode<synchronous>, transform_indices = @transform_18, window_bounds = array<i64: 2048, 32>}, {pipeline_mode = #tpu.pipeline_mode<synchronous>, transform_indices = @transform_19, window_bounds = array<i64: 1, 32>}, {pipeline_mode = #tpu.pipeline_mode<synchronous>, transform_indices = @transform_20, window_bounds = array<i64: 1, 32>}, {pipeline_mode = #tpu.pipeline_mode<synchronous>, transform_indices = @transform_21, window_bounds = array<i64: 1, 32>}, {pipeline_mode = #tpu.pipeline_mode<synchronous>, transform_indices = @transform_22, window_bounds = array<i64: 32, 32>}, {pipeline_mode = #tpu.pipeline_mode<synchronous>, transform_indices = @transform_23, window_bounds = array<i64: 1, 32>}, {pipeline_mode = #tpu.pipeline_mode<synchronous>, transform_indices = @transform_24, window_bounds = array<i64: 32, 32>}, {pipeline_mode = #tpu.pipeline_mode<synchronous>, transform_indices = @transform_25, window_bounds = array<i64: 1, 32>}, {pipeline_mode = #tpu.pipeline_mode<synchronous>, transform_indices = @transform_26, window_bounds = array<i64: 32, 32>}, {pipeline_mode = #tpu.pipeline_mode<synchronous>, transform_indices = @transform_27, window_bounds = array<i64: 1, 32>}, {pipeline_mode = #tpu.pipeline_mode<synchronous>, transform_indices = @transform_28, window_bounds = array<i64: 32, 32>}, {pipeline_mode = #tpu.pipeline_mode<synchronous>, transform_indices = @transform_29, window_bounds = array<i64: 1, 32>}, {pipeline_mode = #tpu.pipeline_mode<synchronous>, transform_indices = @transform_30, window_bounds = array<i64: 1, 32>}, {pipeline_mode = #tpu.pipeline_mode<synchronous>, transform_indices = @transform_31, window_bounds = array<i64: 1, 32>}, {pipeline_mode = #tpu.pipeline_mode<synchronous>, transform_indices = @transform_32, window_bounds = array<i64: 32, 2048>}, {pipeline_mode = #tpu.pipeline_mode<synchronous>, transform_indices = @transform_33, window_bounds = array<i64: 1, 2048>}, {pipeline_mode = #tpu.pipeline_mode<synchronous>, transform_indices = @transform_34, window_bounds = array<i64: 2048, 32>}, {pipeline_mode = #tpu.pipeline_mode<synchronous>, transform_indices = @transform_35, window_bounds = array<i64: 1, 32>}, {pipeline_mode = #tpu.pipeline_mode<synchronous>, transform_indices = @transform_36, window_bounds = array<i64: 1, 32>}, {pipeline_mode = #tpu.pipeline_mode<synchronous>, transform_indices = @transform_37, window_bounds = array<i64: 1, 32>}, {pipeline_mode = #tpu.pipeline_mode<synchronous>, transform_indices = @transform_38, window_bounds = array<i64: 8, 8>}]} {
    %c0 = arith.constant 0 : index
    %c0_0 = arith.constant 0 : index
    %0 = vector.load %arg1[%c0, %c0_0] : memref<16x16xf32, #tpu.memory_space<vmem>>, vector<16x16xf32>
    %c0_1 = arith.constant 0 : index
    %c0_2 = arith.constant 0 : index
    %1 = vector.load %arg3[%c0_1, %c0_2] : memref<16x32xf32, #tpu.memory_space<vmem>>, vector<16x32xf32>
    %cst = arith.constant dense<0.000000e+00> : vector<16x32xf32>
    %2 = tpu.matmul %0, %1, %cst {dimension_numbers = #tpu.dot_dimension_numbers<[1], [0], [0], [1], [0, 0, 1, 1], [], []>} : vector<16x16xf32>, vector<16x32xf32>, vector<16x32xf32> -> vector<16x32xf32>
    %c0_3 = arith.constant 0 : index
    %c0_4 = arith.constant 0 : index
    %3 = vector.load %arg4[%c0_3, %c0_4] : memref<1x32xf32, #tpu.memory_space<vmem>>, vector<1x32xf32>
    %4 = vector.broadcast %3 : vector<1x32xf32> to vector<16x32xf32>
    %5 = arith.addf %2, %4 : vector<16x32xf32>
    %c0_5 = arith.constant 0 : index
    %c0_6 = arith.constant 0 : index
    %6 = vector.load %arg2[%c0_5, %c0_6] : memref<16x32xf32, #tpu.memory_space<vmem>>, vector<16x32xf32>
    %7 = arith.addf %5, %6 : vector<16x32xf32>
    %c0_7 = arith.constant 0 : index
    %c0_8 = arith.constant 0 : index
    %8 = vector.load %arg7[%c0_7, %c0_8] : memref<32x32xf32, #tpu.memory_space<vmem>>, vector<32x32xf32>
    %cst_9 = arith.constant dense<0.000000e+00> : vector<16x32xf32>
    %9 = tpu.matmul %7, %8, %cst_9 {dimension_numbers = #tpu.dot_dimension_numbers<[1], [0], [0], [1], [0, 0, 1, 1], [], []>} : vector<16x32xf32>, vector<32x32xf32>, vector<16x32xf32> -> vector<16x32xf32>
    %c0_10 = arith.constant 0 : index
    %c0_11 = arith.constant 0 : index
    %10 = vector.load %arg8[%c0_10, %c0_11] : memref<1x32xf32, #tpu.memory_space<vmem>>, vector<1x32xf32>
    %11 = vector.broadcast %10 : vector<1x32xf32> to vector<16x32xf32>
    %12 = arith.addf %9, %11 : vector<16x32xf32>
    %c0_12 = arith.constant 0 : index
    %c0_13 = arith.constant 0 : index
    %13 = vector.load %arg9[%c0_12, %c0_13] : memref<32x32xf32, #tpu.memory_space<vmem>>, vector<32x32xf32>
    %cst_14 = arith.constant dense<0.000000e+00> : vector<16x32xf32>
    %14 = tpu.matmul %7, %13, %cst_14 {dimension_numbers = #tpu.dot_dimension_numbers<[1], [0], [0], [1], [0, 0, 1, 1], [], []>} : vector<16x32xf32>, vector<32x32xf32>, vector<16x32xf32> -> vector<16x32xf32>
    %c0_15 = arith.constant 0 : index
    %c0_16 = arith.constant 0 : index
    %15 = vector.load %arg10[%c0_15, %c0_16] : memref<1x32xf32, #tpu.memory_space<vmem>>, vector<1x32xf32>
    %16 = vector.broadcast %15 : vector<1x32xf32> to vector<16x32xf32>
    %17 = arith.addf %14, %16 : vector<16x32xf32>
    %c0_17 = arith.constant 0 : index
    %c0_18 = arith.constant 0 : index
    %18 = vector.load %arg11[%c0_17, %c0_18] : memref<32x32xf32, #tpu.memory_space<vmem>>, vector<32x32xf32>
    %cst_19 = arith.constant dense<0.000000e+00> : vector<16x32xf32>
    %19 = tpu.matmul %7, %18, %cst_19 {dimension_numbers = #tpu.dot_dimension_numbers<[1], [0], [0], [1], [0, 0, 1, 1], [], []>} : vector<16x32xf32>, vector<32x32xf32>, vector<16x32xf32> -> vector<16x32xf32>
    %c0_20 = arith.constant 0 : index
    %c0_21 = arith.constant 0 : index
    %20 = vector.load %arg12[%c0_20, %c0_21] : memref<1x32xf32, #tpu.memory_space<vmem>>, vector<1x32xf32>
    %21 = vector.broadcast %20 : vector<1x32xf32> to vector<16x32xf32>
    %22 = arith.addf %19, %21 : vector<16x32xf32>
    %23 = vector.extract_strided_slice %12 {offsets = [0, 0], sizes = [8, 8], strides = [1, 1]} : vector<16x32xf32> to vector<8x8xf32>
    %24 = vector.extract_strided_slice %17 {offsets = [0, 0], sizes = [8, 8], strides = [1, 1]} : vector<16x32xf32> to vector<8x8xf32>
    %25 = vector.extract_strided_slice %22 {offsets = [0, 0], sizes = [8, 8], strides = [1, 1]} : vector<16x32xf32> to vector<8x8xf32>
    %26 = tpu.transpose %24, [1, 0] : vector<8x8xf32> -> vector<8x8xf32>
    %cst_22 = arith.constant dense<0.000000e+00> : vector<8x8xf32>
    %27 = tpu.matmul %23, %26, %cst_22 {dimension_numbers = #tpu.dot_dimension_numbers<[1], [0], [0], [1], [0, 0, 1, 1], [], []>} : vector<8x8xf32>, vector<8x8xf32>, vector<8x8xf32> -> vector<8x8xf32>
    %cst_23 = arith.constant 0.353553385 : f32
    %28 = vector.broadcast %cst_23 : f32 to vector<8x8xf32>
    %29 = arith.mulf %27, %28 : vector<8x8xf32>
    %cst_24 = arith.constant dense<0xFF800000> : vector<8xf32>
    %30 = vector.multi_reduction <maximumf>, %29, %cst_24 [1] : vector<8x8xf32> to vector<8xf32>
    %31 = vector.shape_cast %30 : vector<8xf32> to vector<8x1xf32>
    %32 = vector.broadcast %31 : vector<8x1xf32> to vector<8x8xf32>
    %33 = arith.subf %29, %32 : vector<8x8xf32>
    %34 = math.exp %33 : vector<8x8xf32>
    %cst_25 = arith.constant dense<0.000000e+00> : vector<8xf32>
    %35 = vector.multi_reduction <add>, %34, %cst_25 [1] : vector<8x8xf32> to vector<8xf32>
    %36 = vector.shape_cast %35 : vector<8xf32> to vector<8x1xf32>
    %37 = tpu.reciprocal %36 {approx = true} : vector<8x1xf32> -> vector<8x1xf32>
    %38 = vector.broadcast %37 : vector<8x1xf32> to vector<8x8xf32>
    %39 = arith.mulf %34, %38 : vector<8x8xf32>
    %cst_26 = arith.constant dense<0.000000e+00> : vector<8x8xf32>
    %40 = tpu.matmul %39, %25, %cst_26 {dimension_numbers = #tpu.dot_dimension_numbers<[1], [0], [0], [1], [0, 0, 1, 1], [], []>} : vector<8x8xf32>, vector<8x8xf32>, vector<8x8xf32> -> vector<8x8xf32>
    %c0_27 = arith.constant 0 : index
    %c0_28 = arith.constant 0 : index
    %41 = vector.load %arg40[%c0_27, %c0_28] : memref<16x32xf32, #tpu.memory_space<vmem>>, vector<8x8xf32>
    tpu.vector_store %arg40[%c0_27, %c0_28], %40 {strides = array<i32>} : memref<16x32xf32, #tpu.memory_space<vmem>>, vector<8x8xf32>,
    %42 = vector.extract_strided_slice %12 {offsets = [0, 8], sizes = [8, 8], strides = [1, 1]} : vector<16x32xf32> to vector<8x8xf32>
    %43 = vector.extract_strided_slice %17 {offsets = [0, 8], sizes = [8, 8], strides = [1, 1]} : vector<16x32xf32> to vector<8x8xf32>
    %44 = vector.extract_strided_slice %22 {offsets = [0, 8], sizes = [8, 8], strides = [1, 1]} : vector<16x32xf32> to vector<8x8xf32>
    %45 = tpu.transpose %43, [1, 0] : vector<8x8xf32> -> vector<8x8xf32>
    %cst_29 = arith.constant dense<0.000000e+00> : vector<8x8xf32>
    %46 = tpu.matmul %42, %45, %cst_29 {dimension_numbers = #tpu.dot_dimension_numbers<[1], [0], [0], [1], [0, 0, 1, 1], [], []>} : vector<8x8xf32>, vector<8x8xf32>, vector<8x8xf32> -> vector<8x8xf32>
    %cst_30 = arith.constant 0.353553385 : f32
    %47 = vector.broadcast %cst_30 : f32 to vector<8x8xf32>
    %48 = arith.mulf %46, %47 : vector<8x8xf32>
    %cst_31 = arith.constant dense<0xFF800000> : vector<8xf32>
    %49 = vector.multi_reduction <maximumf>, %48, %cst_31 [1] : vector<8x8xf32> to vector<8xf32>
    %50 = vector.shape_cast %49 : vector<8xf32> to vector<8x1xf32>
    %51 = vector.broadcast %50 : vector<8x1xf32> to vector<8x8xf32>
    %52 = arith.subf %48, %51 : vector<8x8xf32>
    %53 = math.exp %52 : vector<8x8xf32>
    %cst_32 = arith.constant dense<0.000000e+00> : vector<8xf32>
    %54 = vector.multi_reduction <add>, %53, %cst_32 [1] : vector<8x8xf32> to vector<8xf32>
    %55 = vector.shape_cast %54 : vector<8xf32> to vector<8x1xf32>
    %56 = tpu.reciprocal %55 {approx = true} : vector<8x1xf32> -> vector<8x1xf32>
    %57 = vector.broadcast %56 : vector<8x1xf32> to vector<8x8xf32>
    %58 = arith.mulf %53, %57 : vector<8x8xf32>
    %cst_33 = arith.constant dense<0.000000e+00> : vector<8x8xf32>
    %59 = tpu.matmul %58, %44, %cst_33 {dimension_numbers = #tpu.dot_dimension_numbers<[1], [0], [0], [1], [0, 0, 1, 1], [], []>} : vector<8x8xf32>, vector<8x8xf32>, vector<8x8xf32> -> vector<8x8xf32>
    %c0_34 = arith.constant 0 : index
    %c8 = arith.constant 8 : index
    %60 = vector.load %arg40[%c0_34, %c8] : memref<16x32xf32, #tpu.memory_space<vmem>>, vector<8x8xf32>
    tpu.vector_store %arg40[%c0_34, %c8], %59 {strides = array<i32>} : memref<16x32xf32, #tpu.memory_space<vmem>>, vector<8x8xf32>,
    %61 = vector.extract_strided_slice %12 {offsets = [0, 16], sizes = [8, 8], strides = [1, 1]} : vector<16x32xf32> to vector<8x8xf32>
    %62 = vector.extract_strided_slice %17 {offsets = [0, 16], sizes = [8, 8], strides = [1, 1]} : vector<16x32xf32> to vector<8x8xf32>
    %63 = vector.extract_strided_slice %22 {offsets = [0, 16], sizes = [8, 8], strides = [1, 1]} : vector<16x32xf32> to vector<8x8xf32>
    %64 = tpu.transpose %62, [1, 0] : vector<8x8xf32> -> vector<8x8xf32>
    %cst_35 = arith.constant dense<0.000000e+00> : vector<8x8xf32>
    %65 = tpu.matmul %61, %64, %cst_35 {dimension_numbers = #tpu.dot_dimension_numbers<[1], [0], [0], [1], [0, 0, 1, 1], [], []>} : vector<8x8xf32>, vector<8x8xf32>, vector<8x8xf32> -> vector<8x8xf32>
    %cst_36 = arith.constant 0.353553385 : f32
    %66 = vector.broadcast %cst_36 : f32 to vector<8x8xf32>
    %67 = arith.mulf %65, %66 : vector<8x8xf32>
    %cst_37 = arith.constant dense<0xFF800000> : vector<8xf32>
    %68 = vector.multi_reduction <maximumf>, %67, %cst_37 [1] : vector<8x8xf32> to vector<8xf32>
    %69 = vector.shape_cast %68 : vector<8xf32> to vector<8x1xf32>
    %70 = vector.broadcast %69 : vector<8x1xf32> to vector<8x8xf32>
    %71 = arith.subf %67, %70 : vector<8x8xf32>
    %72 = math.exp %71 : vector<8x8xf32>
    %cst_38 = arith.constant dense<0.000000e+00> : vector<8xf32>
    %73 = vector.multi_reduction <add>, %72, %cst_38 [1] : vector<8x8xf32> to vector<8xf32>
    %74 = vector.shape_cast %73 : vector<8xf32> to vector<8x1xf32>
    %75 = tpu.reciprocal %74 {approx = true} : vector<8x1xf32> -> vector<8x1xf32>
    %76 = vector.broadcast %75 : vector<8x1xf32> to vector<8x8xf32>
    %77 = arith.mulf %72, %76 : vector<8x8xf32>
    %cst_39 = arith.constant dense<0.000000e+00> : vector<8x8xf32>
    %78 = tpu.matmul %77, %63, %cst_39 {dimension_numbers = #tpu.dot_dimension_numbers<[1], [0], [0], [1], [0, 0, 1, 1], [], []>} : vector<8x8xf32>, vector<8x8xf32>, vector<8x8xf32> -> vector<8x8xf32>
    %c0_40 = arith.constant 0 : index
    %c16 = arith.constant 16 : index
    %79 = vector.load %arg40[%c0_40, %c16] : memref<16x32xf32, #tpu.memory_space<vmem>>, vector<8x8xf32>
    tpu.vector_store %arg40[%c0_40, %c16], %78 {strides = array<i32>} : memref<16x32xf32, #tpu.memory_space<vmem>>, vector<8x8xf32>,
    %80 = vector.extract_strided_slice %12 {offsets = [0, 24], sizes = [8, 8], strides = [1, 1]} : vector<16x32xf32> to vector<8x8xf32>
    %81 = vector.extract_strided_slice %17 {offsets = [0, 24], sizes = [8, 8], strides = [1, 1]} : vector<16x32xf32> to vector<8x8xf32>
    %82 = vector.extract_strided_slice %22 {offsets = [0, 24], sizes = [8, 8], strides = [1, 1]} : vector<16x32xf32> to vector<8x8xf32>
    %83 = tpu.transpose %81, [1, 0] : vector<8x8xf32> -> vector<8x8xf32>
    %cst_41 = arith.constant dense<0.000000e+00> : vector<8x8xf32>
    %84 = tpu.matmul %80, %83, %cst_41 {dimension_numbers = #tpu.dot_dimension_numbers<[1], [0], [0], [1], [0, 0, 1, 1], [], []>} : vector<8x8xf32>, vector<8x8xf32>, vector<8x8xf32> -> vector<8x8xf32>
    %cst_42 = arith.constant 0.353553385 : f32
    %85 = vector.broadcast %cst_42 : f32 to vector<8x8xf32>
    %86 = arith.mulf %84, %85 : vector<8x8xf32>
    %cst_43 = arith.constant dense<0xFF800000> : vector<8xf32>
    %87 = vector.multi_reduction <maximumf>, %86, %cst_43 [1] : vector<8x8xf32> to vector<8xf32>
    %88 = vector.shape_cast %87 : vector<8xf32> to vector<8x1xf32>
    %89 = vector.broadcast %88 : vector<8x1xf32> to vector<8x8xf32>
    %90 = arith.subf %86, %89 : vector<8x8xf32>
    %91 = math.exp %90 : vector<8x8xf32>
    %cst_44 = arith.constant dense<0.000000e+00> : vector<8xf32>
    %92 = vector.multi_reduction <add>, %91, %cst_44 [1] : vector<8x8xf32> to vector<8xf32>
    %93 = vector.shape_cast %92 : vector<8xf32> to vector<8x1xf32>
    %94 = tpu.reciprocal %93 {approx = true} : vector<8x1xf32> -> vector<8x1xf32>
    %95 = vector.broadcast %94 : vector<8x1xf32> to vector<8x8xf32>
    %96 = arith.mulf %91, %95 : vector<8x8xf32>
    %cst_45 = arith.constant dense<0.000000e+00> : vector<8x8xf32>
    %97 = tpu.matmul %96, %82, %cst_45 {dimension_numbers = #tpu.dot_dimension_numbers<[1], [0], [0], [1], [0, 0, 1, 1], [], []>} : vector<8x8xf32>, vector<8x8xf32>, vector<8x8xf32> -> vector<8x8xf32>
    %c0_46 = arith.constant 0 : index
    %c24 = arith.constant 24 : index
    %98 = vector.load %arg40[%c0_46, %c24] : memref<16x32xf32, #tpu.memory_space<vmem>>, vector<8x8xf32>
    tpu.vector_store %arg40[%c0_46, %c24], %97 {strides = array<i32>} : memref<16x32xf32, #tpu.memory_space<vmem>>, vector<8x8xf32>,
    %99 = vector.extract_strided_slice %12 {offsets = [8, 0], sizes = [8, 8], strides = [1, 1]} : vector<16x32xf32> to vector<8x8xf32>
    %100 = vector.extract_strided_slice %17 {offsets = [8, 0], sizes = [8, 8], strides = [1, 1]} : vector<16x32xf32> to vector<8x8xf32>
    %101 = vector.extract_strided_slice %22 {offsets = [8, 0], sizes = [8, 8], strides = [1, 1]} : vector<16x32xf32> to vector<8x8xf32>
    %102 = tpu.transpose %100, [1, 0] : vector<8x8xf32> -> vector<8x8xf32>
    %cst_47 = arith.constant dense<0.000000e+00> : vector<8x8xf32>
    %103 = tpu.matmul %99, %102, %cst_47 {dimension_numbers = #tpu.dot_dimension_numbers<[1], [0], [0], [1], [0, 0, 1, 1], [], []>} : vector<8x8xf32>, vector<8x8xf32>, vector<8x8xf32> -> vector<8x8xf32>
    %cst_48 = arith.constant 0.353553385 : f32
    %104 = vector.broadcast %cst_48 : f32 to vector<8x8xf32>
    %105 = arith.mulf %103, %104 : vector<8x8xf32>
    %cst_49 = arith.constant dense<0xFF800000> : vector<8xf32>
    %106 = vector.multi_reduction <maximumf>, %105, %cst_49 [1] : vector<8x8xf32> to vector<8xf32>
    %107 = vector.shape_cast %106 : vector<8xf32> to vector<8x1xf32>
    %108 = vector.broadcast %107 : vector<8x1xf32> to vector<8x8xf32>
    %109 = arith.subf %105, %108 : vector<8x8xf32>
    %110 = math.exp %109 : vector<8x8xf32>
    %cst_50 = arith.constant dense<0.000000e+00> : vector<8xf32>
    %111 = vector.multi_reduction <add>, %110, %cst_50 [1] : vector<8x8xf32> to vector<8xf32>
    %112 = vector.shape_cast %111 : vector<8xf32> to vector<8x1xf32>
    %113 = tpu.reciprocal %112 {approx = true} : vector<8x1xf32> -> vector<8x1xf32>
    %114 = vector.broadcast %113 : vector<8x1xf32> to vector<8x8xf32>
    %115 = arith.mulf %110, %114 : vector<8x8xf32>
    %cst_51 = arith.constant dense<0.000000e+00> : vector<8x8xf32>
    %116 = tpu.matmul %115, %101, %cst_51 {dimension_numbers = #tpu.dot_dimension_numbers<[1], [0], [0], [1], [0, 0, 1, 1], [], []>} : vector<8x8xf32>, vector<8x8xf32>, vector<8x8xf32> -> vector<8x8xf32>
    %c8_52 = arith.constant 8 : index
    %c0_53 = arith.constant 0 : index
    %117 = vector.load %arg40[%c8_52, %c0_53] : memref<16x32xf32, #tpu.memory_space<vmem>>, vector<8x8xf32>
    tpu.vector_store %arg40[%c8_52, %c0_53], %116 {strides = array<i32>} : memref<16x32xf32, #tpu.memory_space<vmem>>, vector<8x8xf32>,
    %118 = vector.extract_strided_slice %12 {offsets = [8, 8], sizes = [8, 8], strides = [1, 1]} : vector<16x32xf32> to vector<8x8xf32>
    %119 = vector.extract_strided_slice %17 {offsets = [8, 8], sizes = [8, 8], strides = [1, 1]} : vector<16x32xf32> to vector<8x8xf32>
    %120 = vector.extract_strided_slice %22 {offsets = [8, 8], sizes = [8, 8], strides = [1, 1]} : vector<16x32xf32> to vector<8x8xf32>
    %121 = tpu.transpose %119, [1, 0] : vector<8x8xf32> -> vector<8x8xf32>
    %cst_54 = arith.constant dense<0.000000e+00> : vector<8x8xf32>
    %122 = tpu.matmul %118, %121, %cst_54 {dimension_numbers = #tpu.dot_dimension_numbers<[1], [0], [0], [1], [0, 0, 1, 1], [], []>} : vector<8x8xf32>, vector<8x8xf32>, vector<8x8xf32> -> vector<8x8xf32>
    %cst_55 = arith.constant 0.353553385 : f32
    %123 = vector.broadcast %cst_55 : f32 to vector<8x8xf32>
    %124 = arith.mulf %122, %123 : vector<8x8xf32>
    %cst_56 = arith.constant dense<0xFF800000> : vector<8xf32>
    %125 = vector.multi_reduction <maximumf>, %124, %cst_56 [1] : vector<8x8xf32> to vector<8xf32>
    %126 = vector.shape_cast %125 : vector<8xf32> to vector<8x1xf32>
    %127 = vector.broadcast %126 : vector<8x1xf32> to vector<8x8xf32>
    %128 = arith.subf %124, %127 : vector<8x8xf32>
    %129 = math.exp %128 : vector<8x8xf32>
    %cst_57 = arith.constant dense<0.000000e+00> : vector<8xf32>
    %130 = vector.multi_reduction <add>, %129, %cst_57 [1] : vector<8x8xf32> to vector<8xf32>
    %131 = vector.shape_cast %130 : vector<8xf32> to vector<8x1xf32>
    %132 = tpu.reciprocal %131 {approx = true} : vector<8x1xf32> -> vector<8x1xf32>
    %133 = vector.broadcast %132 : vector<8x1xf32> to vector<8x8xf32>
    %134 = arith.mulf %129, %133 : vector<8x8xf32>
    %cst_58 = arith.constant dense<0.000000e+00> : vector<8x8xf32>
    %135 = tpu.matmul %134, %120, %cst_58 {dimension_numbers = #tpu.dot_dimension_numbers<[1], [0], [0], [1], [0, 0, 1, 1], [], []>} : vector<8x8xf32>, vector<8x8xf32>, vector<8x8xf32> -> vector<8x8xf32>
    %c8_59 = arith.constant 8 : index
    %c8_60 = arith.constant 8 : index
    %136 = vector.load %arg40[%c8_59, %c8_60] : memref<16x32xf32, #tpu.memory_space<vmem>>, vector<8x8xf32>
    tpu.vector_store %arg40[%c8_59, %c8_60], %135 {strides = array<i32>} : memref<16x32xf32, #tpu.memory_space<vmem>>, vector<8x8xf32>,
    %137 = vector.extract_strided_slice %12 {offsets = [8, 16], sizes = [8, 8], strides = [1, 1]} : vector<16x32xf32> to vector<8x8xf32>
    %138 = vector.extract_strided_slice %17 {offsets = [8, 16], sizes = [8, 8], strides = [1, 1]} : vector<16x32xf32> to vector<8x8xf32>
    %139 = vector.extract_strided_slice %22 {offsets = [8, 16], sizes = [8, 8], strides = [1, 1]} : vector<16x32xf32> to vector<8x8xf32>
    %140 = tpu.transpose %138, [1, 0] : vector<8x8xf32> -> vector<8x8xf32>
    %cst_61 = arith.constant dense<0.000000e+00> : vector<8x8xf32>
    %141 = tpu.matmul %137, %140, %cst_61 {dimension_numbers = #tpu.dot_dimension_numbers<[1], [0], [0], [1], [0, 0, 1, 1], [], []>} : vector<8x8xf32>, vector<8x8xf32>, vector<8x8xf32> -> vector<8x8xf32>
    %cst_62 = arith.constant 0.353553385 : f32
    %142 = vector.broadcast %cst_62 : f32 to vector<8x8xf32>
    %143 = arith.mulf %141, %142 : vector<8x8xf32>
    %cst_63 = arith.constant dense<0xFF800000> : vector<8xf32>
    %144 = vector.multi_reduction <maximumf>, %143, %cst_63 [1] : vector<8x8xf32> to vector<8xf32>
    %145 = vector.shape_cast %144 : vector<8xf32> to vector<8x1xf32>
    %146 = vector.broadcast %145 : vector<8x1xf32> to vector<8x8xf32>
    %147 = arith.subf %143, %146 : vector<8x8xf32>
    %148 = math.exp %147 : vector<8x8xf32>
    %cst_64 = arith.constant dense<0.000000e+00> : vector<8xf32>
    %149 = vector.multi_reduction <add>, %148, %cst_64 [1] : vector<8x8xf32> to vector<8xf32>
    %150 = vector.shape_cast %149 : vector<8xf32> to vector<8x1xf32>
    %151 = tpu.reciprocal %150 {approx = true} : vector<8x1xf32> -> vector<8x1xf32>
    %152 = vector.broadcast %151 : vector<8x1xf32> to vector<8x8xf32>
    %153 = arith.mulf %148, %152 : vector<8x8xf32>
    %cst_65 = arith.constant dense<0.000000e+00> : vector<8x8xf32>
    %154 = tpu.matmul %153, %139, %cst_65 {dimension_numbers = #tpu.dot_dimension_numbers<[1], [0], [0], [1], [0, 0, 1, 1], [], []>} : vector<8x8xf32>, vector<8x8xf32>, vector<8x8xf32> -> vector<8x8xf32>
    %c8_66 = arith.constant 8 : index
    %c16_67 = arith.constant 16 : index
    %155 = vector.load %arg40[%c8_66, %c16_67] : memref<16x32xf32, #tpu.memory_space<vmem>>, vector<8x8xf32>
    tpu.vector_store %arg40[%c8_66, %c16_67], %154 {strides = array<i32>} : memref<16x32xf32, #tpu.memory_space<vmem>>, vector<8x8xf32>,
    %156 = vector.extract_strided_slice %12 {offsets = [8, 24], sizes = [8, 8], strides = [1, 1]} : vector<16x32xf32> to vector<8x8xf32>
    %157 = vector.extract_strided_slice %17 {offsets = [8, 24], sizes = [8, 8], strides = [1, 1]} : vector<16x32xf32> to vector<8x8xf32>
    %158 = vector.extract_strided_slice %22 {offsets = [8, 24], sizes = [8, 8], strides = [1, 1]} : vector<16x32xf32> to vector<8x8xf32>
    %159 = tpu.transpose %157, [1, 0] : vector<8x8xf32> -> vector<8x8xf32>
    %cst_68 = arith.constant dense<0.000000e+00> : vector<8x8xf32>
    %160 = tpu.matmul %156, %159, %cst_68 {dimension_numbers = #tpu.dot_dimension_numbers<[1], [0], [0], [1], [0, 0, 1, 1], [], []>} : vector<8x8xf32>, vector<8x8xf32>, vector<8x8xf32> -> vector<8x8xf32>
    %cst_69 = arith.constant 0.353553385 : f32
    %161 = vector.broadcast %cst_69 : f32 to vector<8x8xf32>
    %162 = arith.mulf %160, %161 : vector<8x8xf32>
    %cst_70 = arith.constant dense<0xFF800000> : vector<8xf32>
    %163 = vector.multi_reduction <maximumf>, %162, %cst_70 [1] : vector<8x8xf32> to vector<8xf32>
    %164 = vector.shape_cast %163 : vector<8xf32> to vector<8x1xf32>
    %165 = vector.broadcast %164 : vector<8x1xf32> to vector<8x8xf32>
    %166 = arith.subf %162, %165 : vector<8x8xf32>
    %167 = math.exp %166 : vector<8x8xf32>
    %cst_71 = arith.constant dense<0.000000e+00> : vector<8xf32>
    %168 = vector.multi_reduction <add>, %167, %cst_71 [1] : vector<8x8xf32> to vector<8xf32>
    %169 = vector.shape_cast %168 : vector<8xf32> to vector<8x1xf32>
    %170 = tpu.reciprocal %169 {approx = true} : vector<8x1xf32> -> vector<8x1xf32>
    %171 = vector.broadcast %170 : vector<8x1xf32> to vector<8x8xf32>
    %172 = arith.mulf %167, %171 : vector<8x8xf32>
    %cst_72 = arith.constant dense<0.000000e+00> : vector<8x8xf32>
    %173 = tpu.matmul %172, %158, %cst_72 {dimension_numbers = #tpu.dot_dimension_numbers<[1], [0], [0], [1], [0, 0, 1, 1], [], []>} : vector<8x8xf32>, vector<8x8xf32>, vector<8x8xf32> -> vector<8x8xf32>
    %c8_73 = arith.constant 8 : index
    %c24_74 = arith.constant 24 : index
    %174 = vector.load %arg40[%c8_73, %c24_74] : memref<16x32xf32, #tpu.memory_space<vmem>>, vector<8x8xf32>
    tpu.vector_store %arg40[%c8_73, %c24_74], %173 {strides = array<i32>} : memref<16x32xf32, #tpu.memory_space<vmem>>, vector<8x8xf32>,
    %c0_75 = arith.constant 0 : index
    %c0_76 = arith.constant 0 : index
    %175 = vector.load %arg40[%c0_75, %c0_76] : memref<16x32xf32, #tpu.memory_space<vmem>>, vector<16x32xf32>
    %c0_77 = arith.constant 0 : index
    %c0_78 = arith.constant 0 : index
    %176 = vector.load %arg13[%c0_77, %c0_78] : memref<32x32xf32, #tpu.memory_space<vmem>>, vector<32x32xf32>
    %cst_79 = arith.constant dense<0.000000e+00> : vector<16x32xf32>
    %177 = tpu.matmul %175, %176, %cst_79 {dimension_numbers = #tpu.dot_dimension_numbers<[1], [0], [0], [1], [0, 0, 1, 1], [], []>} : vector<16x32xf32>, vector<32x32xf32>, vector<16x32xf32> -> vector<16x32xf32>
    %c0_80 = arith.constant 0 : index
    %c0_81 = arith.constant 0 : index
    %178 = vector.load %arg14[%c0_80, %c0_81] : memref<1x32xf32, #tpu.memory_space<vmem>>, vector<1x32xf32>
    %179 = vector.broadcast %178 : vector<1x32xf32> to vector<16x32xf32>
    %180 = arith.addf %177, %179 : vector<16x32xf32>
    %181 = arith.addf %7, %180 : vector<16x32xf32>
    %c0_82 = arith.constant 0 : index
    %c0_83 = arith.constant 0 : index
    %182 = vector.load %arg15[%c0_82, %c0_83] : memref<1x32xf32, #tpu.memory_space<vmem>>, vector<1x32xf32>
    %c0_84 = arith.constant 0 : index
    %c0_85 = arith.constant 0 : index
    %183 = vector.load %arg16[%c0_84, %c0_85] : memref<1x32xf32, #tpu.memory_space<vmem>>, vector<1x32xf32>
    %cst_86 = arith.constant dense<0.000000e+00> : vector<16xf32>
    %184 = vector.multi_reduction <add>, %181, %cst_86 [1] : vector<16x32xf32> to vector<16xf32>
    %185 = vector.shape_cast %184 : vector<16xf32> to vector<16x1xf32>
    %cst_87 = arith.constant 3.200000e+01 : f32
    %186 = vector.broadcast %cst_87 : f32 to vector<16x1xf32>
    %187 = arith.divf %185, %186 : vector<16x1xf32>
    %188 = vector.broadcast %187 : vector<16x1xf32> to vector<16x32xf32>
    %189 = arith.subf %181, %188 : vector<16x32xf32>
    %190 = arith.mulf %189, %189 : vector<16x32xf32>
    %cst_88 = arith.constant dense<0.000000e+00> : vector<16xf32>
    %191 = vector.multi_reduction <add>, %190, %cst_88 [1] : vector<16x32xf32> to vector<16xf32>
    %192 = vector.shape_cast %191 : vector<16xf32> to vector<16x1xf32>
    %cst_89 = arith.constant 3.200000e+01 : f32
    %193 = vector.broadcast %cst_89 : f32 to vector<16x1xf32>
    %194 = arith.divf %192, %193 : vector<16x1xf32>
    %195 = vector.broadcast %187 : vector<16x1xf32> to vector<16x32xf32>
    %196 = arith.subf %181, %195 : vector<16x32xf32>
    %cst_90 = arith.constant 9.99999974E-6 : f32
    %197 = vector.broadcast %cst_90 : f32 to vector<16x1xf32>
    %198 = arith.addf %194, %197 : vector<16x1xf32>
    %199 = math.rsqrt %198 : vector<16x1xf32>
    %200 = vector.broadcast %199 : vector<16x1xf32> to vector<16x32xf32>
    %201 = arith.mulf %196, %200 : vector<16x32xf32>
    %202 = vector.broadcast %182 : vector<1x32xf32> to vector<16x32xf32>
    %203 = arith.mulf %201, %202 : vector<16x32xf32>
    %204 = vector.broadcast %183 : vector<1x32xf32> to vector<16x32xf32>
    %205 = arith.addf %203, %204 : vector<16x32xf32>
    %c0_91 = arith.constant 0 : index
    %c0_92 = arith.constant 0 : index
    %206 = vector.load %arg17[%c0_91, %c0_92] : memref<32x2048xf32, #tpu.memory_space<vmem>>, vector<32x2048xf32>
    %cst_93 = arith.constant dense<0.000000e+00> : vector<16x2048xf32>
    %207 = tpu.matmul %205, %206, %cst_93 {dimension_numbers = #tpu.dot_dimension_numbers<[1], [0], [0], [1], [0, 0, 1, 1], [], []>} : vector<16x32xf32>, vector<32x2048xf32>, vector<16x2048xf32> -> vector<16x2048xf32>
    %c0_94 = arith.constant 0 : index
    %c0_95 = arith.constant 0 : index
    %208 = vector.load %arg18[%c0_94, %c0_95] : memref<1x2048xf32, #tpu.memory_space<vmem>>, vector<1x2048xf32>
    %209 = vector.broadcast %208 : vector<1x2048xf32> to vector<16x2048xf32>
    %210 = arith.addf %207, %209 : vector<16x2048xf32>
    %cst_96 = arith.constant 0.000000e+00 : f32
    %211 = vector.broadcast %cst_96 : f32 to vector<16x2048xf32>
    %212 = arith.maximumf %210, %211 : vector<16x2048xf32>
    %c0_97 = arith.constant 0 : index
    %c0_98 = arith.constant 0 : index
    %213 = vector.load %arg19[%c0_97, %c0_98] : memref<2048x32xf32, #tpu.memory_space<vmem>>, vector<2048x32xf32>
    %cst_99 = arith.constant dense<0.000000e+00> : vector<16x32xf32>
    %214 = tpu.matmul %212, %213, %cst_99 {dimension_numbers = #tpu.dot_dimension_numbers<[1], [0], [0], [1], [0, 0, 1, 1], [], []>} : vector<16x2048xf32>, vector<2048x32xf32>, vector<16x32xf32> -> vector<16x32xf32>
    %c0_100 = arith.constant 0 : index
    %c0_101 = arith.constant 0 : index
    %215 = vector.load %arg20[%c0_100, %c0_101] : memref<1x32xf32, #tpu.memory_space<vmem>>, vector<1x32xf32>
    %216 = vector.broadcast %215 : vector<1x32xf32> to vector<16x32xf32>
    %217 = arith.addf %214, %216 : vector<16x32xf32>
    %218 = arith.addf %205, %217 : vector<16x32xf32>
    %c0_102 = arith.constant 0 : index
    %c0_103 = arith.constant 0 : index
    %219 = vector.load %arg21[%c0_102, %c0_103] : memref<1x32xf32, #tpu.memory_space<vmem>>, vector<1x32xf32>
    %c0_104 = arith.constant 0 : index
    %c0_105 = arith.constant 0 : index
    %220 = vector.load %arg22[%c0_104, %c0_105] : memref<1x32xf32, #tpu.memory_space<vmem>>, vector<1x32xf32>
    %cst_106 = arith.constant dense<0.000000e+00> : vector<16xf32>
    %221 = vector.multi_reduction <add>, %218, %cst_106 [1] : vector<16x32xf32> to vector<16xf32>
    %222 = vector.shape_cast %221 : vector<16xf32> to vector<16x1xf32>
    %cst_107 = arith.constant 3.200000e+01 : f32
    %223 = vector.broadcast %cst_107 : f32 to vector<16x1xf32>
    %224 = arith.divf %222, %223 : vector<16x1xf32>
    %225 = vector.broadcast %224 : vector<16x1xf32> to vector<16x32xf32>
    %226 = arith.subf %218, %225 : vector<16x32xf32>
    %227 = arith.mulf %226, %226 : vector<16x32xf32>
    %cst_108 = arith.constant dense<0.000000e+00> : vector<16xf32>
    %228 = vector.multi_reduction <add>, %227, %cst_108 [1] : vector<16x32xf32> to vector<16xf32>
    %229 = vector.shape_cast %228 : vector<16xf32> to vector<16x1xf32>
    %cst_109 = arith.constant 3.200000e+01 : f32
    %230 = vector.broadcast %cst_109 : f32 to vector<16x1xf32>
    %231 = arith.divf %229, %230 : vector<16x1xf32>
    %232 = vector.broadcast %224 : vector<16x1xf32> to vector<16x32xf32>
    %233 = arith.subf %218, %232 : vector<16x32xf32>
    %cst_110 = arith.constant 9.99999974E-6 : f32
    %234 = vector.broadcast %cst_110 : f32 to vector<16x1xf32>
    %235 = arith.addf %231, %234 : vector<16x1xf32>
    %236 = math.rsqrt %235 : vector<16x1xf32>
    %237 = vector.broadcast %236 : vector<16x1xf32> to vector<16x32xf32>
    %238 = arith.mulf %233, %237 : vector<16x32xf32>
    %239 = vector.broadcast %219 : vector<1x32xf32> to vector<16x32xf32>
    %240 = arith.mulf %238, %239 : vector<16x32xf32>
    %241 = vector.broadcast %220 : vector<1x32xf32> to vector<16x32xf32>
    %242 = arith.addf %240, %241 : vector<16x32xf32>
    %c0_111 = arith.constant 0 : index
    %c0_112 = arith.constant 0 : index
    %243 = vector.load %arg23[%c0_111, %c0_112] : memref<32x32xf32, #tpu.memory_space<vmem>>, vector<32x32xf32>
    %cst_113 = arith.constant dense<0.000000e+00> : vector<16x32xf32>
    %244 = tpu.matmul %242, %243, %cst_113 {dimension_numbers = #tpu.dot_dimension_numbers<[1], [0], [0], [1], [0, 0, 1, 1], [], []>} : vector<16x32xf32>, vector<32x32xf32>, vector<16x32xf32> -> vector<16x32xf32>
    %c0_114 = arith.constant 0 : index
    %c0_115 = arith.constant 0 : index
    %245 = vector.load %arg24[%c0_114, %c0_115] : memref<1x32xf32, #tpu.memory_space<vmem>>, vector<1x32xf32>
    %246 = vector.broadcast %245 : vector<1x32xf32> to vector<16x32xf32>
    %247 = arith.addf %244, %246 : vector<16x32xf32>
    %c0_116 = arith.constant 0 : index
    %c0_117 = arith.constant 0 : index
    %248 = vector.load %arg25[%c0_116, %c0_117] : memref<32x32xf32, #tpu.memory_space<vmem>>, vector<32x32xf32>
    %cst_118 = arith.constant dense<0.000000e+00> : vector<16x32xf32>
    %249 = tpu.matmul %242, %248, %cst_118 {dimension_numbers = #tpu.dot_dimension_numbers<[1], [0], [0], [1], [0, 0, 1, 1], [], []>} : vector<16x32xf32>, vector<32x32xf32>, vector<16x32xf32> -> vector<16x32xf32>
    %c0_119 = arith.constant 0 : index
    %c0_120 = arith.constant 0 : index
    %250 = vector.load %arg26[%c0_119, %c0_120] : memref<1x32xf32, #tpu.memory_space<vmem>>, vector<1x32xf32>
    %251 = vector.broadcast %250 : vector<1x32xf32> to vector<16x32xf32>
    %252 = arith.addf %249, %251 : vector<16x32xf32>
    %c0_121 = arith.constant 0 : index
    %c0_122 = arith.constant 0 : index
    %253 = vector.load %arg27[%c0_121, %c0_122] : memref<32x32xf32, #tpu.memory_space<vmem>>, vector<32x32xf32>
    %cst_123 = arith.constant dense<0.000000e+00> : vector<16x32xf32>
    %254 = tpu.matmul %242, %253, %cst_123 {dimension_numbers = #tpu.dot_dimension_numbers<[1], [0], [0], [1], [0, 0, 1, 1], [], []>} : vector<16x32xf32>, vector<32x32xf32>, vector<16x32xf32> -> vector<16x32xf32>
    %c0_124 = arith.constant 0 : index
    %c0_125 = arith.constant 0 : index
    %255 = vector.load %arg28[%c0_124, %c0_125] : memref<1x32xf32, #tpu.memory_space<vmem>>, vector<1x32xf32>
    %256 = vector.broadcast %255 : vector<1x32xf32> to vector<16x32xf32>
    %257 = arith.addf %254, %256 : vector<16x32xf32>
    %258 = vector.extract_strided_slice %247 {offsets = [0, 0], sizes = [8, 8], strides = [1, 1]} : vector<16x32xf32> to vector<8x8xf32>
    %259 = vector.extract_strided_slice %252 {offsets = [0, 0], sizes = [8, 8], strides = [1, 1]} : vector<16x32xf32> to vector<8x8xf32>
    %260 = vector.extract_strided_slice %257 {offsets = [0, 0], sizes = [8, 8], strides = [1, 1]} : vector<16x32xf32> to vector<8x8xf32>
    %261 = tpu.transpose %259, [1, 0] : vector<8x8xf32> -> vector<8x8xf32>
    %cst_126 = arith.constant dense<0.000000e+00> : vector<8x8xf32>
    %262 = tpu.matmul %258, %261, %cst_126 {dimension_numbers = #tpu.dot_dimension_numbers<[1], [0], [0], [1], [0, 0, 1, 1], [], []>} : vector<8x8xf32>, vector<8x8xf32>, vector<8x8xf32> -> vector<8x8xf32>
    %cst_127 = arith.constant 0.353553385 : f32
    %263 = vector.broadcast %cst_127 : f32 to vector<8x8xf32>
    %264 = arith.mulf %262, %263 : vector<8x8xf32>
    %cst_128 = arith.constant dense<0xFF800000> : vector<8xf32>
    %265 = vector.multi_reduction <maximumf>, %264, %cst_128 [1] : vector<8x8xf32> to vector<8xf32>
    %266 = vector.shape_cast %265 : vector<8xf32> to vector<8x1xf32>
    %267 = vector.broadcast %266 : vector<8x1xf32> to vector<8x8xf32>
    %268 = arith.subf %264, %267 : vector<8x8xf32>
    %269 = math.exp %268 : vector<8x8xf32>
    %cst_129 = arith.constant dense<0.000000e+00> : vector<8xf32>
    %270 = vector.multi_reduction <add>, %269, %cst_129 [1] : vector<8x8xf32> to vector<8xf32>
    %271 = vector.shape_cast %270 : vector<8xf32> to vector<8x1xf32>
    %272 = tpu.reciprocal %271 {approx = true} : vector<8x1xf32> -> vector<8x1xf32>
    %273 = vector.broadcast %272 : vector<8x1xf32> to vector<8x8xf32>
    %274 = arith.mulf %269, %273 : vector<8x8xf32>
    %cst_130 = arith.constant dense<0.000000e+00> : vector<8x8xf32>
    %275 = tpu.matmul %274, %260, %cst_130 {dimension_numbers = #tpu.dot_dimension_numbers<[1], [0], [0], [1], [0, 0, 1, 1], [], []>} : vector<8x8xf32>, vector<8x8xf32>, vector<8x8xf32> -> vector<8x8xf32>
    %c0_131 = arith.constant 0 : index
    %c0_132 = arith.constant 0 : index
    %276 = vector.load %arg40[%c0_131, %c0_132] : memref<16x32xf32, #tpu.memory_space<vmem>>, vector<8x8xf32>
    tpu.vector_store %arg40[%c0_131, %c0_132], %275 {strides = array<i32>} : memref<16x32xf32, #tpu.memory_space<vmem>>, vector<8x8xf32>,
    %277 = vector.extract_strided_slice %247 {offsets = [0, 8], sizes = [8, 8], strides = [1, 1]} : vector<16x32xf32> to vector<8x8xf32>
    %278 = vector.extract_strided_slice %252 {offsets = [0, 8], sizes = [8, 8], strides = [1, 1]} : vector<16x32xf32> to vector<8x8xf32>
    %279 = vector.extract_strided_slice %257 {offsets = [0, 8], sizes = [8, 8], strides = [1, 1]} : vector<16x32xf32> to vector<8x8xf32>
    %280 = tpu.transpose %278, [1, 0] : vector<8x8xf32> -> vector<8x8xf32>
    %cst_133 = arith.constant dense<0.000000e+00> : vector<8x8xf32>
    %281 = tpu.matmul %277, %280, %cst_133 {dimension_numbers = #tpu.dot_dimension_numbers<[1], [0], [0], [1], [0, 0, 1, 1], [], []>} : vector<8x8xf32>, vector<8x8xf32>, vector<8x8xf32> -> vector<8x8xf32>
    %cst_134 = arith.constant 0.353553385 : f32
    %282 = vector.broadcast %cst_134 : f32 to vector<8x8xf32>
    %283 = arith.mulf %281, %282 : vector<8x8xf32>
    %cst_135 = arith.constant dense<0xFF800000> : vector<8xf32>
    %284 = vector.multi_reduction <maximumf>, %283, %cst_135 [1] : vector<8x8xf32> to vector<8xf32>
    %285 = vector.shape_cast %284 : vector<8xf32> to vector<8x1xf32>
    %286 = vector.broadcast %285 : vector<8x1xf32> to vector<8x8xf32>
    %287 = arith.subf %283, %286 : vector<8x8xf32>
    %288 = math.exp %287 : vector<8x8xf32>
    %cst_136 = arith.constant dense<0.000000e+00> : vector<8xf32>
    %289 = vector.multi_reduction <add>, %288, %cst_136 [1] : vector<8x8xf32> to vector<8xf32>
    %290 = vector.shape_cast %289 : vector<8xf32> to vector<8x1xf32>
    %291 = tpu.reciprocal %290 {approx = true} : vector<8x1xf32> -> vector<8x1xf32>
    %292 = vector.broadcast %291 : vector<8x1xf32> to vector<8x8xf32>
    %293 = arith.mulf %288, %292 : vector<8x8xf32>
    %cst_137 = arith.constant dense<0.000000e+00> : vector<8x8xf32>
    %294 = tpu.matmul %293, %279, %cst_137 {dimension_numbers = #tpu.dot_dimension_numbers<[1], [0], [0], [1], [0, 0, 1, 1], [], []>} : vector<8x8xf32>, vector<8x8xf32>, vector<8x8xf32> -> vector<8x8xf32>
    %c0_138 = arith.constant 0 : index
    %c8_139 = arith.constant 8 : index
    %295 = vector.load %arg40[%c0_138, %c8_139] : memref<16x32xf32, #tpu.memory_space<vmem>>, vector<8x8xf32>
    tpu.vector_store %arg40[%c0_138, %c8_139], %294 {strides = array<i32>} : memref<16x32xf32, #tpu.memory_space<vmem>>, vector<8x8xf32>,
    %296 = vector.extract_strided_slice %247 {offsets = [0, 16], sizes = [8, 8], strides = [1, 1]} : vector<16x32xf32> to vector<8x8xf32>
    %297 = vector.extract_strided_slice %252 {offsets = [0, 16], sizes = [8, 8], strides = [1, 1]} : vector<16x32xf32> to vector<8x8xf32>
    %298 = vector.extract_strided_slice %257 {offsets = [0, 16], sizes = [8, 8], strides = [1, 1]} : vector<16x32xf32> to vector<8x8xf32>
    %299 = tpu.transpose %297, [1, 0] : vector<8x8xf32> -> vector<8x8xf32>
    %cst_140 = arith.constant dense<0.000000e+00> : vector<8x8xf32>
    %300 = tpu.matmul %296, %299, %cst_140 {dimension_numbers = #tpu.dot_dimension_numbers<[1], [0], [0], [1], [0, 0, 1, 1], [], []>} : vector<8x8xf32>, vector<8x8xf32>, vector<8x8xf32> -> vector<8x8xf32>
    %cst_141 = arith.constant 0.353553385 : f32
    %301 = vector.broadcast %cst_141 : f32 to vector<8x8xf32>
    %302 = arith.mulf %300, %301 : vector<8x8xf32>
    %cst_142 = arith.constant dense<0xFF800000> : vector<8xf32>
    %303 = vector.multi_reduction <maximumf>, %302, %cst_142 [1] : vector<8x8xf32> to vector<8xf32>
    %304 = vector.shape_cast %303 : vector<8xf32> to vector<8x1xf32>
    %305 = vector.broadcast %304 : vector<8x1xf32> to vector<8x8xf32>
    %306 = arith.subf %302, %305 : vector<8x8xf32>
    %307 = math.exp %306 : vector<8x8xf32>
    %cst_143 = arith.constant dense<0.000000e+00> : vector<8xf32>
    %308 = vector.multi_reduction <add>, %307, %cst_143 [1] : vector<8x8xf32> to vector<8xf32>
    %309 = vector.shape_cast %308 : vector<8xf32> to vector<8x1xf32>
    %310 = tpu.reciprocal %309 {approx = true} : vector<8x1xf32> -> vector<8x1xf32>
    %311 = vector.broadcast %310 : vector<8x1xf32> to vector<8x8xf32>
    %312 = arith.mulf %307, %311 : vector<8x8xf32>
    %cst_144 = arith.constant dense<0.000000e+00> : vector<8x8xf32>
    %313 = tpu.matmul %312, %298, %cst_144 {dimension_numbers = #tpu.dot_dimension_numbers<[1], [0], [0], [1], [0, 0, 1, 1], [], []>} : vector<8x8xf32>, vector<8x8xf32>, vector<8x8xf32> -> vector<8x8xf32>
    %c0_145 = arith.constant 0 : index
    %c16_146 = arith.constant 16 : index
    %314 = vector.load %arg40[%c0_145, %c16_146] : memref<16x32xf32, #tpu.memory_space<vmem>>, vector<8x8xf32>
    tpu.vector_store %arg40[%c0_145, %c16_146], %313 {strides = array<i32>} : memref<16x32xf32, #tpu.memory_space<vmem>>, vector<8x8xf32>,
    %315 = vector.extract_strided_slice %247 {offsets = [0, 24], sizes = [8, 8], strides = [1, 1]} : vector<16x32xf32> to vector<8x8xf32>
    %316 = vector.extract_strided_slice %252 {offsets = [0, 24], sizes = [8, 8], strides = [1, 1]} : vector<16x32xf32> to vector<8x8xf32>
    %317 = vector.extract_strided_slice %257 {offsets = [0, 24], sizes = [8, 8], strides = [1, 1]} : vector<16x32xf32> to vector<8x8xf32>
    %318 = tpu.transpose %316, [1, 0] : vector<8x8xf32> -> vector<8x8xf32>
    %cst_147 = arith.constant dense<0.000000e+00> : vector<8x8xf32>
    %319 = tpu.matmul %315, %318, %cst_147 {dimension_numbers = #tpu.dot_dimension_numbers<[1], [0], [0], [1], [0, 0, 1, 1], [], []>} : vector<8x8xf32>, vector<8x8xf32>, vector<8x8xf32> -> vector<8x8xf32>
    %cst_148 = arith.constant 0.353553385 : f32
    %320 = vector.broadcast %cst_148 : f32 to vector<8x8xf32>
    %321 = arith.mulf %319, %320 : vector<8x8xf32>
    %cst_149 = arith.constant dense<0xFF800000> : vector<8xf32>
    %322 = vector.multi_reduction <maximumf>, %321, %cst_149 [1] : vector<8x8xf32> to vector<8xf32>
    %323 = vector.shape_cast %322 : vector<8xf32> to vector<8x1xf32>
    %324 = vector.broadcast %323 : vector<8x1xf32> to vector<8x8xf32>
    %325 = arith.subf %321, %324 : vector<8x8xf32>
    %326 = math.exp %325 : vector<8x8xf32>
    %cst_150 = arith.constant dense<0.000000e+00> : vector<8xf32>
    %327 = vector.multi_reduction <add>, %326, %cst_150 [1] : vector<8x8xf32> to vector<8xf32>
    %328 = vector.shape_cast %327 : vector<8xf32> to vector<8x1xf32>
    %329 = tpu.reciprocal %328 {approx = true} : vector<8x1xf32> -> vector<8x1xf32>
    %330 = vector.broadcast %329 : vector<8x1xf32> to vector<8x8xf32>
    %331 = arith.mulf %326, %330 : vector<8x8xf32>
    %cst_151 = arith.constant dense<0.000000e+00> : vector<8x8xf32>
    %332 = tpu.matmul %331, %317, %cst_151 {dimension_numbers = #tpu.dot_dimension_numbers<[1], [0], [0], [1], [0, 0, 1, 1], [], []>} : vector<8x8xf32>, vector<8x8xf32>, vector<8x8xf32> -> vector<8x8xf32>
    %c0_152 = arith.constant 0 : index
    %c24_153 = arith.constant 24 : index
    %333 = vector.load %arg40[%c0_152, %c24_153] : memref<16x32xf32, #tpu.memory_space<vmem>>, vector<8x8xf32>
    tpu.vector_store %arg40[%c0_152, %c24_153], %332 {strides = array<i32>} : memref<16x32xf32, #tpu.memory_space<vmem>>, vector<8x8xf32>,
    %334 = vector.extract_strided_slice %247 {offsets = [8, 0], sizes = [8, 8], strides = [1, 1]} : vector<16x32xf32> to vector<8x8xf32>
    %335 = vector.extract_strided_slice %252 {offsets = [8, 0], sizes = [8, 8], strides = [1, 1]} : vector<16x32xf32> to vector<8x8xf32>
    %336 = vector.extract_strided_slice %257 {offsets = [8, 0], sizes = [8, 8], strides = [1, 1]} : vector<16x32xf32> to vector<8x8xf32>
    %337 = tpu.transpose %335, [1, 0] : vector<8x8xf32> -> vector<8x8xf32>
    %cst_154 = arith.constant dense<0.000000e+00> : vector<8x8xf32>
    %338 = tpu.matmul %334, %337, %cst_154 {dimension_numbers = #tpu.dot_dimension_numbers<[1], [0], [0], [1], [0, 0, 1, 1], [], []>} : vector<8x8xf32>, vector<8x8xf32>, vector<8x8xf32> -> vector<8x8xf32>
    %cst_155 = arith.constant 0.353553385 : f32
    %339 = vector.broadcast %cst_155 : f32 to vector<8x8xf32>
    %340 = arith.mulf %338, %339 : vector<8x8xf32>
    %cst_156 = arith.constant dense<0xFF800000> : vector<8xf32>
    %341 = vector.multi_reduction <maximumf>, %340, %cst_156 [1] : vector<8x8xf32> to vector<8xf32>
    %342 = vector.shape_cast %341 : vector<8xf32> to vector<8x1xf32>
    %343 = vector.broadcast %342 : vector<8x1xf32> to vector<8x8xf32>
    %344 = arith.subf %340, %343 : vector<8x8xf32>
    %345 = math.exp %344 : vector<8x8xf32>
    %cst_157 = arith.constant dense<0.000000e+00> : vector<8xf32>
    %346 = vector.multi_reduction <add>, %345, %cst_157 [1] : vector<8x8xf32> to vector<8xf32>
    %347 = vector.shape_cast %346 : vector<8xf32> to vector<8x1xf32>
    %348 = tpu.reciprocal %347 {approx = true} : vector<8x1xf32> -> vector<8x1xf32>
    %349 = vector.broadcast %348 : vector<8x1xf32> to vector<8x8xf32>
    %350 = arith.mulf %345, %349 : vector<8x8xf32>
    %cst_158 = arith.constant dense<0.000000e+00> : vector<8x8xf32>
    %351 = tpu.matmul %350, %336, %cst_158 {dimension_numbers = #tpu.dot_dimension_numbers<[1], [0], [0], [1], [0, 0, 1, 1], [], []>} : vector<8x8xf32>, vector<8x8xf32>, vector<8x8xf32> -> vector<8x8xf32>
    %c8_159 = arith.constant 8 : index
    %c0_160 = arith.constant 0 : index
    %352 = vector.load %arg40[%c8_159, %c0_160] : memref<16x32xf32, #tpu.memory_space<vmem>>, vector<8x8xf32>
    tpu.vector_store %arg40[%c8_159, %c0_160], %351 {strides = array<i32>} : memref<16x32xf32, #tpu.memory_space<vmem>>, vector<8x8xf32>,
    %353 = vector.extract_strided_slice %247 {offsets = [8, 8], sizes = [8, 8], strides = [1, 1]} : vector<16x32xf32> to vector<8x8xf32>
    %354 = vector.extract_strided_slice %252 {offsets = [8, 8], sizes = [8, 8], strides = [1, 1]} : vector<16x32xf32> to vector<8x8xf32>
    %355 = vector.extract_strided_slice %257 {offsets = [8, 8], sizes = [8, 8], strides = [1, 1]} : vector<16x32xf32> to vector<8x8xf32>
    %356 = tpu.transpose %354, [1, 0] : vector<8x8xf32> -> vector<8x8xf32>
    %cst_161 = arith.constant dense<0.000000e+00> : vector<8x8xf32>
    %357 = tpu.matmul %353, %356, %cst_161 {dimension_numbers = #tpu.dot_dimension_numbers<[1], [0], [0], [1], [0, 0, 1, 1], [], []>} : vector<8x8xf32>, vector<8x8xf32>, vector<8x8xf32> -> vector<8x8xf32>
    %cst_162 = arith.constant 0.353553385 : f32
    %358 = vector.broadcast %cst_162 : f32 to vector<8x8xf32>
    %359 = arith.mulf %357, %358 : vector<8x8xf32>
    %cst_163 = arith.constant dense<0xFF800000> : vector<8xf32>
    %360 = vector.multi_reduction <maximumf>, %359, %cst_163 [1] : vector<8x8xf32> to vector<8xf32>
    %361 = vector.shape_cast %360 : vector<8xf32> to vector<8x1xf32>
    %362 = vector.broadcast %361 : vector<8x1xf32> to vector<8x8xf32>
    %363 = arith.subf %359, %362 : vector<8x8xf32>
    %364 = math.exp %363 : vector<8x8xf32>
    %cst_164 = arith.constant dense<0.000000e+00> : vector<8xf32>
    %365 = vector.multi_reduction <add>, %364, %cst_164 [1] : vector<8x8xf32> to vector<8xf32>
    %366 = vector.shape_cast %365 : vector<8xf32> to vector<8x1xf32>
    %367 = tpu.reciprocal %366 {approx = true} : vector<8x1xf32> -> vector<8x1xf32>
    %368 = vector.broadcast %367 : vector<8x1xf32> to vector<8x8xf32>
    %369 = arith.mulf %364, %368 : vector<8x8xf32>
    %cst_165 = arith.constant dense<0.000000e+00> : vector<8x8xf32>
    %370 = tpu.matmul %369, %355, %cst_165 {dimension_numbers = #tpu.dot_dimension_numbers<[1], [0], [0], [1], [0, 0, 1, 1], [], []>} : vector<8x8xf32>, vector<8x8xf32>, vector<8x8xf32> -> vector<8x8xf32>
    %c8_166 = arith.constant 8 : index
    %c8_167 = arith.constant 8 : index
    %371 = vector.load %arg40[%c8_166, %c8_167] : memref<16x32xf32, #tpu.memory_space<vmem>>, vector<8x8xf32>
    tpu.vector_store %arg40[%c8_166, %c8_167], %370 {strides = array<i32>} : memref<16x32xf32, #tpu.memory_space<vmem>>, vector<8x8xf32>,
    %372 = vector.extract_strided_slice %247 {offsets = [8, 16], sizes = [8, 8], strides = [1, 1]} : vector<16x32xf32> to vector<8x8xf32>
    %373 = vector.extract_strided_slice %252 {offsets = [8, 16], sizes = [8, 8], strides = [1, 1]} : vector<16x32xf32> to vector<8x8xf32>
    %374 = vector.extract_strided_slice %257 {offsets = [8, 16], sizes = [8, 8], strides = [1, 1]} : vector<16x32xf32> to vector<8x8xf32>
    %375 = tpu.transpose %373, [1, 0] : vector<8x8xf32> -> vector<8x8xf32>
    %cst_168 = arith.constant dense<0.000000e+00> : vector<8x8xf32>
    %376 = tpu.matmul %372, %375, %cst_168 {dimension_numbers = #tpu.dot_dimension_numbers<[1], [0], [0], [1], [0, 0, 1, 1], [], []>} : vector<8x8xf32>, vector<8x8xf32>, vector<8x8xf32> -> vector<8x8xf32>
    %cst_169 = arith.constant 0.353553385 : f32
    %377 = vector.broadcast %cst_169 : f32 to vector<8x8xf32>
    %378 = arith.mulf %376, %377 : vector<8x8xf32>
    %cst_170 = arith.constant dense<0xFF800000> : vector<8xf32>
    %379 = vector.multi_reduction <maximumf>, %378, %cst_170 [1] : vector<8x8xf32> to vector<8xf32>
    %380 = vector.shape_cast %379 : vector<8xf32> to vector<8x1xf32>
    %381 = vector.broadcast %380 : vector<8x1xf32> to vector<8x8xf32>
    %382 = arith.subf %378, %381 : vector<8x8xf32>
    %383 = math.exp %382 : vector<8x8xf32>
    %cst_171 = arith.constant dense<0.000000e+00> : vector<8xf32>
    %384 = vector.multi_reduction <add>, %383, %cst_171 [1] : vector<8x8xf32> to vector<8xf32>
    %385 = vector.shape_cast %384 : vector<8xf32> to vector<8x1xf32>
    %386 = tpu.reciprocal %385 {approx = true} : vector<8x1xf32> -> vector<8x1xf32>
    %387 = vector.broadcast %386 : vector<8x1xf32> to vector<8x8xf32>
    %388 = arith.mulf %383, %387 : vector<8x8xf32>
    %cst_172 = arith.constant dense<0.000000e+00> : vector<8x8xf32>
    %389 = tpu.matmul %388, %374, %cst_172 {dimension_numbers = #tpu.dot_dimension_numbers<[1], [0], [0], [1], [0, 0, 1, 1], [], []>} : vector<8x8xf32>, vector<8x8xf32>, vector<8x8xf32> -> vector<8x8xf32>
    %c8_173 = arith.constant 8 : index
    %c16_174 = arith.constant 16 : index
    %390 = vector.load %arg40[%c8_173, %c16_174] : memref<16x32xf32, #tpu.memory_space<vmem>>, vector<8x8xf32>
    tpu.vector_store %arg40[%c8_173, %c16_174], %389 {strides = array<i32>} : memref<16x32xf32, #tpu.memory_space<vmem>>, vector<8x8xf32>,
    %391 = vector.extract_strided_slice %247 {offsets = [8, 24], sizes = [8, 8], strides = [1, 1]} : vector<16x32xf32> to vector<8x8xf32>
    %392 = vector.extract_strided_slice %252 {offsets = [8, 24], sizes = [8, 8], strides = [1, 1]} : vector<16x32xf32> to vector<8x8xf32>
    %393 = vector.extract_strided_slice %257 {offsets = [8, 24], sizes = [8, 8], strides = [1, 1]} : vector<16x32xf32> to vector<8x8xf32>
    %394 = tpu.transpose %392, [1, 0] : vector<8x8xf32> -> vector<8x8xf32>
    %cst_175 = arith.constant dense<0.000000e+00> : vector<8x8xf32>
    %395 = tpu.matmul %391, %394, %cst_175 {dimension_numbers = #tpu.dot_dimension_numbers<[1], [0], [0], [1], [0, 0, 1, 1], [], []>} : vector<8x8xf32>, vector<8x8xf32>, vector<8x8xf32> -> vector<8x8xf32>
    %cst_176 = arith.constant 0.353553385 : f32
    %396 = vector.broadcast %cst_176 : f32 to vector<8x8xf32>
    %397 = arith.mulf %395, %396 : vector<8x8xf32>
    %cst_177 = arith.constant dense<0xFF800000> : vector<8xf32>
    %398 = vector.multi_reduction <maximumf>, %397, %cst_177 [1] : vector<8x8xf32> to vector<8xf32>
    %399 = vector.shape_cast %398 : vector<8xf32> to vector<8x1xf32>
    %400 = vector.broadcast %399 : vector<8x1xf32> to vector<8x8xf32>
    %401 = arith.subf %397, %400 : vector<8x8xf32>
    %402 = math.exp %401 : vector<8x8xf32>
    %cst_178 = arith.constant dense<0.000000e+00> : vector<8xf32>
    %403 = vector.multi_reduction <add>, %402, %cst_178 [1] : vector<8x8xf32> to vector<8xf32>
    %404 = vector.shape_cast %403 : vector<8xf32> to vector<8x1xf32>
    %405 = tpu.reciprocal %404 {approx = true} : vector<8x1xf32> -> vector<8x1xf32>
    %406 = vector.broadcast %405 : vector<8x1xf32> to vector<8x8xf32>
    %407 = arith.mulf %402, %406 : vector<8x8xf32>
    %cst_179 = arith.constant dense<0.000000e+00> : vector<8x8xf32>
    %408 = tpu.matmul %407, %393, %cst_179 {dimension_numbers = #tpu.dot_dimension_numbers<[1], [0], [0], [1], [0, 0, 1, 1], [], []>} : vector<8x8xf32>, vector<8x8xf32>, vector<8x8xf32> -> vector<8x8xf32>
    %c8_180 = arith.constant 8 : index
    %c24_181 = arith.constant 24 : index
    %409 = vector.load %arg40[%c8_180, %c24_181] : memref<16x32xf32, #tpu.memory_space<vmem>>, vector<8x8xf32>
    tpu.vector_store %arg40[%c8_180, %c24_181], %408 {strides = array<i32>} : memref<16x32xf32, #tpu.memory_space<vmem>>, vector<8x8xf32>,
    %c0_182 = arith.constant 0 : index
    %c0_183 = arith.constant 0 : index
    %410 = vector.load %arg40[%c0_182, %c0_183] : memref<16x32xf32, #tpu.memory_space<vmem>>, vector<16x32xf32>
    %c0_184 = arith.constant 0 : index
    %c0_185 = arith.constant 0 : index
    %411 = vector.load %arg29[%c0_184, %c0_185] : memref<32x32xf32, #tpu.memory_space<vmem>>, vector<32x32xf32>
    %cst_186 = arith.constant dense<0.000000e+00> : vector<16x32xf32>
    %412 = tpu.matmul %410, %411, %cst_186 {dimension_numbers = #tpu.dot_dimension_numbers<[1], [0], [0], [1], [0, 0, 1, 1], [], []>} : vector<16x32xf32>, vector<32x32xf32>, vector<16x32xf32> -> vector<16x32xf32>
    %c0_187 = arith.constant 0 : index
    %c0_188 = arith.constant 0 : index
    %413 = vector.load %arg30[%c0_187, %c0_188] : memref<1x32xf32, #tpu.memory_space<vmem>>, vector<1x32xf32>
    %414 = vector.broadcast %413 : vector<1x32xf32> to vector<16x32xf32>
    %415 = arith.addf %412, %414 : vector<16x32xf32>
    %416 = arith.addf %242, %415 : vector<16x32xf32>
    %c0_189 = arith.constant 0 : index
    %c0_190 = arith.constant 0 : index
    %417 = vector.load %arg31[%c0_189, %c0_190] : memref<1x32xf32, #tpu.memory_space<vmem>>, vector<1x32xf32>
    %c0_191 = arith.constant 0 : index
    %c0_192 = arith.constant 0 : index
    %418 = vector.load %arg32[%c0_191, %c0_192] : memref<1x32xf32, #tpu.memory_space<vmem>>, vector<1x32xf32>
    %cst_193 = arith.constant dense<0.000000e+00> : vector<16xf32>
    %419 = vector.multi_reduction <add>, %416, %cst_193 [1] : vector<16x32xf32> to vector<16xf32>
    %420 = vector.shape_cast %419 : vector<16xf32> to vector<16x1xf32>
    %cst_194 = arith.constant 3.200000e+01 : f32
    %421 = vector.broadcast %cst_194 : f32 to vector<16x1xf32>
    %422 = arith.divf %420, %421 : vector<16x1xf32>
    %423 = vector.broadcast %422 : vector<16x1xf32> to vector<16x32xf32>
    %424 = arith.subf %416, %423 : vector<16x32xf32>
    %425 = arith.mulf %424, %424 : vector<16x32xf32>
    %cst_195 = arith.constant dense<0.000000e+00> : vector<16xf32>
    %426 = vector.multi_reduction <add>, %425, %cst_195 [1] : vector<16x32xf32> to vector<16xf32>
    %427 = vector.shape_cast %426 : vector<16xf32> to vector<16x1xf32>
    %cst_196 = arith.constant 3.200000e+01 : f32
    %428 = vector.broadcast %cst_196 : f32 to vector<16x1xf32>
    %429 = arith.divf %427, %428 : vector<16x1xf32>
    %430 = vector.broadcast %422 : vector<16x1xf32> to vector<16x32xf32>
    %431 = arith.subf %416, %430 : vector<16x32xf32>
    %cst_197 = arith.constant 9.99999974E-6 : f32
    %432 = vector.broadcast %cst_197 : f32 to vector<16x1xf32>
    %433 = arith.addf %429, %432 : vector<16x1xf32>
    %434 = math.rsqrt %433 : vector<16x1xf32>
    %435 = vector.broadcast %434 : vector<16x1xf32> to vector<16x32xf32>
    %436 = arith.mulf %431, %435 : vector<16x32xf32>
    %437 = vector.broadcast %417 : vector<1x32xf32> to vector<16x32xf32>
    %438 = arith.mulf %436, %437 : vector<16x32xf32>
    %439 = vector.broadcast %418 : vector<1x32xf32> to vector<16x32xf32>
    %440 = arith.addf %438, %439 : vector<16x32xf32>
    %c0_198 = arith.constant 0 : index
    %c0_199 = arith.constant 0 : index
    %441 = vector.load %arg33[%c0_198, %c0_199] : memref<32x2048xf32, #tpu.memory_space<vmem>>, vector<32x2048xf32>
    %cst_200 = arith.constant dense<0.000000e+00> : vector<16x2048xf32>
    %442 = tpu.matmul %440, %441, %cst_200 {dimension_numbers = #tpu.dot_dimension_numbers<[1], [0], [0], [1], [0, 0, 1, 1], [], []>} : vector<16x32xf32>, vector<32x2048xf32>, vector<16x2048xf32> -> vector<16x2048xf32>
    %c0_201 = arith.constant 0 : index
    %c0_202 = arith.constant 0 : index
    %443 = vector.load %arg34[%c0_201, %c0_202] : memref<1x2048xf32, #tpu.memory_space<vmem>>, vector<1x2048xf32>
    %444 = vector.broadcast %443 : vector<1x2048xf32> to vector<16x2048xf32>
    %445 = arith.addf %442, %444 : vector<16x2048xf32>
    %cst_203 = arith.constant 0.000000e+00 : f32
    %446 = vector.broadcast %cst_203 : f32 to vector<16x2048xf32>
    %447 = arith.maximumf %445, %446 : vector<16x2048xf32>
    %c0_204 = arith.constant 0 : index
    %c0_205 = arith.constant 0 : index
    %448 = vector.load %arg35[%c0_204, %c0_205] : memref<2048x32xf32, #tpu.memory_space<vmem>>, vector<2048x32xf32>
    %cst_206 = arith.constant dense<0.000000e+00> : vector<16x32xf32>
    %449 = tpu.matmul %447, %448, %cst_206 {dimension_numbers = #tpu.dot_dimension_numbers<[1], [0], [0], [1], [0, 0, 1, 1], [], []>} : vector<16x2048xf32>, vector<2048x32xf32>, vector<16x32xf32> -> vector<16x32xf32>
    %c0_207 = arith.constant 0 : index
    %c0_208 = arith.constant 0 : index
    %450 = vector.load %arg36[%c0_207, %c0_208] : memref<1x32xf32, #tpu.memory_space<vmem>>, vector<1x32xf32>
    %451 = vector.broadcast %450 : vector<1x32xf32> to vector<16x32xf32>
    %452 = arith.addf %449, %451 : vector<16x32xf32>
    %453 = arith.addf %440, %452 : vector<16x32xf32>
    %c0_209 = arith.constant 0 : index
    %c0_210 = arith.constant 0 : index
    %454 = vector.load %arg37[%c0_209, %c0_210] : memref<1x32xf32, #tpu.memory_space<vmem>>, vector<1x32xf32>
    %c0_211 = arith.constant 0 : index
    %c0_212 = arith.constant 0 : index
    %455 = vector.load %arg38[%c0_211, %c0_212] : memref<1x32xf32, #tpu.memory_space<vmem>>, vector<1x32xf32>
    %cst_213 = arith.constant dense<0.000000e+00> : vector<16xf32>
    %456 = vector.multi_reduction <add>, %453, %cst_213 [1] : vector<16x32xf32> to vector<16xf32>
    %457 = vector.shape_cast %456 : vector<16xf32> to vector<16x1xf32>
    %cst_214 = arith.constant 3.200000e+01 : f32
    %458 = vector.broadcast %cst_214 : f32 to vector<16x1xf32>
    %459 = arith.divf %457, %458 : vector<16x1xf32>
    %460 = vector.broadcast %459 : vector<16x1xf32> to vector<16x32xf32>
    %461 = arith.subf %453, %460 : vector<16x32xf32>
    %462 = arith.mulf %461, %461 : vector<16x32xf32>
    %cst_215 = arith.constant dense<0.000000e+00> : vector<16xf32>
    %463 = vector.multi_reduction <add>, %462, %cst_215 [1] : vector<16x32xf32> to vector<16xf32>
    %464 = vector.shape_cast %463 : vector<16xf32> to vector<16x1xf32>
    %cst_216 = arith.constant 3.200000e+01 : f32
    %465 = vector.broadcast %cst_216 : f32 to vector<16x1xf32>
    %466 = arith.divf %464, %465 : vector<16x1xf32>
    %467 = vector.broadcast %459 : vector<16x1xf32> to vector<16x32xf32>
    %468 = arith.subf %453, %467 : vector<16x32xf32>
    %cst_217 = arith.constant 9.99999974E-6 : f32
    %469 = vector.broadcast %cst_217 : f32 to vector<16x1xf32>
    %470 = arith.addf %466, %469 : vector<16x1xf32>
    %471 = math.rsqrt %470 : vector<16x1xf32>
    %472 = vector.broadcast %471 : vector<16x1xf32> to vector<16x32xf32>
    %473 = arith.mulf %468, %472 : vector<16x32xf32>
    %474 = vector.broadcast %454 : vector<1x32xf32> to vector<16x32xf32>
    %475 = arith.mulf %473, %474 : vector<16x32xf32>
    %476 = vector.broadcast %455 : vector<1x32xf32> to vector<16x32xf32>
    %477 = arith.addf %475, %476 : vector<16x32xf32>
    %478 = vector.extract_strided_slice %477 {offsets = [8, 0], sizes = [8, 32], strides = [1, 1]} : vector<16x32xf32> to vector<8x32xf32>
    %c0_218 = arith.constant 0 : index
    %c0_219 = arith.constant 0 : index
    %479 = vector.load %arg5[%c0_218, %c0_219] : memref<32x8xf32, #tpu.memory_space<vmem>>, vector<32x8xf32>
    %cst_220 = arith.constant dense<0.000000e+00> : vector<8x8xf32>
    %480 = tpu.matmul %478, %479, %cst_220 {dimension_numbers = #tpu.dot_dimension_numbers<[1], [0], [0], [1], [0, 0, 1, 1], [], []>} : vector<8x32xf32>, vector<32x8xf32>, vector<8x8xf32> -> vector<8x8xf32>
    %c0_221 = arith.constant 0 : index
    %c0_222 = arith.constant 0 : index
    %481 = vector.load %arg6[%c0_221, %c0_222] : memref<1x8xf32, #tpu.memory_space<vmem>>, vector<1x8xf32>
    %482 = vector.broadcast %481 : vector<1x8xf32> to vector<8x8xf32>
    %483 = arith.addf %480, %482 : vector<8x8xf32>
    %c0_223 = arith.constant 0 : index
    %c0_224 = arith.constant 0 : index
    %484 = vector.load %arg39[%c0_223, %c0_224] : memref<8x8xf32, #tpu.memory_space<vmem>>, vector<8x8xf32>
    tpu.vector_store %arg39[%c0_223, %c0_224], %483 {strides = array<i32>} : memref<8x8xf32, #tpu.memory_space<vmem>>, vector<8x8xf32>,
    return
  }
  func.func @transform_0(%arg0: i32) -> (i32, i32) {
    %c0_i32 = arith.constant 0 : i32
    %c0_i32_0 = arith.constant 0 : i32
    %c0_i32_1 = arith.constant 0 : i32
    return %c0_i32, %c0_i32_0 : i32, i32
  }
  func.func @transform_1(%arg0: i32) -> (i32, i32) {
    %c0_i32 = arith.constant 0 : i32
    %c0_i32_0 = arith.constant 0 : i32
    %c0_i32_1 = arith.constant 0 : i32
    return %c0_i32, %c0_i32_0 : i32, i32
  }
  func.func @transform_2(%arg0: i32) -> (i32, i32) {
    %c0_i32 = arith.constant 0 : i32
    %c0_i32_0 = arith.constant 0 : i32
    %c0_i32_1 = arith.constant 0 : i32
    return %c0_i32, %c0_i32_0 : i32, i32
  }
  func.func @transform_3(%arg0: i32) -> (i32, i32) {
    %c0_i32 = arith.constant 0 : i32
    %c0_i32_0 = arith.constant 0 : i32
    %c0_i32_1 = arith.constant 0 : i32
    return %c0_i32, %c0_i32_0 : i32, i32
  }
  func.func @transform_4(%arg0: i32) -> (i32, i32) {
    %c0_i32 = arith.constant 0 : i32
    %c0_i32_0 = arith.constant 0 : i32
    %c0_i32_1 = arith.constant 0 : i32
    return %c0_i32, %c0_i32_0 : i32, i32
  }
  func.func @transform_5(%arg0: i32) -> (i32, i32) {
    %c0_i32 = arith.constant 0 : i32
    %c0_i32_0 = arith.constant 0 : i32
    %c0_i32_1 = arith.constant 0 : i32
    return %c0_i32, %c0_i32_0 : i32, i32
  }
  func.func @transform_6(%arg0: i32) -> (i32, i32) {
    %c0_i32 = arith.constant 0 : i32
    %c0_i32_0 = arith.constant 0 : i32
    %c0_i32_1 = arith.constant 0 : i32
    return %c0_i32, %c0_i32_0 : i32, i32
  }
  func.func @transform_7(%arg0: i32) -> (i32, i32) {
    %c0_i32 = arith.constant 0 : i32
    %c0_i32_0 = arith.constant 0 : i32
    %c0_i32_1 = arith.constant 0 : i32
    return %c0_i32, %c0_i32_0 : i32, i32
  }
  func.func @transform_8(%arg0: i32) -> (i32, i32) {
    %c0_i32 = arith.constant 0 : i32
    %c0_i32_0 = arith.constant 0 : i32
    %c0_i32_1 = arith.constant 0 : i32
    return %c0_i32, %c0_i32_0 : i32, i32
  }
  func.func @transform_9(%arg0: i32) -> (i32, i32) {
    %c0_i32 = arith.constant 0 : i32
    %c0_i32_0 = arith.constant 0 : i32
    %c0_i32_1 = arith.constant 0 : i32
    return %c0_i32, %c0_i32_0 : i32, i32
  }
  func.func @transform_10(%arg0: i32) -> (i32, i32) {
    %c0_i32 = arith.constant 0 : i32
    %c0_i32_0 = arith.constant 0 : i32
    %c0_i32_1 = arith.constant 0 : i32
    return %c0_i32, %c0_i32_0 : i32, i32
  }
  func.func @transform_11(%arg0: i32) -> (i32, i32) {
    %c0_i32 = arith.constant 0 : i32
    %c0_i32_0 = arith.constant 0 : i32
    %c0_i32_1 = arith.constant 0 : i32
    return %c0_i32, %c0_i32_0 : i32, i32
  }
  func.func @transform_12(%arg0: i32) -> (i32, i32) {
    %c0_i32 = arith.constant 0 : i32
    %c0_i32_0 = arith.constant 0 : i32
    %c0_i32_1 = arith.constant 0 : i32
    return %c0_i32, %c0_i32_0 : i32, i32
  }
  func.func @transform_13(%arg0: i32) -> (i32, i32) {
    %c0_i32 = arith.constant 0 : i32
    %c0_i32_0 = arith.constant 0 : i32
    %c0_i32_1 = arith.constant 0 : i32
    return %c0_i32, %c0_i32_0 : i32, i32
  }
  func.func @transform_14(%arg0: i32) -> (i32, i32) {
    %c0_i32 = arith.constant 0 : i32
    %c0_i32_0 = arith.constant 0 : i32
    %c0_i32_1 = arith.constant 0 : i32
    return %c0_i32, %c0_i32_0 : i32, i32
  }
  func.func @transform_15(%arg0: i32) -> (i32, i32) {
    %c0_i32 = arith.constant 0 : i32
    %c0_i32_0 = arith.constant 0 : i32
    %c0_i32_1 = arith.constant 0 : i32
    return %c0_i32, %c0_i32_0 : i32, i32
  }
  func.func @transform_16(%arg0: i32) -> (i32, i32) {
    %c0_i32 = arith.constant 0 : i32
    %c0_i32_0 = arith.constant 0 : i32
    %c0_i32_1 = arith.constant 0 : i32
    return %c0_i32, %c0_i32_0 : i32, i32
  }
  func.func @transform_17(%arg0: i32) -> (i32, i32) {
    %c0_i32 = arith.constant 0 : i32
    %c0_i32_0 = arith.constant 0 : i32
    %c0_i32_1 = arith.constant 0 : i32
    return %c0_i32, %c0_i32_0 : i32, i32
  }
  func.func @transform_18(%arg0: i32) -> (i32, i32) {
    %c0_i32 = arith.constant 0 : i32
    %c0_i32_0 = arith.constant 0 : i32
    %c0_i32_1 = arith.constant 0 : i32
    return %c0_i32, %c0_i32_0 : i32, i32
  }
  func.func @transform_19(%arg0: i32) -> (i32, i32) {
    %c0_i32 = arith.constant 0 : i32
    %c0_i32_0 = arith.constant 0 : i32
    %c0_i32_1 = arith.constant 0 : i32
    return %c0_i32, %c0_i32_0 : i32, i32
  }
  func.func @transform_20(%arg0: i32) -> (i32, i32) {
    %c0_i32 = arith.constant 0 : i32
    %c0_i32_0 = arith.constant 0 : i32
    %c0_i32_1 = arith.constant 0 : i32
    return %c0_i32, %c0_i32_0 : i32, i32
  }
  func.func @transform_21(%arg0: i32) -> (i32, i32) {
    %c0_i32 = arith.constant 0 : i32
    %c0_i32_0 = arith.constant 0 : i32
    %c0_i32_1 = arith.constant 0 : i32
    return %c0_i32, %c0_i32_0 : i32, i32
  }
  func.func @transform_22(%arg0: i32) -> (i32, i32) {
    %c0_i32 = arith.constant 0 : i32
    %c0_i32_0 = arith.constant 0 : i32
    %c0_i32_1 = arith.constant 0 : i32
    return %c0_i32, %c0_i32_0 : i32, i32
  }
  func.func @transform_23(%arg0: i32) -> (i32, i32) {
    %c0_i32 = arith.constant 0 : i32
    %c0_i32_0 = arith.constant 0 : i32
    %c0_i32_1 = arith.constant 0 : i32
    return %c0_i32, %c0_i32_0 : i32, i32
  }
  func.func @transform_24(%arg0: i32) -> (i32, i32) {
    %c0_i32 = arith.constant 0 : i32
    %c0_i32_0 = arith.constant 0 : i32
    %c0_i32_1 = arith.constant 0 : i32
    return %c0_i32, %c0_i32_0 : i32, i32
  }
  func.func @transform_25(%arg0: i32) -> (i32, i32) {
    %c0_i32 = arith.constant 0 : i32
    %c0_i32_0 = arith.constant 0 : i32
    %c0_i32_1 = arith.constant 0 : i32
    return %c0_i32, %c0_i32_0 : i32, i32
  }
  func.func @transform_26(%arg0: i32) -> (i32, i32) {
    %c0_i32 = arith.constant 0 : i32
    %c0_i32_0 = arith.constant 0 : i32
    %c0_i32_1 = arith.constant 0 : i32
    return %c0_i32, %c0_i32_0 : i32, i32
  }
  func.func @transform_27(%arg0: i32) -> (i32, i32) {
    %c0_i32 = arith.constant 0 : i32
    %c0_i32_0 = arith.constant 0 : i32
    %c0_i32_1 = arith.constant 0 : i32
    return %c0_i32, %c0_i32_0 : i32, i32
  }
  func.func @transform_28(%arg0: i32) -> (i32, i32) {
    %c0_i32 = arith.constant 0 : i32
    %c0_i32_0 = arith.constant 0 : i32
    %c0_i32_1 = arith.constant 0 : i32
    return %c0_i32, %c0_i32_0 : i32, i32
  }
  func.func @transform_29(%arg0: i32) -> (i32, i32) {
    %c0_i32 = arith.constant 0 : i32
    %c0_i32_0 = arith.constant 0 : i32
    %c0_i32_1 = arith.constant 0 : i32
    return %c0_i32, %c0_i32_0 : i32, i32
  }
  func.func @transform_30(%arg0: i32) -> (i32, i32) {
    %c0_i32 = arith.constant 0 : i32
    %c0_i32_0 = arith.constant 0 : i32
    %c0_i32_1 = arith.constant 0 : i32
    return %c0_i32, %c0_i32_0 : i32, i32
  }
  func.func @transform_31(%arg0: i32) -> (i32, i32) {
    %c0_i32 = arith.constant 0 : i32
    %c0_i32_0 = arith.constant 0 : i32
    %c0_i32_1 = arith.constant 0 : i32
    return %c0_i32, %c0_i32_0 : i32, i32
  }
  func.func @transform_32(%arg0: i32) -> (i32, i32) {
    %c0_i32 = arith.constant 0 : i32
    %c0_i32_0 = arith.constant 0 : i32
    %c0_i32_1 = arith.constant 0 : i32
    return %c0_i32, %c0_i32_0 : i32, i32
  }
  func.func @transform_33(%arg0: i32) -> (i32, i32) {
    %c0_i32 = arith.constant 0 : i32
    %c0_i32_0 = arith.constant 0 : i32
    %c0_i32_1 = arith.constant 0 : i32
    return %c0_i32, %c0_i32_0 : i32, i32
  }
  func.func @transform_34(%arg0: i32) -> (i32, i32) {
    %c0_i32 = arith.constant 0 : i32
    %c0_i32_0 = arith.constant 0 : i32
    %c0_i32_1 = arith.constant 0 : i32
    return %c0_i32, %c0_i32_0 : i32, i32
  }
  func.func @transform_35(%arg0: i32) -> (i32, i32) {
    %c0_i32 = arith.constant 0 : i32
    %c0_i32_0 = arith.constant 0 : i32
    %c0_i32_1 = arith.constant 0 : i32
    return %c0_i32, %c0_i32_0 : i32, i32
  }
  func.func @transform_36(%arg0: i32) -> (i32, i32) {
    %c0_i32 = arith.constant 0 : i32
    %c0_i32_0 = arith.constant 0 : i32
    %c0_i32_1 = arith.constant 0 : i32
    return %c0_i32, %c0_i32_0 : i32, i32
  }
  func.func @transform_37(%arg0: i32) -> (i32, i32) {
    %c0_i32 = arith.constant 0 : i32
    %c0_i32_0 = arith.constant 0 : i32
    %c0_i32_1 = arith.constant 0 : i32
    return %c0_i32, %c0_i32_0 : i32, i32
  }
  func.func @transform_38(%arg0: i32) -> (i32, i32) {
    %c0_i32 = arith.constant 0 : i32
    %c0_i32_0 = arith.constant 0 : i32
    %c0_i32_1 = arith.constant 0 : i32
    return %c0_i32, %c0_i32_0 : i32, i32
  }
}

</mosaic_0001>

<bundles_post_ra>
// kernel: transformer_forward.1
= control target key start
LH: loop header
LB: loop body
LE: loop exit
PB: predicated region body
PF: predicated region fallthrough
CT: control target
= control target key end

     0   :  { %s8570_s6 = smov 1   ;;  %s8571_s10 = smov 2   ;;  %s10183_s0 = inlined_call_operand.smem [shape: u32[39], index: -1, kind: input, shape index: {}] }
   0x1   :  { %s8625_s5 = sld [smem:[%s10183_s0]]   ;;  %s8572_s14 = smov 3  }
   0x2   :  { %s8630_s9 = sld [smem:[%s10183_s0 + %s8570_s6]]   ;;  %s8573_s18 = smov 4  }
   0x3   :  { %s8635_s13 = sld [smem:[%s10183_s0 + %s8571_s10]]   ;;  %s8574_s22 = smov 5  }
   0x4   :  { %s8640_s17 = sld [smem:[%s10183_s0 + %s8572_s14]]   ;;  %s8575_s26 = smov 6  }
   0x5   :  { %s8645_s21 = sld [smem:[%s10183_s0 + %s8573_s18]]   ;;  %s8576_s30 = smov 7  }
   0x6   :  { %s8650_s25 = sld [smem:[%s10183_s0 + %s8574_s22]]   ;;  %s8577_s4 = smov 8  }
   0x7   :  { %s8655_s29 = sld [smem:[%s10183_s0 + %s8575_s26]]   ;;  %s8578_s10 = smov 9  }
   0x8   :  { %s8660_s3 = sld [smem:[%s10183_s0 + %s8576_s30]]   ;;  %s8579_s15 = smov 10  }
   0x9   :  { %s8665_s8 = sld [smem:[%s10183_s0 + %s8577_s4]]   ;;  %s8580_s20 = smov 11  }
   0xa   :  { %s8670_s14 = sld [smem:[%s10183_s0 + %s8578_s10]]   ;;  %s8581_s26 = smov 12  }
   0xb   :  { %10194 = sst [smem:[#allocation6_spill]] %s8645_s21  ;;  %s8582_s1 = smov 13  }
   0xc   :  { %10195 = sst [smem:[#allocation7_spill]] %s8650_s25  ;;  %s8583_s7 = smov 14  }
   0xd   :  { %s8675_s19 = sld [smem:[%s10183_s0 + %s8579_s15]]   ;;  %s8584_s15 = smov 15  }
   0xe   :  { %s8680_s24 = sld [smem:[%s10183_s0 + %s8580_s20]]   ;;  %s8585_s22 = smov 16  }
   0xf   :  { %s8685_s30 = sld [smem:[%s10183_s0 + %s8581_s26]]   ;;  %s8586_s28 = smov 17  }
  0x10   :  { %s8690_s6 = sld [smem:[%s10183_s0 + %s8582_s1]]  }
  0x11   :  { %s8695_s12 = sld [smem:[%s10183_s0 + %s8583_s7]]   ;;  %s8587_s7 = smov 18  }
  0x12   :  { %s8700_s20 = sld [smem:[%s10183_s0 + %s8584_s15]]   ;;  %s8588_s15 = smov 19  }
  0x13   :  { %s8705_s27 = sld [smem:[%s10183_s0 + %s8585_s22]]   ;;  %s8589_s22 = smov 20  }
  0x14   :  { %s8710_s4 = sld [smem:[%s10183_s0 + %s8586_s28]]   ;;  %s8590_s28 = smov 21  }
  0x15   :  { %s8715_s25 = sld [smem:[%s10183_s0 + %s8587_s7]]   ;;  %s8591_s7 = smov 22  }
  0x16   :  { %s8720_s21 = sld [smem:[%s10183_s0 + %s8588_s15]]   ;;  %s8592_s15 = smov 23  }
  0x18   :  { %10196 = sst [smem:[#allocation8_spill]] %s8700_s20 }
  0x19   :  { %s8725_s20 = sld [smem:[%s10183_s0 + %s8589_s22]]   ;;  %s8593_s22 = smov 24  }
  0x1a   :  { %10197 = sst [smem:[#allocation9_spill]] %s8710_s4 }
  0x1b   :  { %10198 = sst [smem:[#allocation10_spill]] %s8715_s25 }
  0x1c   :  { %10199 = sst [smem:[#allocation11_spill]] %s8720_s21 }
  0x1d   :  { %s8730_s4 = sld [smem:[%s10183_s0 + %s8590_s28]]   ;;  %s8594_s28 = smov 25  }
  0x1e   :  { %s8735_s25 = sld [smem:[%s10183_s0 + %s8591_s7]]   ;;  %s8595_s7 = smov 26  }
  0x1f   :  { %10200 = sst [smem:[#allocation12_spill]] %s8725_s20 }
  0x20   :  { %s8740_s21 = sld [smem:[%s10183_s0 + %s8592_s15]]   ;;  %s8596_s15 = smov 27  }
  0x21   :  { %s8745_s20 = sld [smem:[%s10183_s0 + %s8593_s22]]   ;;  %s8597_s22 = smov 28  }
  0x23   :  { %10201 = sst [smem:[#allocation13_spill]] %s8730_s4 }
  0x24   :  { %10202 = sst [smem:[#allocation14_spill]] %s8735_s25 }
  0x25   :  { %s8750_s4 = sld [smem:[%s10183_s0 + %s8594_s28]]   ;;  %s8598_s28 = smov 29  }
  0x26   :  { %10203 = sst [smem:[#allocation15_spill]] %s8740_s21 }
  0x27   :  { %10204 = sst [smem:[#allocation16_spill]] %s8745_s20 }
  0x28   :  { %s8755_s25 = sld [smem:[%s10183_s0 + %s8595_s7]]   ;;  %s8599_s7 = smov 30  }
  0x29   :  { %s8760_s21 = sld [smem:[%s10183_s0 + %s8596_s15]]   ;;  %s8600_s15 = smov 31  }
  0x2a   :  { %s8765_s20 = sld [smem:[%s10183_s0 + %s8597_s22]]   ;;  %s8601_s22 = smov 32  }
  0x2b   :  { %10205 = sst [smem:[#allocation17_spill]] %s8750_s4 }
  0x2c   :  { %s8770_s4 = sld [smem:[%s10183_s0 + %s8598_s28]]   ;;  %s8602_s28 = smov 33  }
  0x2e   :  { %10206 = sst [smem:[#allocation18_spill]] %s8755_s25 }
  0x2f   :  { %10207 = sst [smem:[#allocation19_spill]] %s8760_s21 }
  0x30   :  { %10208 = sst [smem:[#allocation20_spill]] %s8765_s20 }
  0x31   :  { %s8775_s25 = sld [smem:[%s10183_s0 + %s8599_s7]]   ;;  %s8603_s7 = smov 34  }
  0x32   :  { %10209 = sst [smem:[#allocation21_spill]] %s8770_s4 }
  0x33   :  { %s8780_s21 = sld [smem:[%s10183_s0 + %s8600_s15]]   ;;  %s8604_s15 = smov 35  }
  0x34   :  { %s8785_s20 = sld [smem:[%s10183_s0 + %s8601_s22]]   ;;  %s8605_s22 = smov 36  }
  0x35   :  { %s8790_s4 = sld [smem:[%s10183_s0 + %s8602_s28]]   ;;  %s8606_s28 = smov 37  }
  0x37   :  { %10210 = sst [smem:[#allocation22_spill]] %s8775_s25 }
  0x38   :  { %s8795_s25 = sld [smem:[%s10183_s0 + %s8603_s7]]   ;;  %s8607_s7 = smov 38  }
  0x39   :  { %10211 = sst [smem:[#allocation23_spill]] %s8780_s21 }
  0x3a   :  { %10212 = sst [smem:[#allocation24_spill]] %s8785_s20 }
  0x3b   :  { %10213 = sst [smem:[#allocation25_spill]] %s8790_s4 }
  0x3c   :  { %s8800_s21 = sld [smem:[%s10183_s0 + %s8604_s15]]  }
  0x3d   :  { %s8805_s20 = sld [smem:[%s10183_s0 + %s8605_s22]]  }
  0x3e   :  { %10214 = sst [smem:[#allocation26_spill]] %s8795_s25 }
  0x3f   :  { %s8810_s4 = sld [smem:[%s10183_s0 + %s8606_s28]]  }
  0x40   :  { %s8815_s25 = sld [smem:[%s10183_s0 + %s8607_s7]]  }
  0x41   :  { %v162_v0 = vld [vmem:[%s8635_s13 + $0x8] sm:$0xff]  ;;  %v161_v1 = vld [vmem:[%s8635_s13] sm:$0xff]  ;;  %vm170_vm0 = vcmask 130048   ;;  %v259_v3 = vld [vmem:[%s8655_s29 + $0x18] sm:$0xff] }
  0x42   :  { %v159_v2 = vld [vmem:[%s8625_s5] sm:$0xff]  ;;  %8157 = vmatprep.subr.mxu0 %v162_v0 }
  0x43   :  { %8161 = vmatprep.mubr.msk.f32.mxu0 %vm170_vm0, %v159_v2 }
  0x44   :  { %82 = vsyncpa [#allocation4], 0  ;;  %8158 = vmatpush3.msra.mxu0 %v162_v0  ;;  %v160_v4 = vld [vmem:[%s8625_s5 + $0x8] sm:$0xff]  ;;  %8164 = vmatprep.subr.mxu1 %v259_v3  ;;  %v352_v5 = vld [vmem:[%s8665_s8 + $0x18] sm:$0xff]  ;;  %vm267_vm1 = vcmask 261120   ;;  %v8608_v25 = vmov 0.0  }
  0x45   :  { %8159 = vmatprep.subr.mxu0 %v161_v1  ;;  %8165 = vmatpush3.msra.mxu1 %v259_v3  ;;  %v258_v6 = vld [vmem:[%s8655_s29 + $0x10] sm:$0xff]  ;;  %v257_v8 = vld [vmem:[%s8655_s29 + $0x8] sm:$0xff]  ;;  %v256_v10 = vld [vmem:[%s8655_s29] sm:$0xff]  ;;  %vm8609_vm2 = vmmov 0   ;;  %vm521_vm3 = vcmask 64512   ;;  %s8610_s0 = smov 112  }
  0x46   :  { %8160 = vmatpush3.msra.mxu0 %v161_v1  ;;  %8166 = vmatprep.subr.mxu1 %v258_v6  ;;  %v351_v7 = vld [vmem:[%s8665_s8 + $0x10] sm:$0xff]  ;;  %v350_v9 = vld [vmem:[%s8665_s8 + $0x8] sm:$0xff]  ;;  %v349_v11 = vld [vmem:[%s8665_s8] sm:$0xff]  ;;  %s8611_s5 = smov 120   ;;  %s8613_s13 = smov 8   ;;  %vm855_vm4 = vcmask 130112  }
  0x47   :  { %8162 = vmatmul.mubr.msk.f32.vlgmr.msra.gmra.mxu0 %vm170_vm0, %v160_v4  ;;  %8175 = vmatprep.subr.mxu0 %v352_v5  ;;  %v438_v12 = vld [vmem:[%s8675_s19 + $0x18] sm:$0xff]  ;;  %v7309_v13 = vld [vmem:[%s8640_s17] ss:$0 sm:$0xff]  ;;  %v253_v18 = vld [vmem:[%s8630_s9 + $0x8] sm:$0xff]  ;;  %s8614_s17 = smov 16   ;;  %s8615_s29 = smov 24  }
  0x48   :  { %8176 = vmatpush3.msra.mxu0 %v352_v5  ;;  %8167 = vmatpush3.msra.mxu1 %v258_v6  ;;  %v252_v17 = vld [vmem:[%s8630_s9] sm:$0xff]  ;;  %v437_v22 = vld [vmem:[%s8675_s19 + $0x10] sm:$0xff]  ;;  %v436_v23 = vld [vmem:[%s8675_s19 + $0x8] sm:$0xff]  ;;  %s8612_s9 = smov 104   ;;  %vm1027_vm5 = vcmask 195712   ;;  %vm1199_vm6 = vcmask 261312  }
  0x49   :  { %8177 = vmatprep.subr.mxu0 %v351_v7  ;;  %8168 = vmatprep.subr.mxu1 %v257_v8  ;;  %v435_v24 = vld [vmem:[%s8675_s19] sm:$0xff]  ;;  %s10216_s8 = sld [smem:[#allocation10_spill]]  ;;  %s8616_s11 = smov [#allocation3]  }
  0x4a   :  { %8178 = vmatpush3.msra.mxu0 %v351_v7  ;;  %8169 = vmatpush3.msra.mxu1 %v257_v8  ;;  %v7315_v28 = vld [vmem:[%s8670_s14] ss:$0 sm:$0xff]  ;;  %s10217_s14 = sld [smem:[#allocation9_spill]] }
  0x4b   :  { %8179 = vmatprep.subr.mxu0 %v350_v9  ;;  %8170 = vmatprep.subr.mxu1 %v256_v10  ;;  %v7312_v32 = vld [vmem:[%s8660_s3] ss:$0 sm:$0xff]  ;;  %s10215_s3 = sld [smem:[#allocation8_spill]] }
  0x4c   :  { %8180 = vmatpush3.msra.mxu0 %v350_v9  ;;  %8171 = vmatpush3.msra.mxu1 %v256_v10  ;;  %v7318_v33 = vld [vmem:[%s8680_s24] ss:$0 sm:$0xff]  ;;  %s10218_s19 = sld [smem:[#allocation11_spill]] }
  0x4d   :  { %8181 = vmatprep.subr.mxu0 %v349_v11  ;;  %8186 = vmatprep.subr.mxu1 %v438_v12  ;;  %s10219_s24 = sld [smem:[#allocation14_spill]] }
  0x4e   :  { %8182 = vmatpush3.msra.mxu0 %v349_v11  ;;  %s10224_s15 = sld [smem:[#allocation15_spill]] }
  0x4f   :  { %8197 = vmatprep.subr.mxu0 %v8608_v25  ;;  %s10225_s16 = sld [smem:[#allocation17_spill]] }
  0x50   :  { %s10226_s18 = sld [smem:[#allocation19_spill]] }
  0x51   :  { %s10227_s22 = sld [smem:[#allocation20_spill]] }
  0x52   :  { %s10228_s23 = sld [smem:[#allocation21_spill]] }
  0x53   :  { %s10229_s26 = sld [smem:[#allocation24_spill]] }
  0x54   :  { %s10230_s28 = sld [smem:[#allocation22_spill]] }
  0x55   :  { %s10231_s1 = sld [smem:[#allocation23_spill]] }
  0x56   :  { %s10232_s2 = sld [smem:[#allocation26_spill]] }
  0x57   :  { %s10233_s7 = sld [smem:[#allocation25_spill]] }
  0x58   :  { %s10235_s10 = sld [smem:[#allocation7_spill]] }
 0x107   :  { %v8163_v14 = vpop.f32.mrf.mxu0 }
 0x108   :  { %v249_v15 = vadd.f32 %v8163_v14, %v7309_v13 }
 0x109   :  { %v243_v16 = vpop.f32.mrf.mxu0 }
 0x10a   :  { %v244_v19 = vadd.f32 %v7309_v13, %v243_v16  ;;  %v8835_v21 = vadd.f32 %v253_v18, %v249_v15 }
 0x10c   :  { %v8833_v20 = vadd.f32 %v252_v17, %v244_v19 }
 0x10e   :  { %8172 = vmatprep.mubr.msk.f32.mxu1 %vm267_vm1, %v8833_v20  ;;  %8183 = vmatprep.mubr.msk.f32.mxu0 %vm267_vm1, %v8833_v20 }
 0x10f   :  { %8173 = vmatmul.mubr.msk.f32.vlgmr.msra.gmra.mxu1 %vm267_vm1, %v8835_v21  ;;  %8184 = vmatmul.mubr.msk.f32.vlgmr.msra.gmra.mxu0 %vm267_vm1, %v8835_v21 }
 0x110   :  { %8187 = vmatpush3.msra.mxu1 %v438_v12  ;;  %8194 = vmatprep.mubr.msk.f32.mxu1 %vm267_vm1, %v8833_v20 }
 0x111   :  { %8188 = vmatprep.subr.mxu1 %v437_v22  ;;  %8199 = vmatprep.mubr.msk.f32.mxu0 %vm8609_vm2, %v8608_v25 }
 0x112   :  { %8189 = vmatpush3.msra.mxu1 %v437_v22 }
 0x113   :  { %8190 = vmatprep.subr.mxu1 %v436_v23 }
 0x114   :  { %8191 = vmatpush3.msra.mxu1 %v436_v23 }
 0x115   :  { %8192 = vmatprep.subr.mxu1 %v435_v24 }
 0x116   :  { %8193 = vmatpush3.msra.mxu1 %v435_v24 }
 0x117   :  { %8195 = vmatmul.mubr.msk.f32.vlgmr.msra.gmra.mxu1 %vm267_vm1, %v8835_v21  ;;  %8207 = vmatprep.subr.mxu1 %v8608_v25 }
 0x118   :  { %8209 = vmatprep.mubr.msk.f32.mxu1 %vm8609_vm2, %v8608_v25 }
 0x1cf   :  { %v8174_v26 = vpop.f32.mrf.mxu1  ;;  %v8185_v27 = vpop.f32.mrf.mxu0 }
 0x1d0   :  { %v346_v39 = vadd.f32 %v8174_v26, %v7312_v32  ;;  %v432_v40 = vadd.f32 %v8185_v27, %v7315_v28 }
 0x1d1   :  { %v426_v29 = vpop.f32.mrf.mxu0  ;;  %v340_v31 = vpop.f32.mrf.mxu1 }
 0x1d2   :  { %v427_v30 = vadd.f32 %v7315_v28, %v426_v29  ;;  %v341_v34 = vadd.f32 %v7312_v32, %v340_v31 }
 0x1d4   :  { %859 = vrot.lane.b32.xlu1 %v427_v30, %s8610_s0  ;;  %686 = vrot.lane.b32.xlu0 %v427_v30, %s8611_s5 }
 0x1d5   :  { %8198 = vmatpush3.xpose.msk.msra.mxu0 %vm521_vm3, %v427_v30 }
 0x1d6   :  { %8202 = vmatprep.subr.mxu0 %v8608_v25 }
 0x1d7   :  { %v8196_v35 = vpop.f32.mrf.mxu1 }
 0x1d8   :  { %v8865_v36 = vadd.f32 %v8196_v35, %v7318_v33  ;;  %8200 = vmatmul.mubr.msk.f32.vlgmr.msra.gmra.mxu0 %vm521_vm3, %v341_v34  ;;  %857 = vrot.lane.b32.xlu1 %v341_v34, %s8610_s0 }
 0x1d9   :  { %v512_v37 = vpop.f32.mrf.mxu1  ;;  %684 = vrot.lane.b32.xlu0 %v341_v34, %s8611_s5  ;;  %8204 = vmatprep.mubr.msk.f32.mxu0 %vm8609_vm2, %v8608_v25 }
 0x1da   :  { %v8872_v38 = vadd.f32 %v7318_v33, %v512_v37 }
 0x1dc   :  { %8203 = vmatpush3.msra.mxu0 %v8872_v38  ;;  %1029 = vrot.lane.b32.xlu1 %v341_v34, %s8612_s9 }
 0x1dd   :  { %1031 = vrot.lane.b32.xlu0 %v427_v30, %s8612_s9  ;;  %8212 = vmatprep.subr.mxu0 %v8608_v25 }
 0x1e0   :  { %1363 = vrot.lane.b32.xlu1 %v346_v39, %s8611_s5 }
 0x1e1   :  { %1365 = vrot.lane.b32.xlu0 %v432_v40, %s8611_s5 }
 0x1e4   :  { %1535 = vrot.lane.b32.xlu1 %v346_v39, %s8610_s0 }
 0x1e5   :  { %1537 = vrot.lane.b32.xlu0 %v432_v40, %s8610_s0 }
 0x1e8   :  { %1706 = vrot.lane.b32.xlu1 %v346_v39, %s8612_s9 }
 0x1e9   :  { %1708 = vrot.lane.b32.xlu0 %v432_v40, %s8612_s9 }
 0x246   :  { %v860_v41 = vpop.permute.xlu1 %859  ;;  %v687_v42 = vpop.permute.xlu0 %686 }
 0x247   :  { %8208 = vmatpush3.xpose.msk.msra.mxu1 %vm521_vm3, %v687_v42 }
 0x248   :  { %8217 = vmatprep.subr.mxu1 %v8608_v25 }
 0x24a   :  { %v858_v43 = vpop.permute.xlu1 %857 }
 0x24b   :  { %v685_v44 = vpop.permute.xlu0 %684 }
 0x24c   :  { %8210 = vmatmul.mubr.msk.f32.vlgmr.msra.gmra.mxu1 %vm521_vm3, %v685_v44 }
 0x24d   :  { %8218 = vmatpush3.xpose.msk.msra.mxu1 %vm521_vm3, %v860_v41  ;;  %8219 = vmatprep.mubr.msk.f32.mxu1 %vm8609_vm2, %v8608_v25 }
 0x24e   :  { %8227 = vmatprep.subr.mxu1 %v8608_v25  ;;  %v1030_v46 = vpop.permute.xlu1 %1029 }
 0x24f   :  { %v1032_v45 = vpop.permute.xlu0 %1031 }
 0x250   :  { %8220 = vmatmul.mubr.msk.f32.vlgmr.msra.gmra.mxu1 %vm521_vm3, %v858_v43 }
 0x251   :  { %8228 = vmatpush3.xpose.msk.msra.mxu1 %vm521_vm3, %v1032_v45  ;;  %8229 = vmatprep.mubr.msk.f32.mxu1 %vm8609_vm2, %v8608_v25 }
 0x252   :  { %8237 = vmatprep.subr.mxu1 %v8608_v25  ;;  %v1364_v48 = vpop.permute.xlu1 %1363 }
 0x253   :  { %v1366_v47 = vpop.permute.xlu0 %1365 }
 0x254   :  { %8230 = vmatmul.mubr.msk.f32.vlgmr.msra.gmra.mxu1 %vm521_vm3, %v1030_v46 }
 0x255   :  { %8238 = vmatpush3.xpose.msk.msra.mxu1 %vm521_vm3, %v432_v40  ;;  %8239 = vmatprep.mubr.msk.f32.mxu1 %vm8609_vm2, %v8608_v25 }
 0x256   :  { %8247 = vmatprep.subr.mxu1 %v8608_v25  ;;  %v1536_v50 = vpop.permute.xlu1 %1535 }
 0x257   :  { %v1538_v49 = vpop.permute.xlu0 %1537 }
 0x258   :  { %8240 = vmatmul.mubr.msk.f32.vlgmr.msra.gmra.mxu1 %vm521_vm3, %v346_v39 }
 0x259   :  { %8248 = vmatpush3.xpose.msk.msra.mxu1 %vm521_vm3, %v1366_v47  ;;  %8249 = vmatprep.mubr.msk.f32.mxu1 %vm8609_vm2, %v8608_v25 }
 0x25a   :  { %8257 = vmatprep.subr.mxu1 %v8608_v25  ;;  %v1707_v52 = vpop.permute.xlu1 %1706 }
 0x25b   :  { %v1709_v51 = vpop.permute.xlu0 %1708 }
 0x25c   :  { %8250 = vmatmul.mubr.msk.f32.vlgmr.msra.gmra.mxu1 %vm521_vm3, %v1364_v48 }
 0x25d   :  { %8258 = vmatpush3.xpose.msk.msra.mxu1 %vm521_vm3, %v1538_v49  ;;  %8259 = vmatprep.mubr.msk.f32.mxu1 %vm8609_vm2, %v8608_v25 }
 0x25e   :  { %8267 = vmatprep.subr.mxu1 %v8608_v25 }
 0x260   :  { %8260 = vmatmul.mubr.msk.f32.vlgmr.msra.gmra.mxu1 %vm521_vm3, %v1536_v50 }
 0x261   :  { %8268 = vmatpush3.xpose.msk.msra.mxu1 %vm521_vm3, %v1709_v51  ;;  %8269 = vmatprep.mubr.msk.f32.mxu1 %vm8609_vm2, %v8608_v25 }
 0x264   :  { %8270 = vmatmul.mubr.msk.f32.vlgmr.msra.gmra.mxu1 %vm521_vm3, %v1707_v52 }
 0x298   :  { %v594_v53 = vpop.f32.mrf.mxu0 }
 0x299   :  { %v598_v54 = vmul.f32 0.35355338, %v594_v53 }
 0x29a   :  { %v8201_v55 = vpop.f32.mrf.mxu0 }
 0x29b   :  { %v599_v56 = vsel %vm521_vm3, %v598_v54, -inf }
 0x29c   :  { %600 = vmax.xlane.f32.xlu0 %v599_v56 }
 0x30c   :  { %v758_v57 = vpop.f32.mrf.mxu1 }
 0x30d   :  { %v762_v58 = vmul.f32 0.35355338, %v758_v57 }
 0x30e   :  { %v8211_v59 = vpop.f32.mrf.mxu1 }
 0x30f   :  { %v763_v60 = vsel %vm521_vm3, %v762_v58, -inf }
 0x310   :  { %764 = vmax.xlane.f32.xlu1 %v763_v60  ;;  %v931_v61 = vpop.f32.mrf.mxu1 }
 0x311   :  { %v935_v62 = vmul.f32 0.35355338, %v931_v61 }
 0x312   :  { %v8221_v63 = vpop.f32.mrf.mxu1 }
 0x313   :  { %v936_v0 = vsel %vm521_vm3, %v935_v62, -inf }
 0x314   :  { %v1103_v1 = vpop.f32.mrf.mxu1  ;;  %937 = vmax.xlane.f32.xlu0 %v936_v0 }
 0x315   :  { %v1107_v2 = vmul.f32 0.35355338, %v1103_v1 }
 0x316   :  { %v8231_v3 = vpop.f32.mrf.mxu1 }
 0x317   :  { %v1108_v4 = vsel %vm521_vm3, %v1107_v2, -inf }
 0x318   :  { %v1273_v5 = vpop.f32.mrf.mxu1  ;;  %1109 = vmax.xlane.f32.xlu0 %v1108_v4 }
 0x319   :  { %v1277_v6 = vmul.f32 0.35355338, %v1273_v5 }
 0x31a   :  { %v8241_v7 = vpop.f32.mrf.mxu1 }
 0x31b   :  { %v1278_v8 = vsel %vm521_vm3, %v1277_v6, -inf }
 0x31c   :  { %1279 = vmax.xlane.f32.xlu1 %v1278_v8  ;;  %v1437_v9 = vpop.f32.mrf.mxu1 }
 0x31d   :  { %v1441_v10 = vmul.f32 0.35355338, %v1437_v9 }
 0x31e   :  { %v8251_v11 = vpop.f32.mrf.mxu1 }
 0x31f   :  { %v1442_v12 = vsel %vm521_vm3, %v1441_v10, -inf }
 0x320   :  { %v1609_v13 = vpop.f32.mrf.mxu1  ;;  %1443 = vmax.xlane.f32.xlu0 %v1442_v12 }
 0x321   :  { %v1613_v14 = vmul.f32 0.35355338, %v1609_v13 }
 0x322   :  { %v8261_v15 = vpop.f32.mrf.mxu1 }
 0x323   :  { %v1614_v16 = vsel %vm521_vm3, %v1613_v14, -inf }
 0x324   :  { %1615 = vmax.xlane.f32.xlu1 %v1614_v16  ;;  %v1780_v17 = vpop.f32.mrf.mxu1 }
 0x325   :  { %v1784_v18 = vmul.f32 0.35355338, %v1780_v17  ;;  %v601_v23 = vpop.xlane.xlu0 %600 }
 0x326   :  { %v8271_v19 = vpop.f32.mrf.mxu1  ;;  %v602_v24 = vsub.f32 %v598_v54, %v601_v23 }
 0x327   :  { %v1785_v22 = vsel %vm521_vm3, %v1784_v18, -inf }
 0x328   :  { %1786 = vmax.xlane.f32.xlu0 %v1785_v22  ;;  %v603_v26 = vmul.f32 1.442695, %v602_v24 }
 0x32a   :  { %8470 = vpow2.f32 %v603_v26 }
 0x335   :  { %775 = vrot.lane.b32.xlu1 %v8872_v38, %s8611_s5 }
 0x337   :  { %v8471_v27 = vpop.eup %8470 }
 0x338   :  { %v605_v28 = vsel %vm521_vm3, %v8471_v27, 0.0 }
 0x359   :  { %606 = vadd.xlane.f32.xlu1 %v605_v28 }
 0x36a   :  { %1119 = vrot.lane.b32.xlu1 %v8872_v38, %s8612_s9 }
 0x399   :  { %v765_v29 = vpop.xlane.xlu1 %764 }
 0x39a   :  { %v766_v30 = vsub.f32 %v762_v58, %v765_v29 }
 0x39c   :  { %v767_v31 = vmul.f32 1.442695, %v766_v30 }
 0x39d   :  { %v938_v32 = vpop.xlane.xlu0 %937 }
 0x39e   :  { %8472 = vpow2.f32 %v767_v31  ;;  %v939_v33 = vsub.f32 %v935_v62, %v938_v32 }
 0x3a0   :  { %v940_v34 = vmul.f32 1.442695, %v939_v33 }
 0x3a1   :  { %v1110_v41 = vpop.xlane.xlu0 %1109 }
 0x3a2   :  { %8474 = vpow2.f32 %v940_v34  ;;  %v1111_v42 = vsub.f32 %v1107_v2, %v1110_v41 }
 0x3a4   :  { %v1112_v46 = vmul.f32 1.442695, %v1111_v42 }
 0x3a5   :  { %v1280_v43 = vpop.xlane.xlu1 %1279 }
 0x3a6   :  { %v1281_v45 = vsub.f32 %v1277_v6, %v1280_v43  ;;  %8476 = vpow2.f32 %v1112_v46 }
 0x3a8   :  { %v1282_v50 = vmul.f32 1.442695, %v1281_v45  ;;  %v1881_v45 = vld [vmem:[%s8685_s30 + $0x10] sm:$0xff] }
 0x3a9   :  { %v1444_v44 = vpop.xlane.xlu0 %1443 }
 0x3aa   :  { %v1445_v47 = vsub.f32 %v1441_v10, %v1444_v44  ;;  %8478 = vpow2.f32 %v1282_v50  ;;  %v1882_v44 = vld [vmem:[%s8685_s30 + $0x18] sm:$0xff] }
 0x3ab   :  { %v8473_v35 = vpop.eup %8472  ;;  %8277 = vmatprep.subr.mxu1 %v1882_v44 }
 0x3ac   :  { %v769_v37 = vsel %vm521_vm3, %v8473_v35, 0.0  ;;  %v1446_v52 = vmul.f32 1.442695, %v1445_v47  ;;  %8278 = vmatpush3.msra.mxu1 %v1882_v44  ;;  %v1880_v47 = vld [vmem:[%s8685_s30 + $0x8] sm:$0xff]  ;;  %v7348_v44 = vld [vmem:[%s8695_s12] ss:$0 sm:$0xff] }
 0x3ad   :  { %770 = vadd.xlane.f32.xlu0 %v769_v37  ;;  %v1616_v48 = vpop.xlane.xlu1 %1615  ;;  %8279 = vmatprep.subr.mxu1 %v1881_v45  ;;  %s10222_s12 = sld [smem:[#allocation12_spill]] }
 0x3ae   :  { %v1617_v51 = vsub.f32 %v1613_v14, %v1616_v48  ;;  %8480 = vpow2.f32 %v1446_v52  ;;  %8280 = vmatpush3.msra.mxu1 %v1881_v45 }
 0x3af   :  { %v8930_v39 = vpop.eup %8474  ;;  %8281 = vmatprep.subr.mxu1 %v1880_v47 }
 0x3b0   :  { %v942_v40 = vsel %vm521_vm3, %v8930_v39, 0.0  ;;  %v1618_v54 = vmul.f32 1.442695, %v1617_v51  ;;  %8282 = vmatpush3.msra.mxu1 %v1880_v47 }
 0x3b1   :  { %943 = vadd.xlane.f32.xlu1 %v942_v40  ;;  %v1787_v49 = vpop.xlane.xlu0 %1786  ;;  %v776_v56 = vpop.permute.xlu1 %775 }
 0x3b2   :  { %v1788_v53 = vsub.f32 %v1784_v18, %v1787_v49  ;;  %8482 = vpow2.f32 %v1618_v54  ;;  %v1879_v49 = vld [vmem:[%s8685_s30] sm:$0xff]  ;;  %s10220_s30 = sld [smem:[#allocation16_spill]] }
 0x3b3   :  { %8283 = vmatprep.subr.mxu1 %v1879_v49 }
 0x3b4   :  { %v1789_v55 = vmul.f32 1.442695, %v1788_v53  ;;  %8284 = vmatpush3.msra.mxu1 %v1879_v49 }
 0x3b6   :  { %8484 = vpow2.f32 %v1789_v55 }
 0x3c2   :  { %1454 = vrot.lane.b32.xlu1 %v8865_v36, %s8611_s5 }
 0x3c3   :  { %947 = vrot.lane.b32.xlu0 %v8872_v38, %s8610_s0  ;;  %v8477_v38 = vpop.eup %8476 }
 0x3c4   :  { %v8479_v57 = vpop.eup %8478  ;;  %v1114_v58 = vsel %vm521_vm3, %v8477_v38, 0.0 }
 0x3c5   :  { %v8939_v59 = vpop.eup %8480  ;;  %v1284_v62 = vsel %vm521_vm3, %v8479_v57, 0.0 }
 0x3c6   :  { %v8941_v61 = vpop.eup %8482  ;;  %v1448_v63 = vsel %vm521_vm3, %v8939_v59, 0.0 }
 0x3c7   :  { %v8946_v0 = vpop.eup %8484  ;;  %v1620_v1 = vsel %vm521_vm3, %v8941_v61, 0.0 }
 0x3c8   :  { %v1791_v2 = vsel %vm521_vm3, %v8946_v0, 0.0 }
 0x3e2   :  { %v607_v60 = vpop.xlane.xlu1 %606  ;;  %1115 = vadd.xlane.f32.xlu0 %v1114_v58 }
 0x3e3   :  { %8486 = vrcp.f32 %v607_v60 }
 0x3e6   :  { %1285 = vadd.xlane.f32.xlu1 %v1284_v62  ;;  %1449 = vadd.xlane.f32.xlu0 %v1448_v63  ;;  %v1120_v5 = vpop.permute.xlu1 %1119  ;;  %v7345_v62 = vld [vmem:[%s8690_s6] ss:$0 sm:$0xff]  ;;  %s10221_s6 = sld [smem:[#allocation18_spill]] }
 0x3ea   :  { %1621 = vadd.xlane.f32.xlu1 %v1620_v1  ;;  %1792 = vadd.xlane.f32.xlu0 %v1791_v2 }
 0x3f0   :  { %v8487_v3 = vpop.eup %8486 }
 0x3f1   :  { %v609_v4 = vmul.f32 %v8487_v3, %v8471_v27 }
 0x3f3   :  { %8205 = vmatmul.mubr.msk.f32.vlgmr.msra.gmra.mxu0 %vm521_vm3, %v609_v4 }
 0x3f4   :  { %8213 = vmatpush3.msra.mxu0 %v776_v56  ;;  %8214 = vmatprep.mubr.msk.f32.mxu0 %vm8609_vm2, %v8608_v25 }
 0x3f5   :  { %8222 = vmatprep.subr.mxu0 %v8608_v25 }
 0x3fb   :  { %1796 = vrot.lane.b32.xlu1 %v8865_v36, %s8612_s9 }
 0x400   :  { %1625 = vrot.lane.b32.xlu0 %v8865_v36, %s8610_s0 }
 0x436   :  { %v771_v6 = vpop.xlane.xlu0 %770 }
 0x437   :  { %8488 = vrcp.f32 %v771_v6 }
 0x43a   :  { %v944_v7 = vpop.xlane.xlu1 %943  ;;  %v948_v10 = vpop.permute.xlu0 %947 }
 0x43b   :  { %8490 = vrcp.f32 %v944_v7 }
 0x43e   :  { %v1455_v13 = vpop.permute.xlu1 %1454 }
 0x444   :  { %v8489_v8 = vpop.eup %8488 }
 0x445   :  { %v773_v9 = vmul.f32 %v8489_v8, %v8473_v35 }
 0x447   :  { %8215 = vmatmul.mubr.msk.f32.vlgmr.msra.gmra.mxu0 %vm521_vm3, %v773_v9 }
 0x448   :  { %v8491_v11 = vpop.eup %8490  ;;  %8223 = vmatpush3.msra.mxu0 %v948_v10  ;;  %8224 = vmatprep.mubr.msk.f32.mxu0 %vm8609_vm2, %v8608_v25 }
 0x449   :  { %8232 = vmatprep.subr.mxu0 %v8608_v25  ;;  %v946_v12 = vmul.f32 %v8491_v11, %v8930_v39 }
 0x44b   :  { %8225 = vmatmul.mubr.msk.f32.vlgmr.msra.gmra.mxu0 %vm521_vm3, %v946_v12 }
 0x44c   :  { %8233 = vmatpush3.msra.mxu0 %v1120_v5  ;;  %8234 = vmatprep.mubr.msk.f32.mxu0 %vm8609_vm2, %v8608_v25 }
 0x44d   :  { %8242 = vmatprep.subr.mxu0 %v8608_v25 }
 0x46b   :  { %v1116_v14 = vpop.xlane.xlu0 %1115 }
 0x46c   :  { %8492 = vrcp.f32 %v1116_v14 }
 0x46f   :  { %v1286_v15 = vpop.xlane.xlu1 %1285  ;;  %v1450_v16 = vpop.xlane.xlu0 %1449 }
 0x470   :  { %8494 = vrcp.f32 %v1286_v15  ;;  %v2067_v15 = vld [vmem:[%s8705_s27 + $0x188] sm:$0xff] }
 0x471   :  { %8496 = vrcp.f32 %v1450_v16  ;;  %v2069_v16 = vld [vmem:[%s8705_s27 + $0x198] sm:$0xff] }
 0x472   :  { %2273 = vmatprep.subr.mxu1 %v2069_v16  ;;  %v2079_v16 = vld [vmem:[%s8705_s27 + $0x1e8] sm:$0xff] }
 0x473   :  { %v1622_v17 = vpop.xlane.xlu1 %1621  ;;  %v1793_v18 = vpop.xlane.xlu0 %1792 }
 0x474   :  { %8498 = vrcp.f32 %v1622_v17  ;;  %v2066_v17 = vld [vmem:[%s8705_s27 + $0x180] sm:$0xff] }
 0x475   :  { %8500 = vrcp.f32 %v1793_v18  ;;  %v2068_v18 = vld [vmem:[%s8705_s27 + $0x190] sm:$0xff] }
 0x477   :  { %v1626_v29 = vpop.permute.xlu0 %1625  ;;  %v1797_v31 = vpop.permute.xlu1 %1796 }
 0x479   :  { %v8493_v19 = vpop.eup %8492 }
 0x47a   :  { %v1118_v22 = vmul.f32 %v8493_v19, %v8477_v38  ;;  %v2051_v19 = vld [vmem:[%s8705_s27 + $0x108] sm:$0xff] }
 0x47c   :  { %8235 = vmatmul.mubr.msk.f32.vlgmr.msra.gmra.mxu0 %vm521_vm3, %v1118_v22  ;;  %v2053_v22 = vld [vmem:[%s8705_s27 + $0x118] sm:$0xff] }
 0x47d   :  { %v8495_v23 = vpop.eup %8494  ;;  %8243 = vmatpush3.msra.mxu0 %v8865_v36  ;;  %8244 = vmatprep.mubr.msk.f32.mxu0 %vm8609_vm2, %v8608_v25 }
 0x47e   :  { %8252 = vmatprep.subr.mxu0 %v8608_v25  ;;  %v1288_v24 = vmul.f32 %v8495_v23, %v8479_v57  ;;  %v8497_v26 = vpop.eup %8496  ;;  %v2050_v23 = vld [vmem:[%s8705_s27 + $0x100] sm:$0xff] }
 0x47f   :  { %v1452_v27 = vmul.f32 %v8497_v26, %v8939_v59  ;;  %v2035_v26 = vld [vmem:[%s8705_s27 + $0x88] sm:$0xff] }
 0x480   :  { %8245 = vmatmul.mubr.msk.f32.vlgmr.msra.gmra.mxu0 %vm521_vm3, %v1288_v24  ;;  %v2052_v24 = vld [vmem:[%s8705_s27 + $0x110] sm:$0xff] }
 0x481   :  { %8253 = vmatpush3.msra.mxu0 %v1455_v13  ;;  %8254 = vmatprep.mubr.msk.f32.mxu0 %vm8609_vm2, %v8608_v25  ;;  %v8499_v28 = vpop.eup %8498 }
 0x482   :  { %8262 = vmatprep.subr.mxu0 %v8608_v25  ;;  %v1624_v36 = vmul.f32 %v8499_v28, %v8941_v61  ;;  %v8501_v30 = vpop.eup %8500  ;;  %v2034_v28 = vld [vmem:[%s8705_s27 + $0x80] sm:$0xff] }
 0x483   :  { %v1795_v32 = vmul.f32 %v8501_v30, %v8946_v0  ;;  %v2021_v30 = vld [vmem:[%s8705_s27 + $0x18] sm:$0xff] }
 0x484   :  { %8255 = vmatmul.mubr.msk.f32.vlgmr.msra.gmra.mxu0 %vm521_vm3, %v1452_v27  ;;  %v2037_v27 = vld [vmem:[%s8705_s27 + $0x98] sm:$0xff] }
 0x485   :  { %8263 = vmatpush3.msra.mxu0 %v1626_v29  ;;  %8264 = vmatprep.mubr.msk.f32.mxu0 %vm8609_vm2, %v8608_v25  ;;  %v2036_v29 = vld [vmem:[%s8705_s27 + $0x90] sm:$0xff] }
 0x486   :  { %8272 = vmatprep.subr.mxu0 %v8608_v25 }
 0x488   :  { %8265 = vmatmul.mubr.msk.f32.vlgmr.msra.gmra.mxu0 %vm521_vm3, %v1624_v36  ;;  %v2019_v36 = vld [vmem:[%s8705_s27 + $0x8] sm:$0xff] }
 0x489   :  { %8273 = vmatpush3.msra.mxu0 %v1797_v31  ;;  %8274 = vmatprep.mubr.msk.f32.mxu0 %vm8609_vm2, %v8608_v25  ;;  %v2018_v31 = vld [vmem:[%s8705_s27] sm:$0xff] }
 0x48a   :  { %2196 = vmatprep.subr.mxu0 %v2067_v15  ;;  %v2028_v15 = vld [vmem:[%s8705_s27 + $0x50] sm:$0xff] }
 0x48c   :  { %8275 = vmatmul.mubr.msk.f32.vlgmr.msra.gmra.mxu0 %vm521_vm3, %v1795_v32  ;;  %v2020_v32 = vld [vmem:[%s8705_s27 + $0x10] sm:$0xff] }
 0x48d   :  { %2236 = vmatprep.mubr.f32.mxu0 %v8608_v25  ;;  %2197 = vmatpush1.msra.mxu0 %v2066_v17  ;;  %v2081_v17 = vld [vmem:[%s8705_s27 + $0x1f8] sm:$0xff] }
 0x48e   :  { %2198 = vmatprep.subr.mxu0 %v2051_v19  ;;  %v2080_v19 = vld [vmem:[%s8705_s27 + $0x1f0] sm:$0xff] }
 0x48f   :  { %2199 = vmatpush1.msra.mxu0 %v2050_v23  ;;  %v2065_v23 = vld [vmem:[%s8705_s27 + $0x178] sm:$0xff] }
 0x490   :  { %2200 = vmatprep.subr.mxu0 %v2035_v26  ;;  %v2064_v26 = vld [vmem:[%s8705_s27 + $0x170] sm:$0xff] }
 0x491   :  { %2201 = vmatpush1.msra.mxu0 %v2034_v28  ;;  %v2049_v28 = vld [vmem:[%s8705_s27 + $0xf8] sm:$0xff] }
 0x492   :  { %2202 = vmatprep.subr.mxu0 %v2019_v36  ;;  %v2048_v36 = vld [vmem:[%s8705_s27 + $0xf0] sm:$0xff] }
 0x493   :  { %2203 = vmatpush1.msra.mxu0 %v2018_v31  ;;  %v2033_v31 = vld [vmem:[%s8705_s27 + $0x78] sm:$0xff] }
 0x4b3   :  { %v679_v33 = vpop.f32.mrf.mxu0 }
 0x4b4   :  { %683 = vst.msk [vmem:[#allocation2] sm:$0xff] %vm521_vm3, %v679_v33  ;;  %v2071_v33 = vld [vmem:[%s8705_s27 + $0x1a8] sm:$0xff] }
 0x4b5   :  { %v8206_v34 = vpop.f32.mrf.mxu0  ;;  %2350 = vmatprep.subr.mxu0 %v2071_v33  ;;  %v2032_v33 = vld [vmem:[%s8705_s27 + $0x70] sm:$0xff] }
 0x4b6   :  { %v2073_v34 = vld [vmem:[%s8705_s27 + $0x1b8] sm:$0xff] }
 0x507   :  { %v847_v35 = vpop.f32.mrf.mxu0 }
 0x508   :  { %852 = vrot.lane.b32.xlu0 %v847_v35, %s8613_s13 }
 0x509   :  { %v8216_v37 = vpop.f32.mrf.mxu0 }
 0x50b   :  { %v1019_v39 = vpop.f32.mrf.mxu0 }
 0x50c   :  { %1024 = vrot.lane.b32.xlu1 %v1019_v39, %s8614_s17 }
 0x50d   :  { %v8226_v40 = vpop.f32.mrf.mxu0 }
 0x53c   :  { %v1191_v41 = vpop.f32.mrf.mxu0 }
 0x53d   :  { %1196 = vrot.lane.b32.xlu1 %v1191_v41, %s8615_s29 }
 0x53e   :  { %v8236_v42 = vpop.f32.mrf.mxu0 }
 0x540   :  { %v1358_v43 = vpop.f32.mrf.mxu0 }
 0x541   :  { %1362 = vst.msk [vmem:[#allocation2 + $0x8] sm:$0xff] %vm521_vm3, %v1358_v43 }
 0x542   :  { %v8246_v46 = vpop.f32.mrf.mxu0 }
 0x543   :  { %v7349_v46 = vld [vmem:[%s10215_s3] ss:$0 sm:$0xff] }
 0x544   :  { %v1526_v48 = vpop.f32.mrf.mxu0 }
 0x545   :  { %1531 = vrot.lane.b32.xlu0 %v1526_v48, %s8613_s13 }
 0x546   :  { %v8256_v50 = vpop.f32.mrf.mxu0 }
 0x548   :  { %v1697_v51 = vpop.f32.mrf.mxu0 }
 0x549   :  { %1702 = vrot.lane.b32.xlu0 %v1697_v51, %s8614_s17  ;;  %v2070_v51 = vld [vmem:[%s8705_s27 + $0x1a0] sm:$0xff] }
 0x54a   :  { %v8266_v52 = vpop.f32.mrf.mxu0 }
 0x54b   :  { %v2072_v52 = vld [vmem:[%s8705_s27 + $0x1b0] sm:$0xff] }
 0x54c   :  { %v1868_v53 = vpop.f32.mrf.mxu0 }
 0x54d   :  { %1873 = vrot.lane.b32.xlu1 %v1868_v53, %s8615_s29  ;;  %v2055_v53 = vld [vmem:[%s8705_s27 + $0x128] sm:$0xff] }
 0x54e   :  { %v8276_v54 = vpop.f32.mrf.mxu0 }
 0x54f   :  { %v2057_v54 = vld [vmem:[%s8705_s27 + $0x138] sm:$0xff] }
 0x57a   :  { %v853_v55 = vpop.permute.xlu0 %852 }
 0x57b   :  { %856 = vst.msk [vmem:[#allocation2] sm:$0xff] %vm855_vm4, %v853_v55 }
 0x57e   :  { %v1025_v38 = vpop.permute.xlu1 %1024 }
 0x57f   :  { %1028 = vst.msk [vmem:[#allocation2] sm:$0xff] %vm1027_vm5, %v1025_v38  ;;  %v2054_v38 = vld [vmem:[%s8705_s27 + $0x120] sm:$0xff] }
 0x5af   :  { %v1197_v56 = vpop.permute.xlu1 %1196 }
 0x5b0   :  { %1200 = vst.msk [vmem:[#allocation2] sm:$0xff] %vm1199_vm6, %v1197_v56  ;;  %v2056_v56 = vld [vmem:[%s8705_s27 + $0x130] sm:$0xff] }
 0x5b7   :  { %v1532_v57 = vpop.permute.xlu0 %1531  ;;  %v1877_v58 = vld [vmem:[#allocation2] sm:$0xff] }
 0x5b8   :  { %1534 = vst.msk [vmem:[#allocation2 + $0x8] sm:$0xff] %vm855_vm4, %v1532_v57  ;;  %8285 = vmatprep.mubr.msk.f32.mxu1 %vm267_vm1, %v1877_v58  ;;  %v2039_v58 = vld [vmem:[%s8705_s27 + $0xa8] sm:$0xff] }
 0x5bb   :  { %v1703_v59 = vpop.permute.xlu0 %1702 }
 0x5bc   :  { %1705 = vst.msk [vmem:[#allocation2 + $0x8] sm:$0xff] %vm1027_vm5, %v1703_v59  ;;  %v2041_v59 = vld [vmem:[%s8705_s27 + $0xb8] sm:$0xff] }
 0x5bf   :  { %v1874_v60 = vpop.permute.xlu1 %1873 }
 0x5c0   :  { %1876 = vst.msk [vmem:[#allocation2 + $0x8] sm:$0xff] %vm1199_vm6, %v1874_v60  ;;  %v2038_v60 = vld [vmem:[%s8705_s27 + $0xa0] sm:$0xff] }
 0x5c7   :  { %v1878_v61 = vld [vmem:[#allocation2 + $0x8] sm:$0xff] }
 0x5c8   :  { %8286 = vmatmul.mubr.msk.f32.vlgmr.msra.gmra.mxu1 %vm267_vm1, %v1878_v61  ;;  %v2040_v61 = vld [vmem:[%s8705_s27 + $0xb0] sm:$0xff] }
 0x5c9   :  { %2313 = vmatprep.mubr.f32.mxu1 %v8608_v25  ;;  %2274 = vmatpush1.msra.mxu1 %v2068_v18  ;;  %v2078_v18 = vld [vmem:[%s8705_s27 + $0x1e0] sm:$0xff] }
 0x5ca   :  { %2275 = vmatprep.subr.mxu1 %v2053_v22  ;;  %v2063_v22 = vld [vmem:[%s8705_s27 + $0x168] sm:$0xff] }
 0x5cb   :  { %2276 = vmatpush1.msra.mxu1 %v2052_v24  ;;  %v2062_v24 = vld [vmem:[%s8705_s27 + $0x160] sm:$0xff] }
 0x5cc   :  { %2277 = vmatprep.subr.mxu1 %v2037_v27  ;;  %v2047_v27 = vld [vmem:[%s8705_s27 + $0xe8] sm:$0xff] }
 0x5cd   :  { %2278 = vmatpush1.msra.mxu1 %v2036_v29  ;;  %v2046_v29 = vld [vmem:[%s8705_s27 + $0xe0] sm:$0xff] }
 0x5ce   :  { %2279 = vmatprep.subr.mxu1 %v2021_v30  ;;  %v2031_v30 = vld [vmem:[%s8705_s27 + $0x68] sm:$0xff] }
 0x5cf   :  { %2280 = vmatpush1.msra.mxu1 %v2020_v32  ;;  %v2030_v32 = vld [vmem:[%s8705_s27 + $0x60] sm:$0xff] }
 0x5d0   :  { %2427 = vmatprep.subr.mxu1 %v2073_v34  ;;  %v2851_v34 = vld [vmem:[%s10216_s8 + $0xf8] sm:$0xff] }
 0x688   :  { %v8287_v63 = vpop.f32.mrf.mxu1 }
 0x689   :  { %v1968_v0 = vadd.f32 %v8287_v63, %v7345_v62  ;;  %v2025_v63 = vld [vmem:[%s8705_s27 + $0x38] sm:$0xff] }
 0x68a   :  { %v1962_v1 = vpop.f32.mrf.mxu1 }
 0x68b   :  { %v1963_v2 = vadd.f32 %v7345_v62, %v1962_v1  ;;  %v1972_v3 = vadd.f32 %v1968_v0, %v8835_v21  ;;  %v2023_v62 = vld [vmem:[%s8705_s27 + $0x28] sm:$0xff]  ;;  %v2022_v0 = vld [vmem:[%s8705_s27 + $0x20] sm:$0xff]  ;;  %v2024_v1 = vld [vmem:[%s8705_s27 + $0x30] sm:$0xff] }
 0x68d   :  { %v1978_v4 = vsel %vm267_vm1, %v1972_v3, 0.0  ;;  %v1971_v5 = vadd.f32 %v1963_v2, %v8833_v20  ;;  %v2075_v2 = vld [vmem:[%s8705_s27 + $0x1c8] sm:$0xff] }
 0x68e   :  { %1979 = vadd.xlane.f32.xlu1 %v1978_v4  ;;  %v2074_v4 = vld [vmem:[%s8705_s27 + $0x1c0] sm:$0xff] }
 0x68f   :  { %v1975_v6 = vsel %vm267_vm1, %v1971_v5, 0.0 }
 0x690   :  { %1976 = vadd.xlane.f32.xlu0 %v1975_v6  ;;  %v2059_v6 = vld [vmem:[%s8705_s27 + $0x148] sm:$0xff] }
 0x717   :  { %v1980_v7 = vpop.xlane.xlu1 %1979 }
 0x718   :  { %v1983_v8 = vmul.f32 0.03125, %v1980_v7  ;;  %v2061_v7 = vld [vmem:[%s8705_s27 + $0x158] sm:$0xff] }
 0x719   :  { %v1977_v9 = vpop.xlane.xlu0 %1976 }
 0x71a   :  { %v1982_v10 = vmul.f32 0.03125, %v1977_v9  ;;  %v1985_v11 = vsub.f32 %v1972_v3, %v1983_v8  ;;  %v2077_v3 = vld [vmem:[%s8705_s27 + $0x1d8] sm:$0xff]  ;;  %v2058_v8 = vld [vmem:[%s8705_s27 + $0x140] sm:$0xff]  ;;  %v2060_v9 = vld [vmem:[%s8705_s27 + $0x150] sm:$0xff] }
 0x71c   :  { %v1984_v12 = vsub.f32 %v1971_v5, %v1982_v10  ;;  %v1987_v20 = vmul.f32 %v1985_v11, %v1985_v11  ;;  %v2076_v5 = vld [vmem:[%s8705_s27 + $0x1d0] sm:$0xff]  ;;  %v2043_v10 = vld [vmem:[%s8705_s27 + $0xc8] sm:$0xff] }
 0x71e   :  { %v1986_v21 = vmul.f32 %v1984_v12, %v1984_v12  ;;  %v1991_v14 = vsel %vm267_vm1, %v1987_v20, 0.0  ;;  %v2029_v20 = vld [vmem:[%s8705_s27 + $0x58] sm:$0xff] }
 0x720   :  { %v1988_v13 = vsel %vm267_vm1, %v1986_v21, 0.0  ;;  %v2044_v21 = vld [vmem:[%s8705_s27 + $0xd0] sm:$0xff] }
 0x721   :  { %1989 = vadd.xlane.f32.xlu0 %v1988_v13  ;;  %v2027_v13 = vld [vmem:[%s8705_s27 + $0x48] sm:$0xff] }
 0x725   :  { %1992 = vadd.xlane.f32.xlu0 %v1991_v14  ;;  %v2026_v14 = vld [vmem:[%s8705_s27 + $0x40] sm:$0xff] }
 0x7aa   :  { %v1990_v35 = vpop.xlane.xlu0 %1989 }
 0x7ab   :  { %v1994_v37 = vmul.f32 0.03125, %v1990_v35  ;;  %v2883_v35 = vld [vmem:[%s10216_s8 + $0x1f8] sm:$0xff] }
 0x7ad   :  { %v1996_v39 = vadd.f32 1e-05, %v1994_v37  ;;  %v2835_v37 = vld [vmem:[%s10216_s8 + $0x78] sm:$0xff] }
 0x7ae   :  { %v1993_v40 = vpop.xlane.xlu0 %1992 }
 0x7af   :  { %8502 = vrsqrt.f32 %v1996_v39  ;;  %v1995_v41 = vmul.f32 0.03125, %v1993_v40  ;;  %v2867_v39 = vld [vmem:[%s10216_s8 + $0x178] sm:$0xff]  ;;  %v2850_v40 = vld [vmem:[%s10216_s8 + $0xf0] sm:$0xff] }
 0x7b1   :  { %v1997_v42 = vadd.f32 1e-05, %v1995_v41  ;;  %v2882_v41 = vld [vmem:[%s10216_s8 + $0x1f0] sm:$0xff] }
 0x7b3   :  { %8504 = vrsqrt.f32 %v1997_v42  ;;  %v2834_v42 = vld [vmem:[%s10216_s8 + $0x70] sm:$0xff] }
 0x7bc   :  { %v8503_v43 = vpop.eup %8502 }
 0x7bd   :  { %v2000_v45 = vmul.f32 %v8503_v43, %v1984_v12  ;;  %v2042_v12 = vld [vmem:[%s8705_s27 + $0xc0] sm:$0xff]  ;;  %v2866_v43 = vld [vmem:[%s10216_s8 + $0x170] sm:$0xff] }
 0x7bf   :  { %v2008_v47 = vmul.f32 %v7348_v44, %v2000_v45  ;;  %v2881_v45 = vld [vmem:[%s10216_s8 + $0x1e8] sm:$0xff] }
 0x7c0   :  { %v8505_v48 = vpop.eup %8504 }
 0x7c1   :  { %v9038_v49 = vadd.f32 %v7349_v46, %v2008_v47  ;;  %v2001_v50 = vmul.f32 %v8505_v48, %v1985_v11  ;;  %v2045_v11 = vld [vmem:[%s8705_s27 + $0xd8] sm:$0xff]  ;;  %v2865_v47 = vld [vmem:[%s10216_s8 + $0x168] sm:$0xff]  ;;  %v2848_v48 = vld [vmem:[%s10216_s8 + $0xe0] sm:$0xff]  ;;  %s10223_s27 = sld [smem:[#allocation13_spill]] }
 0x7c3   :  { %v2009_v55 = vmul.f32 %v7348_v44, %v2001_v50  ;;  %7350 = vmatmul.mubr.msk.f32.vlgmr.msra.gmra.mxu0 %vm267_vm1, %v9038_v49  ;;  %7352 = vmatmul.mubr.msk.f32.vlgmr.msra.gmra.mxu1 %vm267_vm1, %v9038_v49  ;;  %v2849_v44 = vld [vmem:[%s10216_s8 + $0xe8] sm:$0xff]  ;;  %v2880_v50 = vld [vmem:[%s10216_s8 + $0x1e0] sm:$0xff] }
 0x7c4   :  { %2351 = vmatpush1.msra.mxu0 %v2070_v51  ;;  %2428 = vmatpush1.msra.mxu1 %v2072_v52  ;;  %v2832_v51 = vld [vmem:[%s10216_s8 + $0x60] sm:$0xff] }
 0x7c5   :  { %v9050_v57 = vadd.f32 %v7349_v46, %v2009_v55  ;;  %2352 = vmatprep.subr.mxu0 %v2055_v53  ;;  %2429 = vmatprep.subr.mxu1 %v2057_v54  ;;  %v2833_v46 = vld [vmem:[%s10216_s8 + $0x68] sm:$0xff]  ;;  %v2864_v52 = vld [vmem:[%s10216_s8 + $0x160] sm:$0xff]  ;;  %v2847_v53 = vld [vmem:[%s10216_s8 + $0xd8] sm:$0xff] }
 0x7c6   :  { %2242 = vmatprep.mubr.f32.mxu0 %v8608_v25  ;;  %2319 = vmatprep.mubr.f32.mxu1 %v8608_v25  ;;  %v2879_v54 = vld [vmem:[%s10216_s8 + $0x1d8] sm:$0xff] }
 0x7c7   :  { %2353 = vmatpush1.msra.mxu0 %v2054_v38  ;;  %2430 = vmatpush1.msra.mxu1 %v2056_v56  ;;  %v2831_v55 = vld [vmem:[%s10216_s8 + $0x58] sm:$0xff]  ;;  %v2846_v56 = vld [vmem:[%s10216_s8 + $0xd0] sm:$0xff] }
 0x7c8   :  { %7351 = vmatmul.mubr.msk.f32.gmra.mxu0 %vm267_vm1, %v9050_v57  ;;  %7353 = vmatmul.mubr.msk.f32.gmra.mxu1 %vm267_vm1, %v9050_v57  ;;  %v2863_v38 = vld [vmem:[%s10216_s8 + $0x158] sm:$0xff] }
 0x7c9   :  { %2354 = vmatprep.subr.mxu0 %v2039_v58  ;;  %2431 = vmatprep.subr.mxu1 %v2041_v59  ;;  %v2878_v58 = vld [vmem:[%s10216_s8 + $0x1d0] sm:$0xff] }
 0x7ca   :  { %2355 = vmatpush1.msra.mxu0 %v2038_v60  ;;  %2432 = vmatpush1.msra.mxu1 %v2040_v61  ;;  %v2830_v59 = vld [vmem:[%s10216_s8 + $0x50] sm:$0xff]  ;;  %v2845_v61 = vld [vmem:[%s10216_s8 + $0xc8] sm:$0xff] }
 0x7cb   :  { %2356 = vmatprep.subr.mxu0 %v2023_v62  ;;  %2433 = vmatprep.subr.mxu1 %v2025_v63  ;;  %v2862_v60 = vld [vmem:[%s10216_s8 + $0x150] sm:$0xff]  ;;  %v2877_v62 = vld [vmem:[%s10216_s8 + $0x1c8] sm:$0xff] }
 0x7cc   :  { %2357 = vmatpush1.msra.mxu0 %v2022_v0  ;;  %2390 = vmatprep.mubr.f32.mxu0 %v8608_v25  ;;  %v2829_v63 = vld [vmem:[%s10216_s8 + $0x48] sm:$0xff] }
 0x7cd   :  { %2434 = vmatpush1.msra.mxu1 %v2024_v1  ;;  %2467 = vmatprep.mubr.f32.mxu1 %v8608_v25  ;;  %v2861_v0 = vld [vmem:[%s10216_s8 + $0x148] sm:$0xff]  ;;  %v2844_v1 = vld [vmem:[%s10216_s8 + $0xc0] sm:$0xff] }
 0x7ce   :  { %7354 = vmatmul.mubr.msk.f32.vlgmr.msra.gmra.mxu0 %vm267_vm1, %v9038_v49  ;;  %7356 = vmatmul.mubr.msk.f32.vlgmr.msra.gmra.mxu1 %vm267_vm1, %v9038_v49 }
 0x7cf   :  { %2504 = vmatprep.subr.mxu0 %v2075_v2  ;;  %2581 = vmatprep.subr.mxu1 %v2077_v3  ;;  %v2876_v2 = vld [vmem:[%s10216_s8 + $0x1c0] sm:$0xff] }
 0x7d0   :  { %2505 = vmatpush1.msra.mxu0 %v2074_v4  ;;  %2582 = vmatpush1.msra.mxu1 %v2076_v5  ;;  %v2828_v3 = vld [vmem:[%s10216_s8 + $0x40] sm:$0xff]  ;;  %v2843_v5 = vld [vmem:[%s10216_s8 + $0xb8] sm:$0xff] }
 0x7d1   :  { %2506 = vmatprep.subr.mxu0 %v2059_v6  ;;  %2583 = vmatprep.subr.mxu1 %v2061_v7  ;;  %v2860_v4 = vld [vmem:[%s10216_s8 + $0x140] sm:$0xff]  ;;  %v2875_v6 = vld [vmem:[%s10216_s8 + $0x1b8] sm:$0xff] }
 0x7d2   :  { %2396 = vmatprep.mubr.f32.mxu0 %v8608_v25  ;;  %2473 = vmatprep.mubr.f32.mxu1 %v8608_v25  ;;  %v2827_v7 = vld [vmem:[%s10216_s8 + $0x38] sm:$0xff] }
 0x7d3   :  { %2507 = vmatpush1.msra.mxu0 %v2058_v8  ;;  %2584 = vmatpush1.msra.mxu1 %v2060_v9  ;;  %v2859_v8 = vld [vmem:[%s10216_s8 + $0x138] sm:$0xff]  ;;  %v2842_v9 = vld [vmem:[%s10216_s8 + $0xb0] sm:$0xff] }
 0x7d4   :  { %7355 = vmatmul.mubr.msk.f32.gmra.mxu0 %vm267_vm1, %v9050_v57  ;;  %7357 = vmatmul.mubr.msk.f32.gmra.mxu1 %vm267_vm1, %v9050_v57 }
 0x7d5   :  { %2508 = vmatprep.subr.mxu0 %v2043_v10  ;;  %2585 = vmatprep.subr.mxu1 %v2045_v11  ;;  %v2874_v10 = vld [vmem:[%s10216_s8 + $0x1b0] sm:$0xff] }
 0x7d6   :  { %2509 = vmatpush1.msra.mxu0 %v2042_v12  ;;  %2586 = vmatpush1.msra.mxu1 %v2044_v21  ;;  %v2826_v11 = vld [vmem:[%s10216_s8 + $0x30] sm:$0xff]  ;;  %v2841_v21 = vld [vmem:[%s10216_s8 + $0xa8] sm:$0xff] }
 0x7d7   :  { %2510 = vmatprep.subr.mxu0 %v2027_v13  ;;  %2587 = vmatprep.subr.mxu1 %v2029_v20  ;;  %v2858_v12 = vld [vmem:[%s10216_s8 + $0x130] sm:$0xff]  ;;  %v2873_v13 = vld [vmem:[%s10216_s8 + $0x1a8] sm:$0xff] }
 0x7d8   :  { %2511 = vmatpush1.msra.mxu0 %v2026_v14  ;;  %2544 = vmatprep.mubr.f32.mxu0 %v8608_v25  ;;  %v2825_v20 = vld [vmem:[%s10216_s8 + $0x28] sm:$0xff] }
 0x7d9   :  { %2588 = vmatpush1.msra.mxu1 %v2028_v15  ;;  %2621 = vmatprep.mubr.f32.mxu1 %v8608_v25  ;;  %v2857_v14 = vld [vmem:[%s10216_s8 + $0x128] sm:$0xff]  ;;  %v2840_v15 = vld [vmem:[%s10216_s8 + $0xa0] sm:$0xff] }
 0x7da   :  { %7358 = vmatmul.mubr.msk.f32.vlgmr.msra.gmra.mxu0 %vm267_vm1, %v9038_v49  ;;  %7360 = vmatmul.mubr.msk.f32.vlgmr.msra.gmra.mxu1 %vm267_vm1, %v9038_v49 }
 0x7db   :  { %2658 = vmatprep.subr.mxu0 %v2079_v16  ;;  %2735 = vmatprep.subr.mxu1 %v2081_v17  ;;  %v2872_v16 = vld [vmem:[%s10216_s8 + $0x1a0] sm:$0xff] }
 0x7dc   :  { %2659 = vmatpush1.msra.mxu0 %v2078_v18  ;;  %2736 = vmatpush1.msra.mxu1 %v2080_v19  ;;  %v2824_v17 = vld [vmem:[%s10216_s8 + $0x20] sm:$0xff]  ;;  %v2839_v19 = vld [vmem:[%s10216_s8 + $0x98] sm:$0xff] }
 0x7dd   :  { %2660 = vmatprep.subr.mxu0 %v2063_v22  ;;  %2737 = vmatprep.subr.mxu1 %v2065_v23  ;;  %v2856_v18 = vld [vmem:[%s10216_s8 + $0x120] sm:$0xff]  ;;  %v2871_v22 = vld [vmem:[%s10216_s8 + $0x198] sm:$0xff] }
 0x7de   :  { %2550 = vmatprep.mubr.f32.mxu0 %v8608_v25  ;;  %2627 = vmatprep.mubr.f32.mxu1 %v8608_v25  ;;  %v2823_v23 = vld [vmem:[%s10216_s8 + $0x18] sm:$0xff] }
 0x7df   :  { %2661 = vmatpush1.msra.mxu0 %v2062_v24  ;;  %2738 = vmatpush1.msra.mxu1 %v2064_v26  ;;  %v2855_v24 = vld [vmem:[%s10216_s8 + $0x118] sm:$0xff]  ;;  %v2838_v26 = vld [vmem:[%s10216_s8 + $0x90] sm:$0xff] }
 0x7e0   :  { %7359 = vmatmul.mubr.msk.f32.gmra.mxu0 %vm267_vm1, %v9050_v57  ;;  %7361 = vmatmul.mubr.msk.f32.gmra.mxu1 %vm267_vm1, %v9050_v57 }
 0x7e1   :  { %2662 = vmatprep.subr.mxu0 %v2047_v27  ;;  %2739 = vmatprep.subr.mxu1 %v2049_v28  ;;  %v2870_v27 = vld [vmem:[%s10216_s8 + $0x190] sm:$0xff] }
 0x7e2   :  { %2663 = vmatpush1.msra.mxu0 %v2046_v29  ;;  %2740 = vmatpush1.msra.mxu1 %v2048_v36  ;;  %v2822_v28 = vld [vmem:[%s10216_s8 + $0x10] sm:$0xff]  ;;  %v2837_v36 = vld [vmem:[%s10216_s8 + $0x88] sm:$0xff] }
 0x7e3   :  { %2664 = vmatprep.subr.mxu0 %v2031_v30  ;;  %2741 = vmatprep.subr.mxu1 %v2033_v31  ;;  %v2854_v29 = vld [vmem:[%s10216_s8 + $0x110] sm:$0xff]  ;;  %v2869_v30 = vld [vmem:[%s10216_s8 + $0x188] sm:$0xff] }
 0x7e4   :  { %2665 = vmatpush1.msra.mxu0 %v2030_v32  ;;  %2698 = vmatprep.mubr.f32.mxu0 %v8608_v25  ;;  %v2821_v31 = vld [vmem:[%s10216_s8 + $0x8] sm:$0xff] }
 0x7e5   :  { %2742 = vmatpush1.msra.mxu1 %v2032_v33  ;;  %2775 = vmatprep.mubr.f32.mxu1 %v8608_v25  ;;  %v2853_v32 = vld [vmem:[%s10216_s8 + $0x108] sm:$0xff]  ;;  %v2836_v33 = vld [vmem:[%s10216_s8 + $0x80] sm:$0xff] }
 0x7e6   :  { %7362 = vmatmul.mubr.msk.f32.vlgmr.msra.gmra.mxu0 %vm267_vm1, %v9038_v49  ;;  %7364 = vmatmul.mubr.msk.f32.vlgmr.msra.gmra.mxu1 %vm267_vm1, %v9038_v49 }
 0x7e7   :  { %2704 = vmatprep.mubr.f32.mxu0 %v8608_v25  ;;  %2781 = vmatprep.mubr.f32.mxu1 %v8608_v25 }
 0x7e8   :  { %7488 = vmatprep.subr.mxu0 %v2851_v34  ;;  %7526 = vmatprep.subr.mxu1 %v2883_v35  ;;  %v2868_v34 = vld [vmem:[%s10216_s8 + $0x180] sm:$0xff] }
 0x7e9   :  { %7489 = vmatpush3.msra.mxu0 %v2835_v37  ;;  %7527 = vmatpush3.msra.mxu1 %v2867_v39  ;;  %v2820_v35 = vld [vmem:[%s10216_s8] sm:$0xff]  ;;  %v2915_v39 = vld [vmem:[%s10216_s8 + $0x2f8] sm:$0xff] }
 0x7ea   :  { %7363 = vmatmul.mubr.msk.f32.gmra.mxu0 %vm267_vm1, %v9050_v57  ;;  %7365 = vmatmul.mubr.msk.f32.gmra.mxu1 %vm267_vm1, %v9050_v57  ;;  %v2852_v37 = vld [vmem:[%s10216_s8 + $0x100] sm:$0xff] }
 0x7eb   :  { %7490 = vmatprep.subr.mxu0 %v2850_v40  ;;  %7528 = vmatprep.subr.mxu1 %v2882_v41  ;;  %v2947_v40 = vld [vmem:[%s10216_s8 + $0x3f8] sm:$0xff]  ;;  %v2086_v41 = vlaneseq }
 0x7ec   :  { %7491 = vmatpush3.msra.mxu0 %v2834_v42  ;;  %7529 = vmatpush3.msra.mxu1 %v2866_v43 }
 0x7ed   :  { %7492 = vmatprep.subr.mxu0 %v2849_v44  ;;  %7530 = vmatprep.subr.mxu1 %v2881_v45  ;;  %v9200_v42 = vshrl.u32 %v2086_v41, 7  ;;  %v9209_v45 = vld [vmem:[%s10217_s14] sm:$0xff] }
 0x7ee   :  { %7493 = vmatpush3.msra.mxu0 %v2833_v46  ;;  %7531 = vmatpush3.msra.mxu1 %v2865_v47 }
 0x7ef   :  { %7494 = vmatprep.subr.mxu0 %v2848_v48  ;;  %7532 = vmatprep.subr.mxu1 %v2880_v50  ;;  %v9203_v43 = vsub.s32 0, %v9200_v42  ;;  %v9206_v44 = vsub.s32 2, %v9200_v42  ;;  %v9212_v46 = vsub.s32 1, %v9200_v42  ;;  %v9215_v47 = vsub.s32 3, %v9200_v42 }
 0x7f0   :  { %7495 = vmatpush3.msra.mxu0 %v2832_v51  ;;  %7533 = vmatpush3.msra.mxu1 %v2864_v52 }
 0x7f1   :  { %7496 = vmatprep.subr.mxu0 %v2847_v53  ;;  %7534 = vmatprep.subr.mxu1 %v2879_v54  ;;  %v2089_v48 = vrot.slane %v9209_v45, %v9203_v43  ;;  %v2097_v50 = vrot.slane %v9209_v45, %v9206_v44  ;;  %v2093_v51 = vrot.slane %v9209_v45, %v9212_v46 }
 0x7f2   :  { %7497 = vmatpush3.msra.mxu0 %v2831_v55  ;;  %7535 = vmatpush3.msra.mxu1 %v2863_v38  ;;  %v2101_v52 = vrot.slane %v9209_v45, %v9215_v47 }
 0x7f3   :  { %7498 = vmatprep.subr.mxu0 %v2846_v56  ;;  %7536 = vmatprep.subr.mxu1 %v2878_v58 }
 0x7f4   :  { %7499 = vmatpush3.msra.mxu0 %v2830_v59  ;;  %7537 = vmatpush3.msra.mxu1 %v2862_v60 }
 0x7f5   :  { %7500 = vmatprep.subr.mxu0 %v2845_v61  ;;  %7538 = vmatprep.subr.mxu1 %v2877_v62 }
 0x7f6   :  { %7501 = vmatpush3.msra.mxu0 %v2829_v63  ;;  %7539 = vmatpush3.msra.mxu1 %v2861_v0 }
 0x7f7   :  { %7502 = vmatprep.subr.mxu0 %v2844_v1  ;;  %7540 = vmatprep.subr.mxu1 %v2876_v2 }
 0x7f8   :  { %7503 = vmatpush3.msra.mxu0 %v2828_v3  ;;  %7541 = vmatpush3.msra.mxu1 %v2860_v4  ;;  %v2899_v3 = vld [vmem:[%s10216_s8 + $0x278] sm:$0xff] }
 0x7f9   :  { %7504 = vmatprep.subr.mxu0 %v2843_v5  ;;  %7542 = vmatprep.subr.mxu1 %v2875_v6  ;;  %v2931_v4 = vld [vmem:[%s10216_s8 + $0x378] sm:$0xff]  ;;  %v9228_v5 = vsub.s32 5, %v9200_v42  ;;  %v9231_v6 = vsub.s32 7, %v9200_v42 }
 0x7fa   :  { %7505 = vmatpush3.msra.mxu0 %v2827_v7  ;;  %7543 = vmatpush3.msra.mxu1 %v2859_v8 }
 0x7fb   :  { %7506 = vmatprep.subr.mxu0 %v2842_v9  ;;  %7544 = vmatprep.subr.mxu1 %v2874_v10  ;;  %v2914_v10 = vld [vmem:[%s10216_s8 + $0x2f0] sm:$0xff] }
 0x7fc   :  { %7507 = vmatpush3.msra.mxu0 %v2826_v11  ;;  %7545 = vmatpush3.msra.mxu1 %v2858_v12  ;;  %v2946_v11 = vld [vmem:[%s10216_s8 + $0x3f0] sm:$0xff] }
 0x7fd   :  { %7508 = vmatprep.subr.mxu0 %v2841_v21  ;;  %7546 = vmatprep.subr.mxu1 %v2873_v13 }
 0x7fe   :  { %7509 = vmatpush3.msra.mxu0 %v2825_v20  ;;  %7547 = vmatpush3.msra.mxu1 %v2857_v14  ;;  %v2898_v20 = vld [vmem:[%s10216_s8 + $0x270] sm:$0xff] }
 0x7ff   :  { %7510 = vmatprep.subr.mxu0 %v2840_v15  ;;  %7548 = vmatprep.subr.mxu1 %v2872_v16  ;;  %v2930_v14 = vld [vmem:[%s10216_s8 + $0x370] sm:$0xff] }
 0x800   :  { %7511 = vmatpush3.msra.mxu0 %v2824_v17  ;;  %7549 = vmatpush3.msra.mxu1 %v2856_v18  ;;  %v9239_v17 = vrot.slane %v9209_v45, %v9228_v5  ;;  %v9243_v18 = vrot.slane %v9209_v45, %v9231_v6 }
 0x801   :  { %7512 = vmatprep.subr.mxu0 %v2839_v19  ;;  %7550 = vmatprep.subr.mxu1 %v2871_v22  ;;  %v2913_v19 = vld [vmem:[%s10216_s8 + $0x2e8] sm:$0xff] }
 0x802   :  { %7513 = vmatpush3.msra.mxu0 %v2823_v23  ;;  %7551 = vmatpush3.msra.mxu1 %v2855_v24  ;;  %v2945_v22 = vld [vmem:[%s10216_s8 + $0x3e8] sm:$0xff] }
 0x803   :  { %7514 = vmatprep.subr.mxu0 %v2838_v26  ;;  %7552 = vmatprep.subr.mxu1 %v2870_v27 }
 0x804   :  { %7515 = vmatpush3.msra.mxu0 %v2822_v28  ;;  %7553 = vmatpush3.msra.mxu1 %v2854_v29  ;;  %v2897_v28 = vld [vmem:[%s10216_s8 + $0x268] sm:$0xff] }
 0x805   :  { %7516 = vmatprep.subr.mxu0 %v2837_v36  ;;  %7554 = vmatprep.subr.mxu1 %v2869_v30  ;;  %v2929_v29 = vld [vmem:[%s10216_s8 + $0x368] sm:$0xff] }
 0x806   :  { %7517 = vmatpush3.msra.mxu0 %v2821_v31  ;;  %7555 = vmatpush3.msra.mxu1 %v2853_v32  ;;  %v2912_v31 = vld [vmem:[%s10216_s8 + $0x2e0] sm:$0xff] }
 0x807   :  { %7518 = vmatprep.subr.mxu0 %v2836_v33  ;;  %7556 = vmatprep.subr.mxu1 %v2868_v34  ;;  %v2944_v32 = vld [vmem:[%s10216_s8 + $0x3e0] sm:$0xff] }
 0x808   :  { %7519 = vmatpush3.msra.mxu0 %v2820_v35  ;;  %7557 = vmatpush3.msra.mxu1 %v2852_v37  ;;  %v2896_v35 = vld [vmem:[%s10216_s8 + $0x260] sm:$0xff] }
 0x809   :  { %7564 = vmatprep.subr.mxu0 %v2915_v39  ;;  %7602 = vmatprep.subr.mxu1 %v2947_v40  ;;  %v2928_v37 = vld [vmem:[%s10216_s8 + $0x360] sm:$0xff]  ;;  %v2911_v39 = vld [vmem:[%s10216_s8 + $0x2d8] sm:$0xff] }
 0x883   :  { %v2238_v53 = vpop.f32.mrf.mxu0  ;;  %v2315_v54 = vpop.f32.mrf.mxu1 }
 0x884   :  { %v2239_v55 = vadd.f32 %v2238_v53, %v2089_v48  ;;  %v2316_v38 = vadd.f32 %v2315_v54, %v2097_v50  ;;  %v2942_v53 = vld [vmem:[%s10216_s8 + $0x3d0] sm:$0xff] }
 0x885   :  { %v2240_v56 = vpop.f32.mrf.mxu0  ;;  %v2317_v58 = vpop.f32.mrf.mxu1  ;;  %v2894_v54 = vld [vmem:[%s10216_s8 + $0x250] sm:$0xff] }
 0x886   :  { %v2241_v59 = vadd.f32 %v2240_v56, %v2093_v51  ;;  %v2318_v60 = vadd.f32 %v2317_v58, %v2101_v52  ;;  %v2788_v1 = vmax.f32 %v2239_v55, 0.0  ;;  %v2790_v2 = vmax.f32 %v2316_v38, 0.0  ;;  %v2926_v55 = vld [vmem:[%s10216_s8 + $0x350] sm:$0xff]  ;;  %v2909_v38 = vld [vmem:[%s10216_s8 + $0x2c8] sm:$0xff] }
 0x887   :  { %v2941_v56 = vld [vmem:[%s10216_s8 + $0x3c8] sm:$0xff] }
 0x888   :  { %v2789_v61 = vmax.f32 %v2241_v59, 0.0  ;;  %v2791_v62 = vmax.f32 %v2318_v60, 0.0  ;;  %v2244_v63 = vpop.f32.mrf.mxu0  ;;  %v2321_v0 = vpop.f32.mrf.mxu1  ;;  %v2893_v58 = vld [vmem:[%s10216_s8 + $0x248] sm:$0xff]  ;;  %v2908_v60 = vld [vmem:[%s10216_s8 + $0x2c0] sm:$0xff] }
 0x889   :  { %v2245_v7 = vadd.f32 %v2244_v63, %v2089_v48  ;;  %v2322_v12 = vadd.f32 %v2321_v0, %v2097_v50  ;;  %v2943_v48 = vld [vmem:[%s10216_s8 + $0x3d8] sm:$0xff]  ;;  %v2925_v59 = vld [vmem:[%s10216_s8 + $0x348] sm:$0xff]  ;;  %v2924_v63 = vld [vmem:[%s10216_s8 + $0x340] sm:$0xff] }
 0x88a   :  { %v2246_v8 = vpop.f32.mrf.mxu0  ;;  %v2323_v9 = vpop.f32.mrf.mxu1  ;;  %3147 = vmatprep.mubr.f32.mxu0 %v2789_v61  ;;  %3222 = vmatprep.mubr.f32.mxu1 %v2791_v62  ;;  %v2895_v50 = vld [vmem:[%s10216_s8 + $0x258] sm:$0xff]  ;;  %v2940_v61 = vld [vmem:[%s10216_s8 + $0x3c0] sm:$0xff] }
 0x88b   :  { %v2247_v21 = vadd.f32 %v2246_v8, %v2093_v51  ;;  %v2324_v13 = vadd.f32 %v2323_v9, %v2101_v52  ;;  %3148 = vmatmul.mubr.f32.vlgmr.msra.gmra.mxu0 %v2788_v1  ;;  %3223 = vmatmul.mubr.f32.vlgmr.msra.gmra.mxu1 %v2790_v2  ;;  %v2804_v26 = vmax.f32 %v2245_v7, 0.0  ;;  %v2806_v27 = vmax.f32 %v2322_v12, 0.0  ;;  %v2927_v51 = vld [vmem:[%s10216_s8 + $0x358] sm:$0xff]  ;;  %v2910_v52 = vld [vmem:[%s10216_s8 + $0x2d0] sm:$0xff]  ;;  %v2892_v62 = vld [vmem:[%s10216_s8 + $0x240] sm:$0xff] }
 0x88c   :  { %7565 = vmatpush3.msra.mxu0 %v2899_v3  ;;  %7603 = vmatpush3.msra.mxu1 %v2931_v4  ;;  %v2907_v0 = vld [vmem:[%s10216_s8 + $0x2b8] sm:$0xff]  ;;  %v2906_v4 = vld [vmem:[%s10216_s8 + $0x2b0] sm:$0xff]  ;;  %v9286_v12 = vsub.s32 4, %v9200_v42 }
 0x88d   :  { %v2805_v15 = vmax.f32 %v2247_v21, 0.0  ;;  %v2807_v16 = vmax.f32 %v2324_v13, 0.0  ;;  %7566 = vmatprep.subr.mxu0 %v2914_v10  ;;  %7604 = vmatprep.subr.mxu1 %v2946_v11  ;;  %v2939_v1 = vld [vmem:[%s10216_s8 + $0x3b8] sm:$0xff]  ;;  %v2938_v7 = vld [vmem:[%s10216_s8 + $0x3b0] sm:$0xff]  ;;  %v2905_v10 = vld [vmem:[%s10216_s8 + $0x2a8] sm:$0xff]  ;;  %v9289_v21 = vsub.s32 6, %v9200_v42 }
 0x88e   :  { %v9247_v23 = vpop.f32.mrf.mxu0  ;;  %v9249_v24 = vpop.f32.mrf.mxu1  ;;  %7567 = vmatpush3.msra.mxu0 %v2898_v20  ;;  %7605 = vmatpush3.msra.mxu1 %v2930_v14  ;;  %v2891_v2 = vld [vmem:[%s10216_s8 + $0x238] sm:$0xff]  ;;  %v2890_v8 = vld [vmem:[%s10216_s8 + $0x230] sm:$0xff]  ;;  %v2937_v11 = vld [vmem:[%s10216_s8 + $0x3a8] sm:$0xff] }
 0x88f   :  { %3152 = vmatprep.mubr.f32.mxu0 %v2805_v15  ;;  %3227 = vmatprep.mubr.f32.mxu1 %v2807_v16  ;;  %v2923_v3 = vld [vmem:[%s10216_s8 + $0x338] sm:$0xff]  ;;  %v2922_v9 = vld [vmem:[%s10216_s8 + $0x330] sm:$0xff]  ;;  %v2889_v13 = vld [vmem:[%s10216_s8 + $0x228] sm:$0xff] }
 0x890   :  { %v2394_v36 = vpop.f32.mrf.mxu0  ;;  %v2471_v30 = vpop.f32.mrf.mxu1  ;;  %7568 = vmatprep.subr.mxu0 %v2913_v19  ;;  %7606 = vmatprep.subr.mxu1 %v2945_v22  ;;  %v2921_v20 = vld [vmem:[%s10216_s8 + $0x328] sm:$0xff]  ;;  %v2904_v15 = vld [vmem:[%s10216_s8 + $0x2a0] sm:$0xff] }
 0x891   :  { %v2395_v33 = vadd.f32 %v2394_v36, %v9239_v17  ;;  %v2472_v34 = vadd.f32 %v2471_v30, %v9243_v18  ;;  %3153 = vmatmul.mubr.f32.gmra.mxu0 %v2804_v26  ;;  %3228 = vmatmul.mubr.f32.gmra.mxu1 %v2806_v27  ;;  %v2936_v16 = vld [vmem:[%s10216_s8 + $0x3a0] sm:$0xff]  ;;  %v2903_v26 = vld [vmem:[%s10216_s8 + $0x298] sm:$0xff] }
 0x892   :  { %7569 = vmatpush3.msra.mxu0 %v2897_v28  ;;  %7607 = vmatpush3.msra.mxu1 %v2929_v29  ;;  %v2888_v42 = vld [vmem:[%s10216_s8 + $0x220] sm:$0xff]  ;;  %v2935_v27 = vld [vmem:[%s10216_s8 + $0x398] sm:$0xff]  ;;  %v2105_v28 = vrot.slane %v9209_v45, %v9286_v12  ;;  %v2113_v29 = vrot.slane %v9209_v45, %v9289_v21  ;;  %v2918_v45 = vld [vmem:[%s10216_s8 + $0x310] sm:$0xff] }
 0x893   :  { %v2793_v40 = vmax.f32 %v2395_v33, 0.0  ;;  %v2795_v41 = vmax.f32 %v2472_v34, 0.0  ;;  %7570 = vmatprep.subr.mxu0 %v2912_v31  ;;  %7608 = vmatprep.subr.mxu1 %v2944_v32  ;;  %v2920_v22 = vld [vmem:[%s10216_s8 + $0x320] sm:$0xff]  ;;  %v2887_v36 = vld [vmem:[%s10216_s8 + $0x218] sm:$0xff]  ;;  %v2902_v32 = vld [vmem:[%s10216_s8 + $0x290] sm:$0xff] }
 0x894   :  { %7571 = vmatpush3.msra.mxu0 %v2896_v35  ;;  %7609 = vmatpush3.msra.mxu1 %v2928_v37  ;;  %v9293_v14 = vpop.f32.mrf.mxu0  ;;  %v2475_v19 = vpop.f32.mrf.mxu1  ;;  %v2919_v30 = vld [vmem:[%s10216_s8 + $0x318] sm:$0xff]  ;;  %v2934_v33 = vld [vmem:[%s10216_s8 + $0x390] sm:$0xff]  ;;  %v2901_v37 = vld [vmem:[%s10216_s8 + $0x288] sm:$0xff] }
 0x895   :  { %7572 = vmatprep.subr.mxu0 %v2911_v39  ;;  %3297 = vmatprep.mubr.f32.mxu0 %v2793_v40  ;;  %v2886_v35 = vld [vmem:[%s10216_s8 + $0x210] sm:$0xff]  ;;  %v2933_v39 = vld [vmem:[%s10216_s8 + $0x388] sm:$0xff]  ;;  %v2393_v40 = vadd.f32 %v9247_v23, %v2105_v28 }
 0x896   :  { %7610 = vmatprep.subr.mxu1 %v2943_v48  ;;  %3372 = vmatprep.mubr.f32.mxu1 %v2795_v41  ;;  %v2400_v31 = vpop.f32.mrf.mxu0  ;;  %v2477_v34 = vpop.f32.mrf.mxu1  ;;  %v2470_v41 = vadd.f32 %v9249_v24, %v2113_v29  ;;  %v2885_v48 = vld [vmem:[%s10216_s8 + $0x208] sm:$0xff]  ;;  %v2884_v24 = vld [vmem:[%s10216_s8 + $0x200] sm:$0xff] }
 0x897   :  { %7573 = vmatpush3.msra.mxu0 %v2895_v50  ;;  %7611 = vmatpush3.msra.mxu1 %v2927_v51  ;;  %v2917_v50 = vld [vmem:[%s10216_s8 + $0x308] sm:$0xff]  ;;  %v2478_v23 = vadd.f32 %v2477_v34, %v9243_v18  ;;  %v3011_v18 = vld [vmem:[%s10216_s8 + $0x5f8] sm:$0xff] }
 0x898   :  { %7574 = vmatprep.subr.mxu0 %v2910_v52  ;;  %7612 = vmatprep.subr.mxu1 %v2942_v53  ;;  %v2900_v52 = vld [vmem:[%s10216_s8 + $0x280] sm:$0xff]  ;;  %v2991_v34 = vld [vmem:[%s10216_s8 + $0x558] sm:$0xff] }
 0x899   :  { %7575 = vmatpush3.msra.mxu0 %v2894_v54  ;;  %7613 = vmatpush3.msra.mxu1 %v2926_v55  ;;  %v2932_v53 = vld [vmem:[%s10216_s8 + $0x380] sm:$0xff]  ;;  %v2401_v54 = vadd.f32 %v2400_v31, %v9239_v17  ;;  %v2979_v17 = vld [vmem:[%s10216_s8 + $0x4f8] sm:$0xff] }
 0x89a   :  { %7576 = vmatprep.subr.mxu0 %v2909_v38  ;;  %7614 = vmatprep.subr.mxu1 %v2941_v56  ;;  %v9317_v51 = vpop.f32.mrf.mxu0  ;;  %v9323_v55 = vpop.f32.mrf.mxu1  ;;  %v2916_v38 = vld [vmem:[%s10216_s8 + $0x300] sm:$0xff]  ;;  %v9328_v56 = vld [vmem:[%s10217_s14 + $0x8] sm:$0xff]  ;;  %v2975_v31 = vld [vmem:[%s10216_s8 + $0x4d8] sm:$0xff] }
 0x89b   :  { %7577 = vmatpush3.msra.mxu0 %v2893_v58  ;;  %7615 = vmatpush3.msra.mxu1 %v2925_v59  ;;  %v2792_v58 = vmax.f32 %v2393_v40, 0.0  ;;  %v2794_v59 = vmax.f32 %v2470_v41, 0.0  ;;  %v2973_v40 = vld [vmem:[%s10216_s8 + $0x4c8] sm:$0xff] }
 0x89c   :  { %7578 = vmatprep.subr.mxu0 %v2908_v60  ;;  %7616 = vmatprep.subr.mxu1 %v2940_v61  ;;  %v9332_v60 = vrot.slane %v9328_v56, %v9212_v46  ;;  %v2548_v61 = vpop.f32.mrf.mxu0  ;;  %v3005_v41 = vld [vmem:[%s10216_s8 + $0x5c8] sm:$0xff] }
 0x89d   :  { %7579 = vmatpush3.msra.mxu0 %v2892_v62  ;;  %7617 = vmatpush3.msra.mxu1 %v2924_v63  ;;  %v9338_v62 = vrot.slane %v9328_v56, %v9215_v47  ;;  %v2399_v63 = vadd.f32 %v9293_v14, %v2105_v28  ;;  %v2976_v28 = vld [vmem:[%s10216_s8 + $0x4e0] sm:$0xff] }
 0x89e   :  { %7580 = vmatprep.subr.mxu0 %v2907_v0  ;;  %7618 = vmatprep.subr.mxu1 %v2939_v1  ;;  %v2476_v0 = vadd.f32 %v2475_v19, %v2113_v29  ;;  %v2809_v1 = vmax.f32 %v2401_v54, 0.0  ;;  %v3009_v19 = vld [vmem:[%s10216_s8 + $0x5e8] sm:$0xff]  ;;  %v3008_v29 = vld [vmem:[%s10216_s8 + $0x5e0] sm:$0xff] }
 0x89f   :  { %7581 = vmatpush3.msra.mxu0 %v2891_v2  ;;  %7619 = vmatpush3.msra.mxu1 %v2923_v3  ;;  %v2811_v2 = vmax.f32 %v2478_v23, 0.0  ;;  %v2625_v3 = vpop.f32.mrf.mxu1  ;;  %v2808_v14 = vmax.f32 %v2399_v63, 0.0  ;;  %v2956_v54 = vld [vmem:[%s10216_s8 + $0x440] sm:$0xff]  ;;  %v2986_v63 = vld [vmem:[%s10216_s8 + $0x530] sm:$0xff] }
 0x8a0   :  { %7582 = vmatprep.subr.mxu0 %v2906_v4  ;;  %7620 = vmatprep.subr.mxu1 %v2938_v7  ;;  %v2963_v4 = vld [vmem:[%s10216_s8 + $0x478] sm:$0xff]  ;;  %v2988_v23 = vld [vmem:[%s10216_s8 + $0x540] sm:$0xff] }
 0x8a1   :  { %7583 = vmatpush3.msra.mxu0 %v2890_v8  ;;  %7621 = vmatpush3.msra.mxu1 %v2922_v9  ;;  %v2995_v7 = vld [vmem:[%s10216_s8 + $0x578] sm:$0xff]  ;;  %v2978_v8 = vld [vmem:[%s10216_s8 + $0x4f0] sm:$0xff] }
 0x8a2   :  { %7584 = vmatprep.subr.mxu0 %v2905_v10  ;;  %7622 = vmatprep.subr.mxu1 %v2937_v11  ;;  %v3010_v9 = vld [vmem:[%s10216_s8 + $0x5f0] sm:$0xff]  ;;  %v2549_v10 = vadd.f32 %v2548_v61, %v9332_v60 }
 0x8a3   :  { %7585 = vmatpush3.msra.mxu0 %v2889_v13  ;;  %7623 = vmatpush3.msra.mxu1 %v2921_v20  ;;  %v2962_v11 = vld [vmem:[%s10216_s8 + $0x470] sm:$0xff]  ;;  %v2626_v20 = vadd.f32 %v2625_v3, %v9338_v62  ;;  %v2985_v3 = vld [vmem:[%s10216_s8 + $0x528] sm:$0xff] }
 0x8a4   :  { %7586 = vmatprep.subr.mxu0 %v2904_v15  ;;  %7624 = vmatprep.subr.mxu1 %v2936_v16  ;;  %v2994_v13 = vld [vmem:[%s10216_s8 + $0x570] sm:$0xff]  ;;  %v2810_v15 = vmax.f32 %v2476_v0, 0.0  ;;  %v2977_v16 = vld [vmem:[%s10216_s8 + $0x4e8] sm:$0xff] }
 0x8a5   :  { %7587 = vmatpush3.msra.mxu0 %v2888_v42  ;;  %7625 = vmatpush3.msra.mxu1 %v2920_v22  ;;  %v2961_v42 = vld [vmem:[%s10216_s8 + $0x468] sm:$0xff]  ;;  %v2797_v22 = vmax.f32 %v2549_v10, 0.0  ;;  %v2954_v61 = vld [vmem:[%s10216_s8 + $0x430] sm:$0xff]  ;;  %v2952_v10 = vld [vmem:[%s10216_s8 + $0x420] sm:$0xff] }
 0x8a6   :  { %7588 = vmatprep.subr.mxu0 %v2903_v26  ;;  %7626 = vmatprep.subr.mxu1 %v2935_v27  ;;  %v2993_v26 = vld [vmem:[%s10216_s8 + $0x568] sm:$0xff]  ;;  %v2799_v27 = vmax.f32 %v2626_v20, 0.0  ;;  %v2999_v20 = vld [vmem:[%s10216_s8 + $0x598] sm:$0xff] }
 0x8a7   :  { %7589 = vmatpush3.msra.mxu0 %v2887_v36  ;;  %7627 = vmatpush3.msra.mxu1 %v2919_v30  ;;  %v2960_v36 = vld [vmem:[%s10216_s8 + $0x460] sm:$0xff]  ;;  %v2969_v0 = vld [vmem:[%s10216_s8 + $0x4a8] sm:$0xff] }
 0x8a8   :  { %7590 = vmatprep.subr.mxu0 %v2902_v32  ;;  %7628 = vmatprep.subr.mxu1 %v2934_v33  ;;  %v2992_v30 = vld [vmem:[%s10216_s8 + $0x560] sm:$0xff]  ;;  %v3007_v32 = vld [vmem:[%s10216_s8 + $0x5d8] sm:$0xff] }
 0x8a9   :  { %7591 = vmatpush3.msra.mxu0 %v2886_v35  ;;  %7629 = vmatpush3.msra.mxu1 %v2918_v45  ;;  %v2959_v33 = vld [vmem:[%s10216_s8 + $0x458] sm:$0xff]  ;;  %v2974_v35 = vld [vmem:[%s10216_s8 + $0x4d0] sm:$0xff] }
 0x8aa   :  { %7592 = vmatprep.subr.mxu0 %v2901_v37  ;;  %7630 = vmatprep.subr.mxu1 %v2933_v39  ;;  %v3006_v45 = vld [vmem:[%s10216_s8 + $0x5d0] sm:$0xff] }
 0x8ab   :  { %7593 = vmatpush3.msra.mxu0 %v2885_v48  ;;  %7631 = vmatpush3.msra.mxu1 %v2917_v50  ;;  %v2958_v37 = vld [vmem:[%s10216_s8 + $0x450] sm:$0xff]  ;;  %v2957_v48 = vld [vmem:[%s10216_s8 + $0x448] sm:$0xff] }
 0x8ac   :  { %7594 = vmatprep.subr.mxu0 %v2900_v52  ;;  %7632 = vmatprep.subr.mxu1 %v2932_v53  ;;  %v2990_v39 = vld [vmem:[%s10216_s8 + $0x550] sm:$0xff]  ;;  %v2989_v50 = vld [vmem:[%s10216_s8 + $0x548] sm:$0xff]  ;;  %v2972_v52 = vld [vmem:[%s10216_s8 + $0x4c0] sm:$0xff] }
 0x8ad   :  { %7595 = vmatpush3.msra.mxu0 %v2884_v24  ;;  %7633 = vmatpush3.msra.mxu1 %v2916_v38  ;;  %v3004_v53 = vld [vmem:[%s10216_s8 + $0x5c0] sm:$0xff]  ;;  %v2971_v24 = vld [vmem:[%s10216_s8 + $0x4b8] sm:$0xff] }
 0x8ae   :  { %3298 = vmatmul.mubr.f32.vlgmr.msra.gmra.mxu0 %v2792_v58  ;;  %3373 = vmatmul.mubr.f32.vlgmr.msra.gmra.mxu1 %v2794_v59  ;;  %v3003_v38 = vld [vmem:[%s10216_s8 + $0x5b8] sm:$0xff] }
 0x8af   :  { %7640 = vmatprep.subr.mxu0 %v2979_v17  ;;  %7678 = vmatprep.subr.mxu1 %v3011_v18  ;;  %v2955_v58 = vld [vmem:[%s10216_s8 + $0x438] sm:$0xff]  ;;  %v2970_v17 = vld [vmem:[%s10216_s8 + $0x4b0] sm:$0xff] }
 0x8b0   :  { %3302 = vmatprep.mubr.f32.mxu0 %v2809_v1  ;;  %3377 = vmatprep.mubr.f32.mxu1 %v2811_v2  ;;  %v2987_v59 = vld [vmem:[%s10216_s8 + $0x538] sm:$0xff]  ;;  %v3002_v18 = vld [vmem:[%s10216_s8 + $0x5b0] sm:$0xff]  ;;  %v3001_v1 = vld [vmem:[%s10216_s8 + $0x5a8] sm:$0xff] }
 0x8b1   :  { %7641 = vmatpush3.msra.mxu0 %v2963_v4  ;;  %7679 = vmatpush3.msra.mxu1 %v2995_v7  ;;  %v2953_v2 = vld [vmem:[%s10216_s8 + $0x428] sm:$0xff]  ;;  %v9385_v4 = vpop.f32.mrf.mxu0  ;;  %v2968_v7 = vld [vmem:[%s10216_s8 + $0x4a0] sm:$0xff] }
 0x8b2   :  { %7642 = vmatprep.subr.mxu0 %v2978_v8  ;;  %7680 = vmatprep.subr.mxu1 %v3010_v9  ;;  %v3000_v8 = vld [vmem:[%s10216_s8 + $0x5a0] sm:$0xff]  ;;  %v2629_v9 = vpop.f32.mrf.mxu1 }
 0x8b3   :  { %7643 = vmatpush3.msra.mxu0 %v2962_v11  ;;  %7681 = vmatpush3.msra.mxu1 %v2994_v13  ;;  %v2984_v11 = vld [vmem:[%s10216_s8 + $0x520] sm:$0xff]  ;;  %v2967_v13 = vld [vmem:[%s10216_s8 + $0x498] sm:$0xff] }
 0x8b4   :  { %3303 = vmatmul.mubr.f32.gmra.mxu0 %v2808_v14  ;;  %3378 = vmatmul.mubr.f32.gmra.mxu1 %v2810_v15  ;;  %v2121_v14 = vrot.slane %v9328_v56, %v9203_v43  ;;  %v2129_v15 = vrot.slane %v9328_v56, %v9206_v44 }
 0x8b5   :  { %7644 = vmatprep.subr.mxu0 %v2977_v16  ;;  %7682 = vmatprep.subr.mxu1 %v3009_v19  ;;  %v2951_v16 = vld [vmem:[%s10216_s8 + $0x418] sm:$0xff] }
 0x8b6   :  { %7645 = vmatpush3.msra.mxu0 %v2961_v42  ;;  %3447 = vmatprep.mubr.f32.mxu0 %v2797_v22  ;;  %v2983_v19 = vld [vmem:[%s10216_s8 + $0x518] sm:$0xff]  ;;  %v2554_v42 = vpop.f32.mrf.mxu0  ;;  %v2966_v22 = vld [vmem:[%s10216_s8 + $0x490] sm:$0xff] }
 0x8b7   :  { %7683 = vmatpush3.msra.mxu1 %v2993_v26  ;;  %3522 = vmatprep.mubr.f32.mxu1 %v2799_v27  ;;  %v2998_v26 = vld [vmem:[%s10216_s8 + $0x590] sm:$0xff]  ;;  %v2631_v27 = vpop.f32.mrf.mxu1 }
 0x8b8   :  { %7646 = vmatprep.subr.mxu0 %v2976_v28  ;;  %7684 = vmatprep.subr.mxu1 %v3008_v29  ;;  %v2950_v28 = vld [vmem:[%s10216_s8 + $0x410] sm:$0xff] }
 0x8b9   :  { %7647 = vmatpush3.msra.mxu0 %v2960_v36  ;;  %7685 = vmatpush3.msra.mxu1 %v2992_v30  ;;  %v2982_v29 = vld [vmem:[%s10216_s8 + $0x510] sm:$0xff]  ;;  %v2965_v36 = vld [vmem:[%s10216_s8 + $0x488] sm:$0xff] }
 0x8ba   :  { %7648 = vmatprep.subr.mxu0 %v2975_v31  ;;  %7686 = vmatprep.subr.mxu1 %v3007_v32  ;;  %v2997_v30 = vld [vmem:[%s10216_s8 + $0x588] sm:$0xff]  ;;  %v2547_v31 = vadd.f32 %v9317_v51, %v2121_v14  ;;  %v2624_v32 = vadd.f32 %v9323_v55, %v2129_v15  ;;  %v2632_v51 = vadd.f32 %v2631_v27, %v9338_v62  ;;  %v2948_v55 = vld [vmem:[%s10216_s8 + $0x400] sm:$0xff]  ;;  %v3075_v62 = vld [vmem:[%s10216_s8 + $0x7f8] sm:$0xff] }
 0x8bb   :  { %7649 = vmatpush3.msra.mxu0 %v2959_v33  ;;  %7687 = vmatpush3.msra.mxu1 %v2991_v34  ;;  %v2949_v33 = vld [vmem:[%s10216_s8 + $0x408] sm:$0xff]  ;;  %v3055_v27 = vld [vmem:[%s10216_s8 + $0x758] sm:$0xff] }
 0x8bc   :  { %7650 = vmatprep.subr.mxu0 %v2974_v35  ;;  %7688 = vmatprep.subr.mxu1 %v3006_v45  ;;  %v2981_v34 = vld [vmem:[%s10216_s8 + $0x508] sm:$0xff]  ;;  %v9409_v35 = vpop.f32.mrf.mxu0  ;;  %v2964_v45 = vld [vmem:[%s10216_s8 + $0x480] sm:$0xff] }
 0x8bd   :  { %7651 = vmatpush3.msra.mxu0 %v2958_v37  ;;  %7689 = vmatpush3.msra.mxu1 %v2990_v39  ;;  %v2996_v37 = vld [vmem:[%s10216_s8 + $0x580] sm:$0xff]  ;;  %v2555_v39 = vadd.f32 %v2554_v42, %v9332_v60  ;;  %v3043_v60 = vld [vmem:[%s10216_s8 + $0x6f8] sm:$0xff] }
 0x8be   :  { %7652 = vmatprep.subr.mxu0 %v2973_v40  ;;  %7690 = vmatprep.subr.mxu1 %v3005_v41  ;;  %v9415_v40 = vpop.f32.mrf.mxu1  ;;  %v2980_v41 = vld [vmem:[%s10216_s8 + $0x500] sm:$0xff]  ;;  %v3039_v42 = vld [vmem:[%s10216_s8 + $0x6d8] sm:$0xff] }
 0x8bf   :  { %7653 = vmatpush3.msra.mxu0 %v2957_v48  ;;  %7691 = vmatpush3.msra.mxu1 %v2989_v50  ;;  %v2796_v48 = vmax.f32 %v2547_v31, 0.0  ;;  %v2798_v50 = vmax.f32 %v2624_v32, 0.0  ;;  %v3037_v31 = vld [vmem:[%s10216_s8 + $0x6c8] sm:$0xff] }
 0x8c0   :  { %7654 = vmatprep.subr.mxu0 %v2972_v52  ;;  %7692 = vmatprep.subr.mxu1 %v3004_v53  ;;  %v9421_v52 = vrot.slane %v9328_v56, %v9228_v5  ;;  %v2702_v53 = vpop.f32.mrf.mxu0  ;;  %v3069_v32 = vld [vmem:[%s10216_s8 + $0x7c8] sm:$0xff] }
 0x8c1   :  { %7655 = vmatpush3.msra.mxu0 %v2956_v54  ;;  %7693 = vmatpush3.msra.mxu1 %v2988_v23  ;;  %v9427_v54 = vrot.slane %v9328_v56, %v9231_v6  ;;  %v2553_v23 = vadd.f32 %v9385_v4, %v2121_v14  ;;  %v3040_v14 = vld [vmem:[%s10216_s8 + $0x6e0] sm:$0xff] }
 0x8c2   :  { %7656 = vmatprep.subr.mxu0 %v2971_v24  ;;  %7694 = vmatprep.subr.mxu1 %v3003_v38  ;;  %v2630_v24 = vadd.f32 %v2629_v9, %v2129_v15  ;;  %v2813_v38 = vmax.f32 %v2555_v39, 0.0  ;;  %v3073_v9 = vld [vmem:[%s10216_s8 + $0x7e8] sm:$0xff]  ;;  %v3072_v15 = vld [vmem:[%s10216_s8 + $0x7e0] sm:$0xff] }
 0x8c3   :  { %7657 = vmatpush3.msra.mxu0 %v2955_v58  ;;  %7695 = vmatpush3.msra.mxu1 %v2987_v59  ;;  %v2815_v58 = vmax.f32 %v2632_v51, 0.0  ;;  %v2779_v59 = vpop.f32.mrf.mxu1  ;;  %v2812_v4 = vmax.f32 %v2553_v23, 0.0  ;;  %v3020_v39 = vld [vmem:[%s10216_s8 + $0x640] sm:$0xff]  ;;  %v3050_v23 = vld [vmem:[%s10216_s8 + $0x730] sm:$0xff] }
 0x8c4   :  { %7658 = vmatprep.subr.mxu0 %v2970_v17  ;;  %7696 = vmatprep.subr.mxu1 %v3002_v18  ;;  %v3027_v17 = vld [vmem:[%s10216_s8 + $0x678] sm:$0xff]  ;;  %v3052_v51 = vld [vmem:[%s10216_s8 + $0x740] sm:$0xff] }
 0x8c5   :  { %7659 = vmatpush3.msra.mxu0 %v2954_v61  ;;  %7697 = vmatpush3.msra.mxu1 %v2986_v63  ;;  %v3059_v18 = vld [vmem:[%s10216_s8 + $0x778] sm:$0xff]  ;;  %v3042_v61 = vld [vmem:[%s10216_s8 + $0x6f0] sm:$0xff] }
 0x8c6   :  { %7660 = vmatprep.subr.mxu0 %v2969_v0  ;;  %7698 = vmatprep.subr.mxu1 %v3001_v1  ;;  %v3074_v63 = vld [vmem:[%s10216_s8 + $0x7f0] sm:$0xff]  ;;  %v2703_v0 = vadd.f32 %v2702_v53, %v9421_v52 }
 0x8c7   :  { %7661 = vmatpush3.msra.mxu0 %v2953_v2  ;;  %7699 = vmatpush3.msra.mxu1 %v2985_v3  ;;  %v3026_v1 = vld [vmem:[%s10216_s8 + $0x670] sm:$0xff]  ;;  %v2780_v3 = vadd.f32 %v2779_v59, %v9427_v54  ;;  %v3049_v59 = vld [vmem:[%s10216_s8 + $0x728] sm:$0xff] }
 0x8c8   :  { %7662 = vmatprep.subr.mxu0 %v2968_v7  ;;  %7700 = vmatprep.subr.mxu1 %v3000_v8  ;;  %v3058_v2 = vld [vmem:[%s10216_s8 + $0x770] sm:$0xff]  ;;  %v2814_v7 = vmax.f32 %v2630_v24, 0.0  ;;  %v3041_v8 = vld [vmem:[%s10216_s8 + $0x6e8] sm:$0xff] }
 0x8c9   :  { %7663 = vmatpush3.msra.mxu0 %v2952_v10  ;;  %7701 = vmatpush3.msra.mxu1 %v2984_v11  ;;  %v3025_v10 = vld [vmem:[%s10216_s8 + $0x668] sm:$0xff]  ;;  %v2801_v11 = vmax.f32 %v2703_v0, 0.0  ;;  %v3018_v53 = vld [vmem:[%s10216_s8 + $0x630] sm:$0xff]  ;;  %v3016_v0 = vld [vmem:[%s10216_s8 + $0x620] sm:$0xff] }
 0x8ca   :  { %7664 = vmatprep.subr.mxu0 %v2967_v13  ;;  %7702 = vmatprep.subr.mxu1 %v2999_v20  ;;  %v3057_v13 = vld [vmem:[%s10216_s8 + $0x768] sm:$0xff]  ;;  %v2803_v20 = vmax.f32 %v2780_v3, 0.0  ;;  %v3063_v3 = vld [vmem:[%s10216_s8 + $0x798] sm:$0xff] }
 0x8cb   :  { %7665 = vmatpush3.msra.mxu0 %v2951_v16  ;;  %7703 = vmatpush3.msra.mxu1 %v2983_v19  ;;  %v3024_v16 = vld [vmem:[%s10216_s8 + $0x660] sm:$0xff]  ;;  %v3033_v24 = vld [vmem:[%s10216_s8 + $0x6a8] sm:$0xff] }
 0x8cc   :  { %7666 = vmatprep.subr.mxu0 %v2966_v22  ;;  %7704 = vmatprep.subr.mxu1 %v2998_v26  ;;  %v3056_v19 = vld [vmem:[%s10216_s8 + $0x760] sm:$0xff]  ;;  %v3071_v22 = vld [vmem:[%s10216_s8 + $0x7d8] sm:$0xff] }
 0x8cd   :  { %7667 = vmatpush3.msra.mxu0 %v2950_v28  ;;  %7705 = vmatpush3.msra.mxu1 %v2982_v29  ;;  %v3023_v26 = vld [vmem:[%s10216_s8 + $0x658] sm:$0xff]  ;;  %v3038_v28 = vld [vmem:[%s10216_s8 + $0x6d0] sm:$0xff] }
 0x8ce   :  { %7668 = vmatprep.subr.mxu0 %v2965_v36  ;;  %7706 = vmatprep.subr.mxu1 %v2997_v30  ;;  %v3070_v29 = vld [vmem:[%s10216_s8 + $0x7d0] sm:$0xff] }
 0x8cf   :  { %7669 = vmatpush3.msra.mxu0 %v2949_v33  ;;  %7707 = vmatpush3.msra.mxu1 %v2981_v34  ;;  %v3022_v36 = vld [vmem:[%s10216_s8 + $0x650] sm:$0xff]  ;;  %v3021_v33 = vld [vmem:[%s10216_s8 + $0x648] sm:$0xff] }
 0x8d0   :  { %7670 = vmatprep.subr.mxu0 %v2964_v45  ;;  %7708 = vmatprep.subr.mxu1 %v2996_v37  ;;  %v3054_v30 = vld [vmem:[%s10216_s8 + $0x750] sm:$0xff]  ;;  %v3053_v34 = vld [vmem:[%s10216_s8 + $0x748] sm:$0xff]  ;;  %v3036_v45 = vld [vmem:[%s10216_s8 + $0x6c0] sm:$0xff] }
 0x8d1   :  { %7671 = vmatpush3.msra.mxu0 %v2948_v55  ;;  %7709 = vmatpush3.msra.mxu1 %v2980_v41  ;;  %v3068_v37 = vld [vmem:[%s10216_s8 + $0x7c0] sm:$0xff]  ;;  %v3035_v55 = vld [vmem:[%s10216_s8 + $0x6b8] sm:$0xff] }
 0x8d2   :  { %3448 = vmatmul.mubr.f32.vlgmr.msra.gmra.mxu0 %v2796_v48  ;;  %3523 = vmatmul.mubr.f32.vlgmr.msra.gmra.mxu1 %v2798_v50  ;;  %v3067_v41 = vld [vmem:[%s10216_s8 + $0x7b8] sm:$0xff] }
 0x8d3   :  { %7716 = vmatprep.subr.mxu0 %v3043_v60  ;;  %7754 = vmatprep.subr.mxu1 %v3075_v62  ;;  %v3019_v48 = vld [vmem:[%s10216_s8 + $0x638] sm:$0xff]  ;;  %v3034_v60 = vld [vmem:[%s10216_s8 + $0x6b0] sm:$0xff] }
 0x8d4   :  { %3452 = vmatprep.mubr.f32.mxu0 %v2813_v38  ;;  %3527 = vmatprep.mubr.f32.mxu1 %v2815_v58  ;;  %v3051_v50 = vld [vmem:[%s10216_s8 + $0x738] sm:$0xff]  ;;  %v3066_v62 = vld [vmem:[%s10216_s8 + $0x7b0] sm:$0xff]  ;;  %v3065_v38 = vld [vmem:[%s10216_s8 + $0x7a8] sm:$0xff] }
 0x8d5   :  { %7717 = vmatpush3.msra.mxu0 %v3027_v17  ;;  %7755 = vmatpush3.msra.mxu1 %v3059_v18  ;;  %v3017_v58 = vld [vmem:[%s10216_s8 + $0x628] sm:$0xff]  ;;  %v3032_v17 = vld [vmem:[%s10216_s8 + $0x6a0] sm:$0xff] }
 0x8d6   :  { %7718 = vmatprep.subr.mxu0 %v3042_v61  ;;  %7756 = vmatprep.subr.mxu1 %v3074_v63  ;;  %v3064_v18 = vld [vmem:[%s10216_s8 + $0x7a0] sm:$0xff]  ;;  %v2706_v61 = vpop.f32.mrf.mxu0  ;;  %v2783_v63 = vpop.f32.mrf.mxu1 }
 0x8d7   :  { %7719 = vmatpush3.msra.mxu0 %v3026_v1  ;;  %7757 = vmatpush3.msra.mxu1 %v3058_v2  ;;  %v3048_v1 = vld [vmem:[%s10216_s8 + $0x720] sm:$0xff]  ;;  %v3031_v2 = vld [vmem:[%s10216_s8 + $0x698] sm:$0xff] }
 0x8d8   :  { %3453 = vmatmul.mubr.f32.gmra.mxu0 %v2812_v4  ;;  %3528 = vmatmul.mubr.f32.gmra.mxu1 %v2814_v7  ;;  %v2137_v4 = vrot.slane %v9328_v56, %v9286_v12  ;;  %v2145_v7 = vrot.slane %v9328_v56, %v9289_v21  ;;  %v3029_v56 = vld [vmem:[%s10216_s8 + $0x688] sm:$0xff] }
 0x8d9   :  { %7720 = vmatprep.subr.mxu0 %v3041_v8  ;;  %7758 = vmatprep.subr.mxu1 %v3073_v9  ;;  %v3015_v8 = vld [vmem:[%s10216_s8 + $0x618] sm:$0xff] }
 0x8da   :  { %7721 = vmatpush3.msra.mxu0 %v3025_v10  ;;  %3597 = vmatprep.mubr.f32.mxu0 %v2801_v11  ;;  %v3047_v9 = vld [vmem:[%s10216_s8 + $0x718] sm:$0xff]  ;;  %v3030_v10 = vld [vmem:[%s10216_s8 + $0x690] sm:$0xff] }
 0x8db   :  { %7759 = vmatpush3.msra.mxu1 %v3057_v13  ;;  %3672 = vmatprep.mubr.f32.mxu1 %v2803_v20  ;;  %v3062_v11 = vld [vmem:[%s10216_s8 + $0x790] sm:$0xff]  ;;  %v2708_v13 = vpop.f32.mrf.mxu0  ;;  %v2785_v20 = vpop.f32.mrf.mxu1 }
 0x8dc   :  { %7722 = vmatprep.subr.mxu0 %v3040_v14  ;;  %7760 = vmatprep.subr.mxu1 %v3072_v15  ;;  %v3014_v14 = vld [vmem:[%s10216_s8 + $0x610] sm:$0xff] }
 0x8dd   :  { %7723 = vmatpush3.msra.mxu0 %v3024_v16  ;;  %7761 = vmatpush3.msra.mxu1 %v3056_v19  ;;  %v3046_v15 = vld [vmem:[%s10216_s8 + $0x710] sm:$0xff]  ;;  %v3061_v16 = vld [vmem:[%s10216_s8 + $0x788] sm:$0xff]  ;;  %v2701_v19 = vadd.f32 %v9409_v35, %v2137_v4 }
 0x8de   :  { %7724 = vmatprep.subr.mxu0 %v3039_v42  ;;  %7762 = vmatprep.subr.mxu1 %v3071_v22  ;;  %v2778_v42 = vadd.f32 %v9415_v40, %v2145_v7  ;;  %v3013_v22 = vld [vmem:[%s10216_s8 + $0x608] sm:$0xff] }
 0x8df   :  { %7725 = vmatpush3.msra.mxu0 %v3023_v26  ;;  %7763 = vmatpush3.msra.mxu1 %v3055_v27  ;;  %v3045_v26 = vld [vmem:[%s10216_s8 + $0x708] sm:$0xff]  ;;  %v2709_v27 = vadd.f32 %v2708_v13, %v9421_v52  ;;  %v2800_v35 = vmax.f32 %v2701_v19, 0.0 }
 0x8e0   :  { %7726 = vmatprep.subr.mxu0 %v3038_v28  ;;  %7764 = vmatprep.subr.mxu1 %v3070_v29  ;;  %v2786_v28 = vadd.f32 %v2785_v20, %v9427_v54  ;;  %v3028_v29 = vld [vmem:[%s10216_s8 + $0x680] sm:$0xff]  ;;  %v2802_v40 = vmax.f32 %v2778_v42, 0.0 }
 0x8e1   :  { %7727 = vmatpush3.msra.mxu0 %v3022_v36  ;;  %7765 = vmatpush3.msra.mxu1 %v3054_v30  ;;  %v3060_v36 = vld [vmem:[%s10216_s8 + $0x780] sm:$0xff] }
 0x8e2   :  { %7728 = vmatprep.subr.mxu0 %v3037_v31  ;;  %7766 = vmatprep.subr.mxu1 %v3069_v32  ;;  %v3012_v30 = vld [vmem:[%s10216_s8 + $0x600] sm:$0xff]  ;;  %v2707_v32 = vadd.f32 %v2706_v61, %v2137_v4  ;;  %v2819_v52 = vmax.f32 %v2786_v28, 0.0 }
 0x8e3   :  { %7729 = vmatpush3.msra.mxu0 %v3021_v33  ;;  %7767 = vmatpush3.msra.mxu1 %v3053_v34  ;;  %v3044_v31 = vld [vmem:[%s10216_s8 + $0x700] sm:$0xff]  ;;  %v2784_v33 = vadd.f32 %v2783_v63, %v2145_v7  ;;  %v2817_v34 = vmax.f32 %v2709_v27, 0.0 }
 0x8e4   :  { %7730 = vmatprep.subr.mxu0 %v3036_v45  ;;  %7768 = vmatprep.subr.mxu1 %v3068_v37  ;;  %v2816_v54 = vmax.f32 %v2707_v32, 0.0 }
 0x8e5   :  { %7731 = vmatpush3.msra.mxu0 %v3020_v39  ;;  %7769 = vmatpush3.msra.mxu1 %v3052_v51  ;;  %v2818_v45 = vmax.f32 %v2784_v33, 0.0 }
 0x8e6   :  { %7732 = vmatprep.subr.mxu0 %v3035_v55  ;;  %7770 = vmatprep.subr.mxu1 %v3067_v41 }
 0x8e7   :  { %7733 = vmatpush3.msra.mxu0 %v3019_v48  ;;  %7771 = vmatpush3.msra.mxu1 %v3051_v50 }
 0x8e8   :  { %7734 = vmatprep.subr.mxu0 %v3034_v60  ;;  %7772 = vmatprep.subr.mxu1 %v3066_v62 }
 0x8e9   :  { %7735 = vmatpush3.msra.mxu0 %v3018_v53  ;;  %7773 = vmatpush3.msra.mxu1 %v3050_v23 }
 0x8ea   :  { %7736 = vmatprep.subr.mxu0 %v3033_v24  ;;  %7774 = vmatprep.subr.mxu1 %v3065_v38 }
 0x8eb   :  { %7737 = vmatpush3.msra.mxu0 %v3017_v58  ;;  %7775 = vmatpush3.msra.mxu1 %v3049_v59 }
 0x8ec   :  { %7738 = vmatprep.subr.mxu0 %v3032_v17  ;;  %7776 = vmatprep.subr.mxu1 %v3064_v18  ;;  %v7366_v18 = vld [vmem:[%s10218_s19] ss:$0 sm:$0xff] }
 0x8ed   :  { %7739 = vmatpush3.msra.mxu0 %v3016_v0  ;;  %7777 = vmatpush3.msra.mxu1 %v3048_v1 }
 0x8ee   :  { %7740 = vmatprep.subr.mxu0 %v3031_v2  ;;  %7778 = vmatprep.subr.mxu1 %v3063_v3 }
 0x8ef   :  { %7741 = vmatpush3.msra.mxu0 %v3015_v8  ;;  %7779 = vmatpush3.msra.mxu1 %v3047_v9 }
 0x8f0   :  { %7742 = vmatprep.subr.mxu0 %v3030_v10  ;;  %7780 = vmatprep.subr.mxu1 %v3062_v11 }
 0x8f1   :  { %7743 = vmatpush3.msra.mxu0 %v3014_v14  ;;  %7781 = vmatpush3.msra.mxu1 %v3046_v15 }
 0x8f2   :  { %7744 = vmatprep.subr.mxu0 %v3029_v56  ;;  %7782 = vmatprep.subr.mxu1 %v3061_v16 }
 0x8f3   :  { %7745 = vmatpush3.msra.mxu0 %v3013_v22  ;;  %7783 = vmatpush3.msra.mxu1 %v3045_v26 }
 0x8f4   :  { %7746 = vmatprep.subr.mxu0 %v3028_v29  ;;  %7784 = vmatprep.subr.mxu1 %v3060_v36 }
 0x8f5   :  { %7747 = vmatpush3.msra.mxu0 %v3012_v30  ;;  %7785 = vmatpush3.msra.mxu1 %v3044_v31 }
 0x8f6   :  { %3598 = vmatmul.mubr.f32.vlgmr.msra.gmra.mxu0 %v2800_v35  ;;  %3673 = vmatmul.mubr.f32.vlgmr.msra.gmra.mxu1 %v2802_v40 }
 0x8f7   :  { %3602 = vmatprep.mubr.f32.mxu0 %v2817_v34  ;;  %3677 = vmatprep.mubr.f32.mxu1 %v2819_v52 }
 0x8fa   :  { %3603 = vmatmul.mubr.f32.gmra.mxu0 %v2816_v54  ;;  %3678 = vmatmul.mubr.f32.gmra.mxu1 %v2818_v45 }
 0x94b   :  { %v7520_v37 = vpop.f32.mrf.mxu0  ;;  %v7558_v39 = vpop.f32.mrf.mxu1 }
 0x94d   :  { %v7521_v51 = vpop.f32.mrf.mxu0  ;;  %v7559_v55 = vpop.f32.mrf.mxu1 }
 0x94e   :  { %v7522_v17 = vadd.f32 %v7521_v51, %v7520_v37  ;;  %v7560_v4 = vadd.f32 %v7559_v55, %v7558_v39 }
 0x950   :  { %v3150_v1 = vadd.f32 %v7522_v17, %v7366_v18 }
 0x951   :  { %v7523_v41 = vpop.f32.mrf.mxu0  ;;  %v7561_v48 = vpop.f32.mrf.mxu1 }
 0x952   :  { %v3225_v9 = vadd.f32 %v7560_v4, %v3150_v1 }
 0x953   :  { %v7524_v50 = vpop.f32.mrf.mxu0  ;;  %v7562_v60 = vpop.f32.mrf.mxu1 }
 0x954   :  { %v7525_v2 = vadd.f32 %v7524_v50, %v7523_v41  ;;  %v7563_v13 = vadd.f32 %v7562_v60, %v7561_v48 }
 0x956   :  { %v3155_v10 = vadd.f32 %v7525_v2, %v7366_v18 }
 0x958   :  { %v3230_v56 = vadd.f32 %v7563_v13, %v3155_v10  ;;  %v3823_v10 = vld [vmem:[%s10220_s30 + $0x10] sm:$0xff]  ;;  %v3822_v13 = vld [vmem:[%s10220_s30 + $0x8] sm:$0xff] }
 0x96e   :  { %v7596_v62 = vpop.f32.mrf.mxu0  ;;  %v7634_v53 = vpop.f32.mrf.mxu1 }
 0x970   :  { %v7597_v23 = vpop.f32.mrf.mxu0  ;;  %v7635_v24 = vpop.f32.mrf.mxu1 }
 0x971   :  { %v7598_v7 = vadd.f32 %v7597_v23, %v7596_v62  ;;  %v7636_v16 = vadd.f32 %v7635_v24, %v7634_v53 }
 0x973   :  { %v3300_v20 = vadd.f32 %v7598_v7, %v3225_v9  ;;  %v3732_v7 = vld [vmem:[%s10219_s24 + $0x18] sm:$0xff]  ;;  %v3731_v9 = vld [vmem:[%s10219_s24 + $0x10] sm:$0xff] }
 0x974   :  { %v7599_v38 = vpop.f32.mrf.mxu0  ;;  %v7637_v58 = vpop.f32.mrf.mxu1  ;;  %8288 = vmatprep.subr.mxu0 %v3732_v7 }
 0x975   :  { %v3375_v22 = vadd.f32 %v7636_v16, %v3300_v20  ;;  %8289 = vmatpush3.msra.mxu0 %v3732_v7  ;;  %v3729_v20 = vld [vmem:[%s10219_s24] sm:$0xff] }
 0x976   :  { %v7600_v59 = vpop.f32.mrf.mxu0  ;;  %v7638_v61 = vpop.f32.mrf.mxu1  ;;  %8290 = vmatprep.subr.mxu0 %v3731_v9 }
 0x977   :  { %v7601_v14 = vadd.f32 %v7600_v59, %v7599_v38  ;;  %v7639_v28 = vadd.f32 %v7638_v61, %v7637_v58  ;;  %8291 = vmatpush3.msra.mxu0 %v3731_v9 }
 0x979   :  { %v3305_v26 = vadd.f32 %v7601_v14, %v3230_v56  ;;  %v3821_v14 = vld [vmem:[%s10220_s30] sm:$0xff] }
 0x97b   :  { %v3380_v35 = vadd.f32 %v7639_v28, %v3305_v26  ;;  %v7367_v28 = vld [vmem:[%s10222_s12] ss:$0 sm:$0xff] }
 0x992   :  { %v7672_v63 = vpop.f32.mrf.mxu0  ;;  %v7710_v0 = vpop.f32.mrf.mxu1 }
 0x994   :  { %v7673_v3 = vpop.f32.mrf.mxu0  ;;  %v7711_v8 = vpop.f32.mrf.mxu1 }
 0x995   :  { %v7674_v19 = vadd.f32 %v7673_v3, %v7672_v63  ;;  %v7712_v40 = vadd.f32 %v7711_v8, %v7710_v0  ;;  %v3824_v8 = vld [vmem:[%s10220_s30 + $0x18] sm:$0xff] }
 0x996   :  { %8299 = vmatprep.subr.mxu1 %v3824_v8 }
 0x997   :  { %v3450_v29 = vadd.f32 %v7674_v19, %v3375_v22  ;;  %8300 = vmatpush3.msra.mxu1 %v3824_v8 }
 0x998   :  { %v7675_v11 = vpop.f32.mrf.mxu0  ;;  %v7713_v15 = vpop.f32.mrf.mxu1  ;;  %8301 = vmatprep.subr.mxu1 %v3823_v10 }
 0x999   :  { %v3525_v34 = vadd.f32 %v7712_v40, %v3450_v29  ;;  %8302 = vmatpush3.msra.mxu1 %v3823_v10 }
 0x99a   :  { %v7676_v42 = vpop.f32.mrf.mxu0  ;;  %v7714_v27 = vpop.f32.mrf.mxu1  ;;  %8303 = vmatprep.subr.mxu1 %v3822_v13 }
 0x99b   :  { %v7677_v36 = vadd.f32 %v7676_v42, %v7675_v11  ;;  %v7715_v39 = vadd.f32 %v7714_v27, %v7713_v15  ;;  %v3730_v11 = vld [vmem:[%s10219_s24 + $0x8] sm:$0xff]  ;;  %8304 = vmatpush3.msra.mxu1 %v3822_v13  ;;  %v3910_v15 = vld [vmem:[%s10221_s6 + $0x18] sm:$0xff] }
 0x99c   :  { %8292 = vmatprep.subr.mxu0 %v3730_v11  ;;  %8305 = vmatprep.subr.mxu1 %v3821_v14 }
 0x99d   :  { %v3455_v52 = vadd.f32 %v7677_v36, %v3380_v35  ;;  %8293 = vmatpush3.msra.mxu0 %v3730_v11  ;;  %8306 = vmatpush3.msra.mxu1 %v3821_v14  ;;  %v7368_v36 = vld [vmem:[%s10223_s27] ss:$0 sm:$0xff] }
 0x99e   :  { %8294 = vmatprep.subr.mxu0 %v3729_v20  ;;  %8321 = vmatprep.subr.mxu1 %v8608_v25 }
 0x99f   :  { %v3530_v50 = vadd.f32 %v7715_v39, %v3455_v52  ;;  %8295 = vmatpush3.msra.mxu0 %v3729_v20  ;;  %v3908_v52 = vld [vmem:[%s10221_s6 + $0x8] sm:$0xff]  ;;  %v7369_v39 = vld [vmem:[%s10224_s15] ss:$0 sm:$0xff] }
 0x9a0   :  { %8310 = vmatprep.subr.mxu0 %v3910_v15 }
 0x9b6   :  { %v7748_v30 = vpop.f32.mrf.mxu0  ;;  %v7786_v31 = vpop.f32.mrf.mxu1 }
 0x9b8   :  { %v7749_v32 = vpop.f32.mrf.mxu0  ;;  %v7787_v33 = vpop.f32.mrf.mxu1 }
 0x9b9   :  { %v7750_v54 = vadd.f32 %v7749_v32, %v7748_v30  ;;  %v7788_v55 = vadd.f32 %v7787_v33, %v7786_v31 }
 0x9ba   :  { %v7751_v45 = vpop.f32.mrf.mxu0  ;;  %v7789_v37 = vpop.f32.mrf.mxu1 }
 0x9bb   :  { %v3600_v51 = vadd.f32 %v7750_v54, %v3525_v34  ;;  %v3909_v34 = vld [vmem:[%s10221_s6 + $0x10] sm:$0xff]  ;;  %v3907_v54 = vld [vmem:[%s10221_s6] sm:$0xff] }
 0x9bc   :  { %v7752_v41 = vpop.f32.mrf.mxu0  ;;  %v7790_v48 = vpop.f32.mrf.mxu1 }
 0x9bd   :  { %v3675_v60 = vadd.f32 %v7788_v55, %v3600_v51  ;;  %v7753_v62 = vadd.f32 %v7752_v41, %v7751_v45  ;;  %v7791_v23 = vadd.f32 %v7790_v48, %v7789_v37  ;;  %v7372_v51 = vld [vmem:[%s10225_s16] ss:$0 sm:$0xff] }
 0x9bf   :  { %v3605_v53 = vadd.f32 %v7753_v62, %v3530_v50  ;;  %v3683_v24 = vadd.f32 %v3675_v60, %v9038_v49  ;;  %v7375_v60 = vld [vmem:[%s10226_s18] ss:$0 sm:$0xff] }
 0x9c1   :  { %v3680_v38 = vadd.f32 %v7791_v23, %v3605_v53  ;;  %v3687_v58 = vsel %vm267_vm1, %v3683_v24, 0.0 }
 0x9c2   :  { %3688 = vadd.xlane.f32.xlu1 %v3687_v58 }
 0x9c3   :  { %v3684_v59 = vadd.f32 %v3680_v38, %v9050_v57 }
 0x9c5   :  { %v3690_v17 = vsel %vm267_vm1, %v3684_v59, 0.0 }
 0x9c6   :  { %3691 = vadd.xlane.f32.xlu0 %v3690_v17 }
 0xa4b   :  { %v3689_v18 = vpop.xlane.xlu1 %3688 }
 0xa4c   :  { %v3693_v61 = vmul.f32 0.03125, %v3689_v18 }
 0xa4e   :  { %v3695_v63 = vsub.f32 %v3683_v24, %v3693_v61 }
 0xa4f   :  { %v3692_v0 = vpop.xlane.xlu0 %3691 }
 0xa50   :  { %v3694_v1 = vmul.f32 0.03125, %v3692_v0  ;;  %v3697_v49 = vmul.f32 %v3695_v63, %v3695_v63 }
 0xa52   :  { %v3696_v2 = vsub.f32 %v3684_v59, %v3694_v1  ;;  %v3699_v3 = vsel %vm267_vm1, %v3697_v49, 0.0 }
 0xa53   :  { %3700 = vadd.xlane.f32.xlu1 %v3699_v3 }
 0xa54   :  { %v3698_v4 = vmul.f32 %v3696_v2, %v3696_v2 }
 0xa56   :  { %v3702_v57 = vsel %vm267_vm1, %v3698_v4, 0.0 }
 0xa57   :  { %3703 = vadd.xlane.f32.xlu0 %v3702_v57 }
 0xadc   :  { %v3701_v56 = vpop.xlane.xlu1 %3700 }
 0xadd   :  { %v3705_v16 = vmul.f32 0.03125, %v3701_v56 }
 0xadf   :  { %v3707_v19 = vadd.f32 1e-05, %v3705_v16 }
 0xae0   :  { %v3704_v42 = vpop.xlane.xlu0 %3703 }
 0xae1   :  { %8506 = vrsqrt.f32 %v3707_v19  ;;  %v3706_v22 = vmul.f32 0.03125, %v3704_v42 }
 0xae3   :  { %v3708_v26 = vadd.f32 1e-05, %v3706_v22 }
 0xae5   :  { %8508 = vrsqrt.f32 %v3708_v26 }
 0xaee   :  { %v8507_v27 = vpop.eup %8506 }
 0xaef   :  { %v3711_v29 = vmul.f32 %v8507_v27, %v3695_v63 }
 0xaf1   :  { %v3719_v30 = vmul.f32 %v7367_v28, %v3711_v29 }
 0xaf2   :  { %v8509_v31 = vpop.eup %8508 }
 0xaf3   :  { %v3712_v35 = vmul.f32 %v8509_v31, %v3696_v2  ;;  %v9521_v40 = vadd.f32 %v7368_v36, %v3719_v30 }
 0xaf5   :  { %v3720_v32 = vmul.f32 %v7367_v28, %v3712_v35  ;;  %8296 = vmatprep.mubr.msk.f32.mxu0 %vm267_vm1, %v9521_v40  ;;  %8307 = vmatprep.mubr.msk.f32.mxu1 %vm267_vm1, %v9521_v40 }
 0xaf7   :  { %v9527_v33 = vadd.f32 %v7368_v36, %v3720_v32 }
 0xaf9   :  { %8297 = vmatmul.mubr.msk.f32.vlgmr.msra.gmra.mxu0 %vm267_vm1, %v9527_v33  ;;  %8308 = vmatmul.mubr.msk.f32.vlgmr.msra.gmra.mxu1 %vm267_vm1, %v9527_v33 }
 0xafa   :  { %8311 = vmatpush3.msra.mxu0 %v3910_v15  ;;  %8318 = vmatprep.mubr.msk.f32.mxu0 %vm267_vm1, %v9521_v40 }
 0xafb   :  { %8312 = vmatprep.subr.mxu0 %v3909_v34  ;;  %8323 = vmatprep.mubr.msk.f32.mxu1 %vm8609_vm2, %v8608_v25 }
 0xafc   :  { %8313 = vmatpush3.msra.mxu0 %v3909_v34 }
 0xafd   :  { %8314 = vmatprep.subr.mxu0 %v3908_v52 }
 0xafe   :  { %8315 = vmatpush3.msra.mxu0 %v3908_v52 }
 0xaff   :  { %8316 = vmatprep.subr.mxu0 %v3907_v54 }
 0xb00   :  { %8317 = vmatpush3.msra.mxu0 %v3907_v54 }
 0xb01   :  { %8319 = vmatmul.mubr.msk.f32.vlgmr.msra.gmra.mxu0 %vm267_vm1, %v9527_v33  ;;  %8326 = vmatprep.subr.mxu0 %v8608_v25 }
 0xb02   :  { %8328 = vmatprep.mubr.msk.f32.mxu0 %vm8609_vm2, %v8608_v25 }
 0xbb9   :  { %v8298_v45 = vpop.f32.mrf.mxu0  ;;  %v8309_v37 = vpop.f32.mrf.mxu1 }
 0xbba   :  { %v3904_v38 = vadd.f32 %v8309_v37, %v7372_v51  ;;  %v3818_v58 = vadd.f32 %v8298_v45, %v7369_v39 }
 0xbbb   :  { %v3812_v55 = vpop.f32.mrf.mxu0  ;;  %v3898_v41 = vpop.f32.mrf.mxu1 }
 0xbbc   :  { %v3813_v48 = vadd.f32 %v7369_v39, %v3812_v55  ;;  %v3899_v50 = vadd.f32 %v7372_v51, %v3898_v41 }
 0xbbe   :  { %4157 = vrot.lane.b32.xlu1 %v3899_v50, %s8611_s5  ;;  %8322 = vmatpush3.xpose.msk.msra.mxu1 %vm521_vm3, %v3899_v50 }
 0xbbf   :  { %4155 = vrot.lane.b32.xlu0 %v3813_v48, %s8611_s5  ;;  %8331 = vmatprep.subr.mxu1 %v8608_v25 }
 0xbc1   :  { %v8320_v62 = vpop.f32.mrf.mxu0  ;;  %8324 = vmatmul.mubr.msk.f32.vlgmr.msra.gmra.mxu1 %vm521_vm3, %v3813_v48 }
 0xbc2   :  { %v9553_v53 = vadd.f32 %v8320_v62, %v7375_v60  ;;  %4329 = vrot.lane.b32.xlu1 %v3899_v50, %s8610_s0  ;;  %8333 = vmatprep.mubr.msk.f32.mxu1 %vm8609_vm2, %v8608_v25 }
 0xbc3   :  { %v3984_v23 = vpop.f32.mrf.mxu0  ;;  %4500 = vrot.lane.b32.xlu0 %v3899_v50, %s8612_s9 }
 0xbc4   :  { %v9559_v24 = vadd.f32 %v7375_v60, %v3984_v23 }
 0xbc6   :  { %8327 = vmatpush3.msra.mxu0 %v9559_v24  ;;  %4327 = vrot.lane.b32.xlu1 %v3813_v48, %s8610_s0 }
 0xbc7   :  { %4833 = vrot.lane.b32.xlu0 %v3904_v38, %s8611_s5  ;;  %8336 = vmatprep.subr.mxu0 %v8608_v25 }
 0xbca   :  { %4498 = vrot.lane.b32.xlu1 %v3813_v48, %s8612_s9 }
 0xbcb   :  { %5005 = vrot.lane.b32.xlu0 %v3904_v38, %s8610_s0 }
 0xbce   :  { %4831 = vrot.lane.b32.xlu1 %v3818_v58, %s8611_s5 }
 0xbcf   :  { %5176 = vrot.lane.b32.xlu0 %v3904_v38, %s8612_s9 }
 0xbd2   :  { %5003 = vrot.lane.b32.xlu1 %v3818_v58, %s8610_s0 }
 0xbd6   :  { %5174 = vrot.lane.b32.xlu1 %v3818_v58, %s8612_s9 }
 0xc30   :  { %v4158_v59 = vpop.permute.xlu1 %4157 }
 0xc31   :  { %v4156_v17 = vpop.permute.xlu0 %4155  ;;  %8332 = vmatpush3.xpose.msk.msra.mxu1 %vm521_vm3, %v4158_v59 }
 0xc32   :  { %8341 = vmatprep.subr.mxu1 %v8608_v25 }
 0xc34   :  { %v4330_v18 = vpop.permute.xlu1 %4329  ;;  %8334 = vmatmul.mubr.msk.f32.vlgmr.msra.gmra.mxu1 %vm521_vm3, %v4156_v17 }
 0xc35   :  { %8342 = vmatpush3.xpose.msk.msra.mxu1 %vm521_vm3, %v4330_v18  ;;  %8343 = vmatprep.mubr.msk.f32.mxu1 %vm8609_vm2, %v8608_v25  ;;  %v4501_v61 = vpop.permute.xlu0 %4500 }
 0xc36   :  { %8351 = vmatprep.subr.mxu1 %v8608_v25 }
 0xc38   :  { %v4328_v63 = vpop.permute.xlu1 %4327 }
 0xc39   :  { %8344 = vmatmul.mubr.msk.f32.vlgmr.msra.gmra.mxu1 %vm521_vm3, %v4328_v63  ;;  %v4834_v1 = vpop.permute.xlu0 %4833 }
 0xc3a   :  { %8352 = vmatpush3.xpose.msk.msra.mxu1 %vm521_vm3, %v4501_v61  ;;  %8353 = vmatprep.mubr.msk.f32.mxu1 %vm8609_vm2, %v8608_v25 }
 0xc3b   :  { %8361 = vmatprep.subr.mxu1 %v8608_v25 }
 0xc3c   :  { %v4499_v0 = vpop.permute.xlu1 %4498 }
 0xc3d   :  { %8354 = vmatmul.mubr.msk.f32.vlgmr.msra.gmra.mxu1 %vm521_vm3, %v4499_v0  ;;  %v5006_v2 = vpop.permute.xlu0 %5005 }
 0xc3e   :  { %8362 = vmatpush3.xpose.msk.msra.mxu1 %vm521_vm3, %v3904_v38  ;;  %8363 = vmatprep.mubr.msk.f32.mxu1 %vm8609_vm2, %v8608_v25 }
 0xc3f   :  { %8371 = vmatprep.subr.mxu1 %v8608_v25 }
 0xc40   :  { %v4832_v49 = vpop.permute.xlu1 %4831 }
 0xc41   :  { %8364 = vmatmul.mubr.msk.f32.vlgmr.msra.gmra.mxu1 %vm521_vm3, %v3818_v58  ;;  %v5177_v4 = vpop.permute.xlu0 %5176 }
 0xc42   :  { %8372 = vmatpush3.xpose.msk.msra.mxu1 %vm521_vm3, %v4834_v1  ;;  %8373 = vmatprep.mubr.msk.f32.mxu1 %vm8609_vm2, %v8608_v25 }
 0xc43   :  { %8381 = vmatprep.subr.mxu1 %v8608_v25 }
 0xc44   :  { %v5004_v3 = vpop.permute.xlu1 %5003 }
 0xc45   :  { %8374 = vmatmul.mubr.msk.f32.vlgmr.msra.gmra.mxu1 %vm521_vm3, %v4832_v49 }
 0xc46   :  { %8382 = vmatpush3.xpose.msk.msra.mxu1 %vm521_vm3, %v5006_v2  ;;  %8383 = vmatprep.mubr.msk.f32.mxu1 %vm8609_vm2, %v8608_v25 }
 0xc47   :  { %8391 = vmatprep.subr.mxu1 %v8608_v25 }
 0xc48   :  { %v5175_v57 = vpop.permute.xlu1 %5174 }
 0xc49   :  { %8384 = vmatmul.mubr.msk.f32.vlgmr.msra.gmra.mxu1 %vm521_vm3, %v5004_v3 }
 0xc4a   :  { %8392 = vmatpush3.xpose.msk.msra.mxu1 %vm521_vm3, %v5177_v4  ;;  %8393 = vmatprep.mubr.msk.f32.mxu1 %vm8609_vm2, %v8608_v25 }
 0xc4d   :  { %8394 = vmatmul.mubr.msk.f32.vlgmr.msra.gmra.mxu1 %vm521_vm3, %v5175_v57 }
 0xc81   :  { %v4065_v7 = vpop.f32.mrf.mxu1 }
 0xc82   :  { %v4069_v8 = vmul.f32 0.35355338, %v4065_v7 }
 0xc83   :  { %v8325_v9 = vpop.f32.mrf.mxu1 }
 0xc84   :  { %v4070_v10 = vsel %vm521_vm3, %v4069_v8, -inf }
 0xc85   :  { %4071 = vmax.xlane.f32.xlu0 %v4070_v10 }
 0xcf4   :  { %v4229_v11 = vpop.f32.mrf.mxu1 }
 0xcf5   :  { %v4233_v13 = vmul.f32 0.35355338, %v4229_v11 }
 0xcf6   :  { %v8335_v20 = vpop.f32.mrf.mxu1 }
 0xcf7   :  { %v4234_v14 = vsel %vm521_vm3, %v4233_v13, -inf }
 0xcf8   :  { %4235 = vmax.xlane.f32.xlu1 %v4234_v14 }
 0xcf9   :  { %v4401_v15 = vpop.f32.mrf.mxu1 }
 0xcfa   :  { %v4405_v56 = vmul.f32 0.35355338, %v4401_v15 }
 0xcfb   :  { %v8345_v16 = vpop.f32.mrf.mxu1 }
 0xcfc   :  { %v4406_v19 = vsel %vm521_vm3, %v4405_v56, -inf }
 0xcfd   :  { %4407 = vmax.xlane.f32.xlu0 %v4406_v19  ;;  %v4572_v42 = vpop.f32.mrf.mxu1 }
 0xcfe   :  { %v4576_v22 = vmul.f32 0.35355338, %v4572_v42 }
 0xcff   :  { %v8355_v26 = vpop.f32.mrf.mxu1 }
 0xd00   :  { %v4577_v27 = vsel %vm521_vm3, %v4576_v22, -inf }
 0xd01   :  { %4578 = vmax.xlane.f32.xlu0 %v4577_v27  ;;  %v4741_v28 = vpop.f32.mrf.mxu1 }
 0xd02   :  { %v4745_v29 = vmul.f32 0.35355338, %v4741_v28 }
 0xd03   :  { %v8365_v36 = vpop.f32.mrf.mxu1 }
 0xd04   :  { %v4746_v30 = vsel %vm521_vm3, %v4745_v29, -inf }
 0xd05   :  { %4747 = vmax.xlane.f32.xlu1 %v4746_v30  ;;  %v4905_v31 = vpop.f32.mrf.mxu1 }
 0xd06   :  { %v4909_v35 = vmul.f32 0.35355338, %v4905_v31 }
 0xd07   :  { %v8375_v32 = vpop.f32.mrf.mxu1 }
 0xd08   :  { %v4910_v34 = vsel %vm521_vm3, %v4909_v35, -inf }
 0xd09   :  { %4911 = vmax.xlane.f32.xlu0 %v4910_v34  ;;  %v5077_v52 = vpop.f32.mrf.mxu1 }
 0xd0a   :  { %v5081_v54 = vmul.f32 0.35355338, %v5077_v52 }
 0xd0b   :  { %v8385_v45 = vpop.f32.mrf.mxu1 }
 0xd0c   :  { %v5082_v37 = vsel %vm521_vm3, %v5081_v54, -inf }
 0xd0d   :  { %5083 = vmax.xlane.f32.xlu1 %v5082_v37  ;;  %v5248_v39 = vpop.f32.mrf.mxu1 }
 0xd0e   :  { %v5252_v51 = vmul.f32 0.35355338, %v5248_v39  ;;  %v4072_v48 = vpop.xlane.xlu0 %4071 }
 0xd0f   :  { %v8395_v55 = vpop.f32.mrf.mxu1  ;;  %v4073_v50 = vsub.f32 %v4069_v8, %v4072_v48 }
 0xd10   :  { %v5253_v41 = vsel %vm521_vm3, %v5252_v51, -inf }
 0xd11   :  { %5254 = vmax.xlane.f32.xlu0 %v5253_v41  ;;  %v4074_v60 = vmul.f32 1.442695, %v4073_v50 }
 0xd13   :  { %8510 = vpow2.f32 %v4074_v60 }
 0xd1e   :  { %4246 = vrot.lane.b32.xlu1 %v9559_v24, %s8611_s5 }
 0xd20   :  { %v8511_v62 = vpop.eup %8510 }
 0xd21   :  { %v4076_v23 = vsel %vm521_vm3, %v8511_v62, 0.0 }
 0xd42   :  { %4077 = vadd.xlane.f32.xlu1 %v4076_v23 }
 0xd53   :  { %4588 = vrot.lane.b32.xlu1 %v9559_v24, %s8612_s9 }
 0xd81   :  { %v4236_v38 = vpop.xlane.xlu1 %4235 }
 0xd82   :  { %v4237_v58 = vsub.f32 %v4233_v13, %v4236_v38 }
 0xd84   :  { %v4238_v59 = vmul.f32 1.442695, %v4237_v58 }
 0xd86   :  { %8512 = vpow2.f32 %v4238_v59  ;;  %v4408_v17 = vpop.xlane.xlu0 %4407 }
 0xd87   :  { %v4409_v18 = vsub.f32 %v4405_v56, %v4408_v17 }
 0xd89   :  { %v4410_v61 = vmul.f32 1.442695, %v4409_v18 }
 0xd8a   :  { %v4579_v2 = vpop.xlane.xlu0 %4578 }
 0xd8b   :  { %8514 = vpow2.f32 %v4410_v61  ;;  %v4580_v3 = vsub.f32 %v4576_v22, %v4579_v2 }
 0xd8d   :  { %v4581_v7 = vmul.f32 1.442695, %v4580_v3 }
 0xd8e   :  { %v4748_v57 = vpop.xlane.xlu1 %4747 }
 0xd8f   :  { %v4749_v9 = vsub.f32 %v4745_v29, %v4748_v57  ;;  %8516 = vpow2.f32 %v4581_v7 }
 0xd91   :  { %v4750_v14 = vmul.f32 1.442695, %v4749_v9 }
 0xd92   :  { %v4912_v4 = vpop.xlane.xlu0 %4911 }
 0xd93   :  { %v8513_v63 = vpop.eup %8512  ;;  %v4913_v8 = vsub.f32 %v4909_v35, %v4912_v4 }
 0xd94   :  { %v4240_v0 = vsel %vm521_vm3, %v8513_v63, 0.0 }
 0xd95   :  { %4241 = vadd.xlane.f32.xlu0 %v4240_v0  ;;  %v4914_v13 = vmul.f32 1.442695, %v4913_v8 }
 0xd96   :  { %v5084_v11 = vpop.xlane.xlu1 %5083 }
 0xd97   :  { %v5085_v15 = vsub.f32 %v5081_v54, %v5084_v11  ;;  %8518 = vpow2.f32 %v4914_v13 }
 0xd98   :  { %v9617_v1 = vpop.eup %8514  ;;  %8520 = vpow2.f32 %v4750_v14  ;;  %v5350_v14 = vld [vmem:[%s10227_s22 + $0x18] sm:$0xff] }
 0xd99   :  { %v4412_v49 = vsel %vm521_vm3, %v9617_v1, 0.0  ;;  %v5086_v16 = vmul.f32 1.442695, %v5085_v15  ;;  %v5349_v15 = vld [vmem:[%s10227_s22 + $0x10] sm:$0xff]  ;;  %8401 = vmatprep.subr.mxu1 %v5350_v14 }
 0xd9a   :  { %4413 = vadd.xlane.f32.xlu1 %v4412_v49  ;;  %v5255_v10 = vpop.xlane.xlu0 %5254  ;;  %v4247_v19 = vpop.permute.xlu1 %4246  ;;  %8402 = vmatpush3.msra.mxu1 %v5350_v14  ;;  %v5540_v14 = vld [vmem:[%s10229_s26 + $0x1b8] sm:$0xff] }
 0xd9b   :  { %v5256_v20 = vsub.f32 %v5252_v51, %v5255_v10  ;;  %8403 = vmatprep.subr.mxu1 %v5349_v15 }
 0xd9c   :  { %8404 = vmatpush3.msra.mxu1 %v5349_v15 }
 0xd9d   :  { %v5257_v56 = vmul.f32 1.442695, %v5256_v20 }
 0xd9f   :  { %8522 = vpow2.f32 %v5257_v56 }
 0xda0   :  { %8524 = vpow2.f32 %v5086_v16  ;;  %v5348_v16 = vld [vmem:[%s10227_s22 + $0x8] sm:$0xff] }
 0xda1   :  { %8405 = vmatprep.subr.mxu1 %v5348_v16 }
 0xda2   :  { %8406 = vmatpush3.msra.mxu1 %v5348_v16 }
 0xdab   :  { %4922 = vrot.lane.b32.xlu1 %v9553_v53, %s8611_s5  ;;  %4417 = vrot.lane.b32.xlu0 %v9559_v24, %s8610_s0  ;;  %v8517_v24 = vpop.eup %8516 }
 0xdac   :  { %v4583_v42 = vsel %vm521_vm3, %v8517_v24, 0.0  ;;  %v9626_v22 = vpop.eup %8518 }
 0xdad   :  { %v8521_v26 = vpop.eup %8520  ;;  %v4916_v28 = vsel %vm521_vm3, %v9626_v22, 0.0 }
 0xdae   :  { %v9630_v29 = vpop.eup %8522  ;;  %v4752_v36 = vsel %vm521_vm3, %v8521_v26, 0.0 }
 0xdaf   :  { %v9633_v30 = vpop.eup %8524  ;;  %v5259_v31 = vsel %vm521_vm3, %v9630_v29, 0.0 }
 0xdb0   :  { %v5088_v35 = vsel %vm521_vm3, %v9633_v30, 0.0 }
 0xdca   :  { %4584 = vadd.xlane.f32.xlu0 %v4583_v42 }
 0xdcb   :  { %v4078_v27 = vpop.xlane.xlu1 %4077 }
 0xdcc   :  { %8526 = vrcp.f32 %v4078_v27 }
 0xdce   :  { %4917 = vadd.xlane.f32.xlu0 %v4916_v28 }
 0xdcf   :  { %4753 = vadd.xlane.f32.xlu1 %v4752_v36  ;;  %v4589_v54 = vpop.permute.xlu1 %4588 }
 0xdd2   :  { %5260 = vadd.xlane.f32.xlu0 %v5259_v31 }
 0xdd3   :  { %5089 = vadd.xlane.f32.xlu1 %v5088_v35 }
 0xdd9   :  { %v8527_v32 = vpop.eup %8526 }
 0xdda   :  { %v4080_v34 = vmul.f32 %v8527_v32, %v8511_v62 }
 0xddc   :  { %8329 = vmatmul.mubr.msk.f32.vlgmr.msra.gmra.mxu0 %vm521_vm3, %v4080_v34 }
 0xddd   :  { %8337 = vmatpush3.msra.mxu0 %v4247_v19  ;;  %8338 = vmatprep.mubr.msk.f32.mxu0 %vm8609_vm2, %v8608_v25  ;;  %v5347_v19 = vld [vmem:[%s10227_s22] sm:$0xff] }
 0xdde   :  { %8346 = vmatprep.subr.mxu0 %v8608_v25  ;;  %8407 = vmatprep.subr.mxu1 %v5347_v19 }
 0xddf   :  { %8408 = vmatpush3.msra.mxu1 %v5347_v19 }
 0xde4   :  { %5264 = vrot.lane.b32.xlu1 %v9553_v53, %s8612_s9 }
 0xde8   :  { %5093 = vrot.lane.b32.xlu0 %v9553_v53, %s8610_s0  ;;  %s7263_s0 = sshll.u32 %s8616_s11, 4  ;;  %s7264_s0 = int_to_ptr.vmem [resolvable:$true] %s7263_s0 }
 0xde9   :  { %s8548_s5 = scalar_lea.vmem %s7264_s0, 128  ;;  %p8553_p1 = scmp.lt.s32.totalorder %s7264_s0, %s7264_s0 }
 0xdea   :  { %p8549_p0 = scmp.ne.s32.totalorder %s7264_s0, %s8548_s5  ;;  %p8554_p2 = scmp.lt.s32.totalorder %s8548_s5, %s8548_s5 }
 0xdec   :  { %p8555_p3 = por %p8554_p2, %p8553_p1 }
 0xdee   :  { %p8556_p4 = pnand %p8555_p3, %p8549_p0 }
 0xe1e   :  { %v4242_v52 = vpop.xlane.xlu0 %4241 }
 0xe1f   :  { %8528 = vrcp.f32 %v4242_v52 }
 0xe22   :  { %v4418_v51 = vpop.permute.xlu0 %4417 }
 0xe23   :  { %v4414_v45 = vpop.xlane.xlu1 %4413 }
 0xe24   :  { %8530 = vrcp.f32 %v4414_v45 }
 0xe27   :  { %v4923_v50 = vpop.permute.xlu1 %4922 }
 0xe2c   :  { %v8529_v37 = vpop.eup %8528 }
 0xe2d   :  { %v4244_v39 = vmul.f32 %v8529_v37, %v8513_v63 }
 0xe2f   :  { %8339 = vmatmul.mubr.msk.f32.vlgmr.msra.gmra.mxu0 %vm521_vm3, %v4244_v39 }
 0xe30   :  { %8347 = vmatpush3.msra.mxu0 %v4418_v51  ;;  %8348 = vmatprep.mubr.msk.f32.mxu0 %vm8609_vm2, %v8608_v25 }
 0xe31   :  { %v8531_v55 = vpop.eup %8530  ;;  %8356 = vmatprep.subr.mxu0 %v8608_v25 }
 0xe32   :  { %v4416_v41 = vmul.f32 %v8531_v55, %v9617_v1 }
 0xe34   :  { %8349 = vmatmul.mubr.msk.f32.vlgmr.msra.gmra.mxu0 %vm521_vm3, %v4416_v41 }
 0xe35   :  { %8357 = vmatpush3.msra.mxu0 %v4589_v54  ;;  %8358 = vmatprep.mubr.msk.f32.mxu0 %vm8609_vm2, %v8608_v25  ;;  %v7402_v54 = vld [vmem:[%s10228_s23] ss:$0 sm:$0xff] }
 0xe36   :  { %8366 = vmatprep.subr.mxu0 %v8608_v25 }
 0xe53   :  { %v4585_v48 = vpop.xlane.xlu0 %4584 }
 0xe54   :  { %8532 = vrcp.f32 %v4585_v48 }
 0xe57   :  { %v4918_v60 = vpop.xlane.xlu0 %4917 }
 0xe58   :  { %v4754_v62 = vpop.xlane.xlu1 %4753 }
 0xe59   :  { %8534 = vrcp.f32 %v4754_v62 }
 0xe5a   :  { %8536 = vrcp.f32 %v4918_v60 }
 0xe5b   :  { %v5261_v38 = vpop.xlane.xlu0 %5260 }
 0xe5c   :  { %v5090_v23 = vpop.xlane.xlu1 %5089 }
 0xe5d   :  { %8538 = vrcp.f32 %v5090_v23 }
 0xe5e   :  { %8540 = vrcp.f32 %v5261_v38 }
 0xe60   :  { %v5265_v2 = vpop.permute.xlu1 %5264 }
 0xe61   :  { %v8533_v58 = vpop.eup %8532 }
 0xe62   :  { %v4587_v59 = vmul.f32 %v8533_v58, %v8517_v24 }
 0xe64   :  { %8359 = vmatmul.mubr.msk.f32.vlgmr.msra.gmra.mxu0 %vm521_vm3, %v4587_v59 }
 0xe65   :  { %8367 = vmatpush3.msra.mxu0 %v9553_v53  ;;  %8368 = vmatprep.mubr.msk.f32.mxu0 %vm8609_vm2, %v8608_v25  ;;  %v5094_v53 = vpop.permute.xlu0 %5093 }
 0xe66   :  { %v8535_v17 = vpop.eup %8534  ;;  %8376 = vmatprep.subr.mxu0 %v8608_v25 }
 0xe67   :  { %v4756_v18 = vmul.f32 %v8535_v17, %v8521_v26  ;;  %v8537_v61 = vpop.eup %8536 }
 0xe68   :  { %v4920_v63 = vmul.f32 %v8537_v61, %v9626_v22  ;;  %v5534_v61 = vld [vmem:[%s10229_s26 + $0x188] sm:$0xff] }
 0xe69   :  { %8369 = vmatmul.mubr.msk.f32.vlgmr.msra.gmra.mxu0 %vm521_vm3, %v4756_v18 }
 0xe6a   :  { %8377 = vmatpush3.msra.mxu0 %v4923_v50  ;;  %8378 = vmatprep.mubr.msk.f32.mxu0 %vm8609_vm2, %v8608_v25  ;;  %v8539_v0 = vpop.eup %8538 }
 0xe6b   :  { %8386 = vmatprep.subr.mxu0 %v8608_v25  ;;  %v5092_v1 = vmul.f32 %v8539_v0, %v9633_v30  ;;  %v8541_v49 = vpop.eup %8540  ;;  %v5533_v0 = vld [vmem:[%s10229_s26 + $0x180] sm:$0xff] }
 0xe6c   :  { %v5263_v3 = vmul.f32 %v8541_v49, %v9630_v29  ;;  %v5520_v49 = vld [vmem:[%s10229_s26 + $0x118] sm:$0xff] }
 0xe6d   :  { %8379 = vmatmul.mubr.msk.f32.vlgmr.msra.gmra.mxu0 %vm521_vm3, %v4920_v63  ;;  %v5536_v63 = vld [vmem:[%s10229_s26 + $0x198] sm:$0xff] }
 0xe6e   :  { %8387 = vmatpush3.msra.mxu0 %v5094_v53  ;;  %8388 = vmatprep.mubr.msk.f32.mxu0 %vm8609_vm2, %v8608_v25  ;;  %v5535_v53 = vld [vmem:[%s10229_s26 + $0x190] sm:$0xff] }
 0xe6f   :  { %8396 = vmatprep.subr.mxu0 %v8608_v25  ;;  %5740 = vmatprep.subr.mxu1 %v5536_v63  ;;  %v5510_v63 = vld [vmem:[%s10229_s26 + $0xc8] sm:$0xff] }
 0xe71   :  { %8389 = vmatmul.mubr.msk.f32.vlgmr.msra.gmra.mxu0 %vm521_vm3, %v5092_v1  ;;  %v5518_v1 = vld [vmem:[%s10229_s26 + $0x108] sm:$0xff] }
 0xe72   :  { %8397 = vmatpush3.msra.mxu0 %v5265_v2  ;;  %8398 = vmatprep.mubr.msk.f32.mxu0 %vm8609_vm2, %v8608_v25  ;;  %v5517_v2 = vld [vmem:[%s10229_s26 + $0x100] sm:$0xff] }
 0xe73   :  { %5663 = vmatprep.subr.mxu0 %v5534_v61  ;;  %v5527_v61 = vld [vmem:[%s10229_s26 + $0x150] sm:$0xff] }
 0xe75   :  { %8399 = vmatmul.mubr.msk.f32.vlgmr.msra.gmra.mxu0 %vm521_vm3, %v5263_v3  ;;  %v5519_v3 = vld [vmem:[%s10229_s26 + $0x110] sm:$0xff] }
 0xe76   :  { %5703 = vmatprep.mubr.f32.mxu0 %v8608_v25  ;;  %5664 = vmatpush1.msra.mxu0 %v5533_v0  ;;  %v5512_v0 = vld [vmem:[%s10229_s26 + $0xd8] sm:$0xff] }
 0xe77   :  { %5665 = vmatprep.subr.mxu0 %v5518_v1  ;;  %v5511_v1 = vld [vmem:[%s10229_s26 + $0xd0] sm:$0xff] }
 0xe78   :  { %5666 = vmatpush1.msra.mxu0 %v5517_v2  ;;  %v5496_v2 = vld [vmem:[%s10229_s26 + $0x58] sm:$0xff] }
 0xe9c   :  { %v4150_v4 = vpop.f32.mrf.mxu0 }
 0xe9d   :  { %4154 = vst.msk [vmem:[#allocation2] sm:$0xff] %vm521_vm3, %v4150_v4  ;;  %v5502_v4 = vld [vmem:[%s10229_s26 + $0x88] sm:$0xff] }
 0xe9e   :  { %v8330_v57 = vpop.f32.mrf.mxu0  ;;  %5667 = vmatprep.subr.mxu0 %v5502_v4  ;;  %v5495_v4 = vld [vmem:[%s10229_s26 + $0x50] sm:$0xff] }
 0xe9f   :  { %v5504_v57 = vld [vmem:[%s10229_s26 + $0x98] sm:$0xff] }
 0xeef   :  { %v4318_v7 = vpop.f32.mrf.mxu0 }
 0xef0   :  { %4323 = vrot.lane.b32.xlu0 %v4318_v7, %s8613_s13  ;;  %v5501_v7 = vld [vmem:[%s10229_s26 + $0x80] sm:$0xff] }
 0xef1   :  { %v8340_v8 = vpop.f32.mrf.mxu0  ;;  %5668 = vmatpush1.msra.mxu0 %v5501_v7  ;;  %v5548_v7 = vld [vmem:[%s10229_s26 + $0x1f8] sm:$0xff] }
 0xef2   :  { %v5503_v8 = vld [vmem:[%s10229_s26 + $0x90] sm:$0xff] }
 0xef4   :  { %v4489_v9 = vpop.f32.mrf.mxu0 }
 0xef5   :  { %4494 = vrot.lane.b32.xlu1 %v4489_v9, %s8614_s17  ;;  %v5486_v9 = vld [vmem:[%s10229_s26 + $0x8] sm:$0xff] }
 0xef6   :  { %v8350_v10 = vpop.f32.mrf.mxu0  ;;  %5669 = vmatprep.subr.mxu0 %v5486_v9  ;;  %v5547_v9 = vld [vmem:[%s10229_s26 + $0x1f0] sm:$0xff] }
 0xef7   :  { %v5488_v10 = vld [vmem:[%s10229_s26 + $0x18] sm:$0xff] }
 0xf24   :  { %v4660_v11 = vpop.f32.mrf.mxu0 }
 0xf25   :  { %4665 = vrot.lane.b32.xlu1 %v4660_v11, %s8615_s29  ;;  %v5485_v11 = vld [vmem:[%s10229_s26] sm:$0xff] }
 0xf26   :  { %v8360_v13 = vpop.f32.mrf.mxu0  ;;  %5670 = vmatpush1.msra.mxu0 %v5485_v11  ;;  %v5532_v11 = vld [vmem:[%s10229_s26 + $0x178] sm:$0xff] }
 0xf27   :  { %v5487_v13 = vld [vmem:[%s10229_s26 + $0x10] sm:$0xff] }
 0xf29   :  { %v4826_v20 = vpop.f32.mrf.mxu0 }
 0xf2a   :  { %4830 = vst.msk [vmem:[#allocation2 + $0x8] sm:$0xff] %vm521_vm3, %v4826_v20  ;;  %v5538_v20 = vld [vmem:[%s10229_s26 + $0x1a8] sm:$0xff] }
 0xf2b   :  { %v8370_v56 = vpop.f32.mrf.mxu0  ;;  %5817 = vmatprep.subr.mxu0 %v5538_v20  ;;  %v5531_v20 = vld [vmem:[%s10229_s26 + $0x170] sm:$0xff] }
 0xf2d   :  { %v4994_v24 = vpop.f32.mrf.mxu0 }
 0xf2e   :  { %4999 = vrot.lane.b32.xlu0 %v4994_v24, %s8613_s13 }
 0xf2f   :  { %v8380_v42 = vpop.f32.mrf.mxu0 }
 0xf31   :  { %v5165_v22 = vpop.f32.mrf.mxu0 }
 0xf32   :  { %5170 = vrot.lane.b32.xlu0 %v5165_v22, %s8614_s17 }
 0xf33   :  { %v8390_v26 = vpop.f32.mrf.mxu0 }
 0xf34   :  { %v7405_v26 = vld [vmem:[%s10230_s28] ss:$0 sm:$0xff] }
 0xf35   :  { %v5336_v27 = vpop.f32.mrf.mxu0 }
 0xf36   :  { %5341 = vrot.lane.b32.xlu1 %v5336_v27, %s8615_s29 }
 0xf37   :  { %v8400_v28 = vpop.f32.mrf.mxu0 }
 0xf38   :  { %v7406_v28 = vld [vmem:[%s10231_s1] ss:$0 sm:$0xff] }
 0xf62   :  { %v4324_v29 = vpop.permute.xlu0 %4323 }
 0xf63   :  { %4326 = vst.msk [vmem:[#allocation2] sm:$0xff] %vm855_vm4, %v4324_v29 }
 0xf67   :  { %v4495_v36 = vpop.permute.xlu1 %4494 }
 0xf68   :  { %4497 = vst.msk [vmem:[#allocation2] sm:$0xff] %vm1027_vm5, %v4495_v36 }
 0xf97   :  { %v4666_v30 = vpop.permute.xlu1 %4665 }
 0xf98   :  { %4668 = vst.msk [vmem:[#allocation2] sm:$0xff] %vm1199_vm6, %v4666_v30 }
 0xf9f   :  { %v5345_v31 = vld [vmem:[#allocation2] sm:$0xff] }
 0xfa0   :  { %8409 = vmatprep.mubr.msk.f32.mxu1 %vm267_vm1, %v5345_v31  ;;  %v5000_v35 = vpop.permute.xlu0 %4999 }
 0xfa1   :  { %5002 = vst.msk [vmem:[#allocation2 + $0x8] sm:$0xff] %vm855_vm4, %v5000_v35  ;;  %v5537_v35 = vld [vmem:[%s10229_s26 + $0x1a0] sm:$0xff] }
 0xfa4   :  { %v5171_v32 = vpop.permute.xlu0 %5170 }
 0xfa5   :  { %5173 = vst.msk [vmem:[#allocation2 + $0x8] sm:$0xff] %vm1027_vm5, %v5171_v32  ;;  %v5539_v32 = vld [vmem:[%s10229_s26 + $0x1b0] sm:$0xff] }
 0xfa8   :  { %v5342_v34 = vpop.permute.xlu1 %5341 }
 0xfa9   :  { %5344 = vst.msk [vmem:[#allocation2 + $0x8] sm:$0xff] %vm1199_vm6, %v5342_v34  ;;  %v5522_v34 = vld [vmem:[%s10229_s26 + $0x128] sm:$0xff] }
 0xfb0   :  { %v5346_v52 = vld [vmem:[#allocation2 + $0x8] sm:$0xff] }
 0xfb1   :  { %8410 = vmatmul.mubr.msk.f32.vlgmr.msra.gmra.mxu1 %vm267_vm1, %v5346_v52  ;;  %v5524_v52 = vld [vmem:[%s10229_s26 + $0x138] sm:$0xff] }
 0xfb2   :  { %5780 = vmatprep.mubr.f32.mxu1 %v8608_v25  ;;  %5741 = vmatpush1.msra.mxu1 %v5535_v53  ;;  %v5509_v53 = vld [vmem:[%s10229_s26 + $0xc0] sm:$0xff] }
 0xfb3   :  { %5742 = vmatprep.subr.mxu1 %v5520_v49  ;;  %v5494_v49 = vld [vmem:[%s10229_s26 + $0x48] sm:$0xff] }
 0xfb4   :  { %5743 = vmatpush1.msra.mxu1 %v5519_v3  ;;  %v5493_v3 = vld [vmem:[%s10229_s26 + $0x40] sm:$0xff] }
 0xfb5   :  { %5744 = vmatprep.subr.mxu1 %v5504_v57  ;;  %v5546_v57 = vld [vmem:[%s10229_s26 + $0x1e8] sm:$0xff] }
 0xfb6   :  { %5745 = vmatpush1.msra.mxu1 %v5503_v8  ;;  %v5545_v8 = vld [vmem:[%s10229_s26 + $0x1e0] sm:$0xff] }
 0xfb7   :  { %5746 = vmatprep.subr.mxu1 %v5488_v10  ;;  %v5530_v10 = vld [vmem:[%s10229_s26 + $0x168] sm:$0xff] }
 0xfb8   :  { %5747 = vmatpush1.msra.mxu1 %v5487_v13  ;;  %v5529_v13 = vld [vmem:[%s10229_s26 + $0x160] sm:$0xff] }
 0xfb9   :  { %5894 = vmatprep.subr.mxu1 %v5540_v14  ;;  %v5514_v14 = vld [vmem:[%s10229_s26 + $0xe8] sm:$0xff] }
0x1071   :  { %v8411_v45 = vpop.f32.mrf.mxu1 }
0x1072   :  { %v5436_v37 = vadd.f32 %v8411_v45, %v7402_v54  ;;  %v5521_v45 = vld [vmem:[%s10229_s26 + $0x120] sm:$0xff] }
0x1073   :  { %v5430_v39 = vpop.f32.mrf.mxu1 }
0x1074   :  { %v5431_v51 = vadd.f32 %v7402_v54, %v5430_v39  ;;  %v5440_v55 = vadd.f32 %v5436_v37, %v9527_v33  ;;  %v5523_v37 = vld [vmem:[%s10229_s26 + $0x130] sm:$0xff] }
0x1076   :  { %v5446_v41 = vsel %vm267_vm1, %v5440_v55, 0.0  ;;  %v5439_v48 = vadd.f32 %v5431_v51, %v9521_v40  ;;  %v5506_v51 = vld [vmem:[%s10229_s26 + $0xa8] sm:$0xff] }
0x1077   :  { %5447 = vadd.xlane.f32.xlu1 %v5446_v41  ;;  %v5505_v41 = vld [vmem:[%s10229_s26 + $0xa0] sm:$0xff] }
0x1078   :  { %v5443_v50 = vsel %vm267_vm1, %v5439_v48, 0.0 }
0x1079   :  { %5444 = vadd.xlane.f32.xlu0 %v5443_v50  ;;  %v5490_v50 = vld [vmem:[%s10229_s26 + $0x28] sm:$0xff] }
0x1100   :  { %v5448_v60 = vpop.xlane.xlu1 %5447 }
0x1101   :  { %v5450_v62 = vmul.f32 0.03125, %v5448_v60  ;;  %v5492_v60 = vld [vmem:[%s10229_s26 + $0x38] sm:$0xff] }
0x1102   :  { %v5445_v23 = vpop.xlane.xlu0 %5444 }
0x1103   :  { %v5449_v38 = vmul.f32 0.03125, %v5445_v23  ;;  %v5452_v58 = vsub.f32 %v5440_v55, %v5450_v62  ;;  %v5508_v55 = vld [vmem:[%s10229_s26 + $0xb8] sm:$0xff]  ;;  %v5489_v62 = vld [vmem:[%s10229_s26 + $0x20] sm:$0xff]  ;;  %v5491_v23 = vld [vmem:[%s10229_s26 + $0x30] sm:$0xff] }
0x1105   :  { %v5451_v59 = vsub.f32 %v5439_v48, %v5449_v38  ;;  %v5454_v40 = vmul.f32 %v5452_v58, %v5452_v58  ;;  %v5507_v48 = vld [vmem:[%s10229_s26 + $0xb0] sm:$0xff]  ;;  %v5542_v38 = vld [vmem:[%s10229_s26 + $0x1c8] sm:$0xff] }
0x1107   :  { %v5453_v33 = vmul.f32 %v5451_v59, %v5451_v59  ;;  %v5458_v18 = vsel %vm267_vm1, %v5454_v40, 0.0  ;;  %v5528_v40 = vld [vmem:[%s10229_s26 + $0x158] sm:$0xff] }
0x1109   :  { %v5455_v17 = vsel %vm267_vm1, %v5453_v33, 0.0  ;;  %v5543_v33 = vld [vmem:[%s10229_s26 + $0x1d0] sm:$0xff] }
0x110a   :  { %5456 = vadd.xlane.f32.xlu0 %v5455_v17  ;;  %v5526_v17 = vld [vmem:[%s10229_s26 + $0x148] sm:$0xff] }
0x110e   :  { %5459 = vadd.xlane.f32.xlu0 %v5458_v18  ;;  %v5525_v18 = vld [vmem:[%s10229_s26 + $0x140] sm:$0xff] }
0x1193   :  { %v5457_v15 = vpop.xlane.xlu0 %5456 }
0x1194   :  { %v5461_v56 = vmul.f32 0.03125, %v5457_v15  ;;  %v5516_v15 = vld [vmem:[%s10229_s26 + $0xf8] sm:$0xff] }
0x1196   :  { %v5463_v16 = vadd.f32 1e-05, %v5461_v56  ;;  %v5513_v56 = vld [vmem:[%s10229_s26 + $0xe0] sm:$0xff] }
0x1197   :  { %v5460_v24 = vpop.xlane.xlu0 %5459 }
0x1198   :  { %8542 = vrsqrt.f32 %v5463_v16  ;;  %v5462_v19 = vmul.f32 0.03125, %v5460_v24  ;;  %v5515_v16 = vld [vmem:[%s10229_s26 + $0xf0] sm:$0xff]  ;;  %v5498_v24 = vld [vmem:[%s10229_s26 + $0x68] sm:$0xff] }
0x119a   :  { %v5464_v42 = vadd.f32 1e-05, %v5462_v19  ;;  %v5500_v19 = vld [vmem:[%s10229_s26 + $0x78] sm:$0xff] }
0x119c   :  { %8544 = vrsqrt.f32 %v5464_v42  ;;  %v5497_v42 = vld [vmem:[%s10229_s26 + $0x60] sm:$0xff] }
0x11a5   :  { %v8543_v22 = vpop.eup %8542 }
0x11a6   :  { %v5467_v27 = vmul.f32 %v8543_v22, %v5451_v59  ;;  %v5541_v59 = vld [vmem:[%s10229_s26 + $0x1c0] sm:$0xff]  ;;  %v5499_v22 = vld [vmem:[%s10229_s26 + $0x70] sm:$0xff] }
0x11a8   :  { %v5475_v29 = vmul.f32 %v7405_v26, %v5467_v27  ;;  %v6350_v27 = vld [vmem:[%s10232_s2 + $0x1f8] sm:$0xff] }
0x11a9   :  { %v8545_v36 = vpop.eup %8544 }
0x11aa   :  { %v9725_v30 = vadd.f32 %v7406_v28, %v5475_v29  ;;  %v5468_v31 = vmul.f32 %v8545_v36, %v5452_v58  ;;  %v5544_v58 = vld [vmem:[%s10229_s26 + $0x1d8] sm:$0xff]  ;;  %v6317_v36 = vld [vmem:[%s10232_s2 + $0xf0] sm:$0xff] }
0x11ab   :  { %v6334_v29 = vld [vmem:[%s10232_s2 + $0x178] sm:$0xff] }
0x11ac   :  { %v5476_v54 = vmul.f32 %v7405_v26, %v5468_v31  ;;  %7407 = vmatmul.mubr.msk.f32.vlgmr.msra.gmra.mxu0 %vm267_vm1, %v9725_v30  ;;  %7409 = vmatmul.mubr.msk.f32.vlgmr.msra.gmra.mxu1 %vm267_vm1, %v9725_v30  ;;  %v6318_v26 = vld [vmem:[%s10232_s2 + $0xf8] sm:$0xff]  ;;  %v6349_v31 = vld [vmem:[%s10232_s2 + $0x1f0] sm:$0xff] }
0x11ad   :  { %5818 = vmatpush1.msra.mxu0 %v5537_v35  ;;  %5895 = vmatpush1.msra.mxu1 %v5539_v32  ;;  %v6301_v35 = vld [vmem:[%s10232_s2 + $0x70] sm:$0xff]  ;;  %v6316_v32 = vld [vmem:[%s10232_s2 + $0xe8] sm:$0xff] }
0x11ae   :  { %v9737_v39 = vadd.f32 %v7406_v28, %v5476_v54  ;;  %5819 = vmatprep.subr.mxu0 %v5522_v34  ;;  %5896 = vmatprep.subr.mxu1 %v5524_v52  ;;  %v6302_v28 = vld [vmem:[%s10232_s2 + $0x78] sm:$0xff]  ;;  %v6348_v34 = vld [vmem:[%s10232_s2 + $0x1e8] sm:$0xff] }
0x11af   :  { %5709 = vmatprep.mubr.f32.mxu0 %v8608_v25  ;;  %5786 = vmatprep.mubr.f32.mxu1 %v8608_v25  ;;  %v6300_v52 = vld [vmem:[%s10232_s2 + $0x68] sm:$0xff] }
0x11b0   :  { %5820 = vmatpush1.msra.mxu0 %v5521_v45  ;;  %5897 = vmatpush1.msra.mxu1 %v5523_v37  ;;  %v6332_v54 = vld [vmem:[%s10232_s2 + $0x168] sm:$0xff]  ;;  %v6315_v45 = vld [vmem:[%s10232_s2 + $0xe0] sm:$0xff] }
0x11b1   :  { %7408 = vmatmul.mubr.msk.f32.gmra.mxu0 %vm267_vm1, %v9737_v39  ;;  %7410 = vmatmul.mubr.msk.f32.gmra.mxu1 %vm267_vm1, %v9737_v39  ;;  %v6347_v37 = vld [vmem:[%s10232_s2 + $0x1e0] sm:$0xff] }
0x11b2   :  { %5821 = vmatprep.subr.mxu0 %v5506_v51  ;;  %5898 = vmatprep.subr.mxu1 %v5508_v55  ;;  %v6299_v51 = vld [vmem:[%s10232_s2 + $0x60] sm:$0xff] }
0x11b3   :  { %5822 = vmatpush1.msra.mxu0 %v5505_v41  ;;  %5899 = vmatpush1.msra.mxu1 %v5507_v48  ;;  %v6331_v55 = vld [vmem:[%s10232_s2 + $0x160] sm:$0xff]  ;;  %v6314_v41 = vld [vmem:[%s10232_s2 + $0xd8] sm:$0xff] }
0x11b4   :  { %5823 = vmatprep.subr.mxu0 %v5490_v50  ;;  %5900 = vmatprep.subr.mxu1 %v5492_v60  ;;  %v6346_v48 = vld [vmem:[%s10232_s2 + $0x1d8] sm:$0xff] }
0x11b5   :  { %5824 = vmatpush1.msra.mxu0 %v5489_v62  ;;  %5857 = vmatprep.mubr.f32.mxu0 %v8608_v25  ;;  %v6298_v50 = vld [vmem:[%s10232_s2 + $0x58] sm:$0xff]  ;;  %v6313_v62 = vld [vmem:[%s10232_s2 + $0xd0] sm:$0xff] }
0x11b6   :  { %5901 = vmatpush1.msra.mxu1 %v5491_v23  ;;  %5934 = vmatprep.mubr.f32.mxu1 %v8608_v25  ;;  %v6330_v60 = vld [vmem:[%s10232_s2 + $0x158] sm:$0xff]  ;;  %v6345_v23 = vld [vmem:[%s10232_s2 + $0x1d0] sm:$0xff] }
0x11b7   :  { %7411 = vmatmul.mubr.msk.f32.vlgmr.msra.gmra.mxu0 %vm267_vm1, %v9725_v30  ;;  %7413 = vmatmul.mubr.msk.f32.vlgmr.msra.gmra.mxu1 %vm267_vm1, %v9725_v30 }
0x11b8   :  { %5971 = vmatprep.subr.mxu0 %v5542_v38  ;;  %6048 = vmatprep.subr.mxu1 %v5544_v58  ;;  %v6297_v38 = vld [vmem:[%s10232_s2 + $0x50] sm:$0xff] }
0x11b9   :  { %5972 = vmatpush1.msra.mxu0 %v5541_v59  ;;  %6049 = vmatpush1.msra.mxu1 %v5543_v33  ;;  %v6329_v58 = vld [vmem:[%s10232_s2 + $0x150] sm:$0xff]  ;;  %v6312_v59 = vld [vmem:[%s10232_s2 + $0xc8] sm:$0xff] }
0x11ba   :  { %5973 = vmatprep.subr.mxu0 %v5526_v17  ;;  %6050 = vmatprep.subr.mxu1 %v5528_v40  ;;  %v6344_v33 = vld [vmem:[%s10232_s2 + $0x1c8] sm:$0xff] }
0x11bb   :  { %5863 = vmatprep.mubr.f32.mxu0 %v8608_v25  ;;  %5940 = vmatprep.mubr.f32.mxu1 %v8608_v25  ;;  %v6296_v17 = vld [vmem:[%s10232_s2 + $0x48] sm:$0xff] }
0x11bc   :  { %5974 = vmatpush1.msra.mxu0 %v5525_v18  ;;  %6051 = vmatpush1.msra.mxu1 %v5527_v61  ;;  %v6328_v40 = vld [vmem:[%s10232_s2 + $0x148] sm:$0xff]  ;;  %v6311_v18 = vld [vmem:[%s10232_s2 + $0xc0] sm:$0xff] }
0x11bd   :  { %7412 = vmatmul.mubr.msk.f32.gmra.mxu0 %vm267_vm1, %v9737_v39  ;;  %7414 = vmatmul.mubr.msk.f32.gmra.mxu1 %vm267_vm1, %v9737_v39  ;;  %v6343_v61 = vld [vmem:[%s10232_s2 + $0x1c0] sm:$0xff] }
0x11be   :  { %5975 = vmatprep.subr.mxu0 %v5510_v63  ;;  %6052 = vmatprep.subr.mxu1 %v5512_v0  ;;  %v6295_v63 = vld [vmem:[%s10232_s2 + $0x40] sm:$0xff] }
0x11bf   :  { %5976 = vmatpush1.msra.mxu0 %v5509_v53  ;;  %6053 = vmatpush1.msra.mxu1 %v5511_v1  ;;  %v6327_v0 = vld [vmem:[%s10232_s2 + $0x140] sm:$0xff]  ;;  %v6310_v53 = vld [vmem:[%s10232_s2 + $0xb8] sm:$0xff] }
0x11c0   :  { %5977 = vmatprep.subr.mxu0 %v5494_v49  ;;  %6054 = vmatprep.subr.mxu1 %v5496_v2  ;;  %v6342_v1 = vld [vmem:[%s10232_s2 + $0x1b8] sm:$0xff] }
0x11c1   :  { %5978 = vmatpush1.msra.mxu0 %v5493_v3  ;;  %6011 = vmatprep.mubr.f32.mxu0 %v8608_v25  ;;  %v6294_v49 = vld [vmem:[%s10232_s2 + $0x38] sm:$0xff]  ;;  %v6309_v3 = vld [vmem:[%s10232_s2 + $0xb0] sm:$0xff] }
0x11c2   :  { %6055 = vmatpush1.msra.mxu1 %v5495_v4  ;;  %6088 = vmatprep.mubr.f32.mxu1 %v8608_v25  ;;  %v6326_v2 = vld [vmem:[%s10232_s2 + $0x138] sm:$0xff]  ;;  %v6341_v4 = vld [vmem:[%s10232_s2 + $0x1b0] sm:$0xff] }
0x11c3   :  { %7415 = vmatmul.mubr.msk.f32.vlgmr.msra.gmra.mxu0 %vm267_vm1, %v9725_v30  ;;  %7417 = vmatmul.mubr.msk.f32.vlgmr.msra.gmra.mxu1 %vm267_vm1, %v9725_v30 }
0x11c4   :  { %6125 = vmatprep.subr.mxu0 %v5546_v57  ;;  %6202 = vmatprep.subr.mxu1 %v5548_v7  ;;  %v6293_v57 = vld [vmem:[%s10232_s2 + $0x30] sm:$0xff] }
0x11c5   :  { %6126 = vmatpush1.msra.mxu0 %v5545_v8  ;;  %6203 = vmatpush1.msra.mxu1 %v5547_v9  ;;  %v6325_v7 = vld [vmem:[%s10232_s2 + $0x130] sm:$0xff]  ;;  %v6308_v8 = vld [vmem:[%s10232_s2 + $0xa8] sm:$0xff] }
0x11c6   :  { %6127 = vmatprep.subr.mxu0 %v5530_v10  ;;  %6204 = vmatprep.subr.mxu1 %v5532_v11  ;;  %v6340_v9 = vld [vmem:[%s10232_s2 + $0x1a8] sm:$0xff] }
0x11c7   :  { %6017 = vmatprep.mubr.f32.mxu0 %v8608_v25  ;;  %6094 = vmatprep.mubr.f32.mxu1 %v8608_v25  ;;  %v6292_v10 = vld [vmem:[%s10232_s2 + $0x28] sm:$0xff] }
0x11c8   :  { %6128 = vmatpush1.msra.mxu0 %v5529_v13  ;;  %6205 = vmatpush1.msra.mxu1 %v5531_v20  ;;  %v6324_v11 = vld [vmem:[%s10232_s2 + $0x128] sm:$0xff]  ;;  %v6307_v13 = vld [vmem:[%s10232_s2 + $0xa0] sm:$0xff] }
0x11c9   :  { %7416 = vmatmul.mubr.msk.f32.gmra.mxu0 %vm267_vm1, %v9737_v39  ;;  %7418 = vmatmul.mubr.msk.f32.gmra.mxu1 %vm267_vm1, %v9737_v39  ;;  %v6339_v20 = vld [vmem:[%s10232_s2 + $0x1a0] sm:$0xff] }
0x11ca   :  { %6129 = vmatprep.subr.mxu0 %v5514_v14  ;;  %6206 = vmatprep.subr.mxu1 %v5516_v15  ;;  %v6291_v14 = vld [vmem:[%s10232_s2 + $0x20] sm:$0xff] }
0x11cb   :  { %6130 = vmatpush1.msra.mxu0 %v5513_v56  ;;  %6207 = vmatpush1.msra.mxu1 %v5515_v16  ;;  %v6323_v15 = vld [vmem:[%s10232_s2 + $0x120] sm:$0xff]  ;;  %v6306_v56 = vld [vmem:[%s10232_s2 + $0x98] sm:$0xff] }
0x11cc   :  { %6131 = vmatprep.subr.mxu0 %v5498_v24  ;;  %6208 = vmatprep.subr.mxu1 %v5500_v19  ;;  %v6338_v16 = vld [vmem:[%s10232_s2 + $0x198] sm:$0xff] }
0x11cd   :  { %6132 = vmatpush1.msra.mxu0 %v5497_v42  ;;  %6165 = vmatprep.mubr.f32.mxu0 %v8608_v25  ;;  %v6290_v24 = vld [vmem:[%s10232_s2 + $0x18] sm:$0xff]  ;;  %v6305_v42 = vld [vmem:[%s10232_s2 + $0x90] sm:$0xff] }
0x11ce   :  { %6209 = vmatpush1.msra.mxu1 %v5499_v22  ;;  %6242 = vmatprep.mubr.f32.mxu1 %v8608_v25  ;;  %v6322_v19 = vld [vmem:[%s10232_s2 + $0x118] sm:$0xff]  ;;  %v6337_v22 = vld [vmem:[%s10232_s2 + $0x190] sm:$0xff] }
0x11cf   :  { %7419 = vmatmul.mubr.msk.f32.vlgmr.msra.gmra.mxu0 %vm267_vm1, %v9725_v30  ;;  %7421 = vmatmul.mubr.msk.f32.vlgmr.msra.gmra.mxu1 %vm267_vm1, %v9725_v30  ;;  %v6333_v30 = vld [vmem:[%s10232_s2 + $0x170] sm:$0xff] }
0x11d0   :  { %6171 = vmatprep.mubr.f32.mxu0 %v8608_v25  ;;  %6248 = vmatprep.mubr.f32.mxu1 %v8608_v25 }
0x11d1   :  { %7848 = vmatprep.subr.mxu0 %v6318_v26  ;;  %7886 = vmatprep.subr.mxu1 %v6350_v27  ;;  %v6289_v26 = vld [vmem:[%s10232_s2 + $0x10] sm:$0xff] }
0x11d2   :  { %7849 = vmatpush3.msra.mxu0 %v6302_v28  ;;  %7887 = vmatpush3.msra.mxu1 %v6334_v29  ;;  %v6321_v27 = vld [vmem:[%s10232_s2 + $0x110] sm:$0xff]  ;;  %v6304_v28 = vld [vmem:[%s10232_s2 + $0x88] sm:$0xff] }
0x11d3   :  { %7420 = vmatmul.mubr.msk.f32.gmra.mxu0 %vm267_vm1, %v9737_v39  ;;  %7422 = vmatmul.mubr.msk.f32.gmra.mxu1 %vm267_vm1, %v9737_v39  ;;  %v6336_v29 = vld [vmem:[%s10232_s2 + $0x188] sm:$0xff] }
0x11d4   :  { %7850 = vmatprep.subr.mxu0 %v6317_v36  ;;  %7888 = vmatprep.subr.mxu1 %v6349_v31  ;;  %v6288_v36 = vld [vmem:[%s10232_s2 + $0x8] sm:$0xff] }
0x11d5   :  { %7851 = vmatpush3.msra.mxu0 %v6301_v35  ;;  %7889 = vmatpush3.msra.mxu1 %v6333_v30  ;;  %v6320_v31 = vld [vmem:[%s10232_s2 + $0x108] sm:$0xff]  ;;  %v6303_v35 = vld [vmem:[%s10232_s2 + $0x80] sm:$0xff] }
0x11d6   :  { %7852 = vmatprep.subr.mxu0 %v6316_v32  ;;  %7890 = vmatprep.subr.mxu1 %v6348_v34  ;;  %v6335_v30 = vld [vmem:[%s10232_s2 + $0x180] sm:$0xff] }
0x11d7   :  { %7853 = vmatpush3.msra.mxu0 %v6300_v52  ;;  %7891 = vmatpush3.msra.mxu1 %v6332_v54  ;;  %v6287_v32 = vld [vmem:[%s10232_s2] sm:$0xff]  ;;  %v6382_v52 = vld [vmem:[%s10232_s2 + $0x2f8] sm:$0xff] }
0x11d8   :  { %7854 = vmatprep.subr.mxu0 %v6315_v45  ;;  %7892 = vmatprep.subr.mxu1 %v6347_v37  ;;  %v6319_v34 = vld [vmem:[%s10232_s2 + $0x100] sm:$0xff]  ;;  %v6414_v54 = vld [vmem:[%s10232_s2 + $0x3f8] sm:$0xff] }
0x11d9   :  { %7855 = vmatpush3.msra.mxu0 %v6299_v51  ;;  %7893 = vmatpush3.msra.mxu1 %v6331_v55  ;;  %v9888_v45 = vld [vmem:[%s10233_s7] sm:$0xff] }
0x11da   :  { %7856 = vmatprep.subr.mxu0 %v6314_v41  ;;  %7894 = vmatprep.subr.mxu1 %v6346_v48  ;;  %v5556_v37 = vrot.slane %v9888_v45, %v9203_v43  ;;  %v5564_v51 = vrot.slane %v9888_v45, %v9206_v44  ;;  %v5560_v55 = vrot.slane %v9888_v45, %v9212_v46 }
0x11db   :  { %7857 = vmatpush3.msra.mxu0 %v6298_v50  ;;  %7895 = vmatpush3.msra.mxu1 %v6330_v60  ;;  %v5568_v41 = vrot.slane %v9888_v45, %v9215_v47 }
0x11dc   :  { %7858 = vmatprep.subr.mxu0 %v6313_v62  ;;  %7896 = vmatprep.subr.mxu1 %v6345_v23 }
0x11dd   :  { %7859 = vmatpush3.msra.mxu0 %v6297_v38  ;;  %7897 = vmatpush3.msra.mxu1 %v6329_v58 }
0x11de   :  { %7860 = vmatprep.subr.mxu0 %v6312_v59  ;;  %7898 = vmatprep.subr.mxu1 %v6344_v33 }
0x11df   :  { %7861 = vmatpush3.msra.mxu0 %v6296_v17  ;;  %7899 = vmatpush3.msra.mxu1 %v6328_v40 }
0x11e0   :  { %7862 = vmatprep.subr.mxu0 %v6311_v18  ;;  %7900 = vmatprep.subr.mxu1 %v6343_v61 }
0x11e1   :  { %7863 = vmatpush3.msra.mxu0 %v6295_v63  ;;  %7901 = vmatpush3.msra.mxu1 %v6327_v0  ;;  %v6366_v0 = vld [vmem:[%s10232_s2 + $0x278] sm:$0xff] }
0x11e2   :  { %7864 = vmatprep.subr.mxu0 %v6310_v53  ;;  %7902 = vmatprep.subr.mxu1 %v6342_v1  ;;  %v6398_v53 = vld [vmem:[%s10232_s2 + $0x378] sm:$0xff] }
0x11e3   :  { %7865 = vmatpush3.msra.mxu0 %v6294_v49  ;;  %7903 = vmatpush3.msra.mxu1 %v6326_v2 }
0x11e4   :  { %7866 = vmatprep.subr.mxu0 %v6309_v3  ;;  %7904 = vmatprep.subr.mxu1 %v6341_v4  ;;  %v6381_v3 = vld [vmem:[%s10232_s2 + $0x2f0] sm:$0xff] }
0x11e5   :  { %7867 = vmatpush3.msra.mxu0 %v6293_v57  ;;  %7905 = vmatpush3.msra.mxu1 %v6325_v7  ;;  %v6413_v4 = vld [vmem:[%s10232_s2 + $0x3f0] sm:$0xff] }
0x11e6   :  { %7868 = vmatprep.subr.mxu0 %v6308_v8  ;;  %7906 = vmatprep.subr.mxu1 %v6340_v9  ;;  %v6365_v9 = vld [vmem:[%s10232_s2 + $0x270] sm:$0xff] }
0x11e7   :  { %7869 = vmatpush3.msra.mxu0 %v6292_v10  ;;  %7907 = vmatpush3.msra.mxu1 %v6324_v11  ;;  %v6397_v10 = vld [vmem:[%s10232_s2 + $0x370] sm:$0xff] }
0x11e8   :  { %7870 = vmatprep.subr.mxu0 %v6307_v13  ;;  %7908 = vmatprep.subr.mxu1 %v6339_v20  ;;  %v9906_v20 = vrot.slane %v9888_v45, %v9228_v5 }
0x11e9   :  { %7871 = vmatpush3.msra.mxu0 %v6291_v14  ;;  %7909 = vmatpush3.msra.mxu1 %v6323_v15  ;;  %v9910_v14 = vrot.slane %v9888_v45, %v9231_v6  ;;  %v6380_v15 = vld [vmem:[%s10232_s2 + $0x2e8] sm:$0xff] }
0x11ea   :  { %7872 = vmatprep.subr.mxu0 %v6306_v56  ;;  %7910 = vmatprep.subr.mxu1 %v6338_v16  ;;  %v6412_v56 = vld [vmem:[%s10232_s2 + $0x3e8] sm:$0xff] }
0x11eb   :  { %7873 = vmatpush3.msra.mxu0 %v6290_v24  ;;  %7911 = vmatpush3.msra.mxu1 %v6322_v19 }
0x11ec   :  { %7874 = vmatprep.subr.mxu0 %v6305_v42  ;;  %7912 = vmatprep.subr.mxu1 %v6337_v22  ;;  %v6364_v22 = vld [vmem:[%s10232_s2 + $0x268] sm:$0xff] }
0x11ed   :  { %7875 = vmatpush3.msra.mxu0 %v6289_v26  ;;  %7913 = vmatpush3.msra.mxu1 %v6321_v27  ;;  %v6396_v26 = vld [vmem:[%s10232_s2 + $0x368] sm:$0xff] }
0x11ee   :  { %7876 = vmatprep.subr.mxu0 %v6304_v28  ;;  %7914 = vmatprep.subr.mxu1 %v6336_v29  ;;  %v6379_v29 = vld [vmem:[%s10232_s2 + $0x2e0] sm:$0xff] }
0x11ef   :  { %7877 = vmatpush3.msra.mxu0 %v6288_v36  ;;  %7915 = vmatpush3.msra.mxu1 %v6320_v31  ;;  %v6411_v36 = vld [vmem:[%s10232_s2 + $0x3e0] sm:$0xff] }
0x11f0   :  { %7878 = vmatprep.subr.mxu0 %v6303_v35  ;;  %7916 = vmatprep.subr.mxu1 %v6335_v30  ;;  %v6363_v30 = vld [vmem:[%s10232_s2 + $0x260] sm:$0xff] }
0x11f1   :  { %7879 = vmatpush3.msra.mxu0 %v6287_v32  ;;  %7917 = vmatpush3.msra.mxu1 %v6319_v34  ;;  %v6395_v32 = vld [vmem:[%s10232_s2 + $0x360] sm:$0xff]  ;;  %v6378_v34 = vld [vmem:[%s10232_s2 + $0x2d8] sm:$0xff] }
0x11f2   :  { %7924 = vmatprep.subr.mxu0 %v6382_v52  ;;  %7962 = vmatprep.subr.mxu1 %v6414_v54 }
0x126c   :  { %v5705_v48 = vpop.f32.mrf.mxu0  ;;  %v5782_v50 = vpop.f32.mrf.mxu1 }
0x126d   :  { %v5706_v60 = vadd.f32 %v5705_v48, %v5556_v37  ;;  %v5783_v62 = vadd.f32 %v5782_v50, %v5564_v51  ;;  %v6409_v48 = vld [vmem:[%s10232_s2 + $0x3d0] sm:$0xff] }
0x126e   :  { %v5707_v23 = vpop.f32.mrf.mxu0  ;;  %v5784_v38 = vpop.f32.mrf.mxu1  ;;  %v6361_v50 = vld [vmem:[%s10232_s2 + $0x250] sm:$0xff] }
0x126f   :  { %v5708_v58 = vadd.f32 %v5707_v23, %v5560_v55  ;;  %v5785_v59 = vadd.f32 %v5784_v38, %v5568_v41  ;;  %v6255_v61 = vmax.f32 %v5706_v60, 0.0  ;;  %v6257_v63 = vmax.f32 %v5783_v62, 0.0  ;;  %v6393_v60 = vld [vmem:[%s10232_s2 + $0x350] sm:$0xff]  ;;  %v6376_v62 = vld [vmem:[%s10232_s2 + $0x2c8] sm:$0xff] }
0x1270   :  { %v6408_v23 = vld [vmem:[%s10232_s2 + $0x3c8] sm:$0xff] }
0x1271   :  { %v6256_v33 = vmax.f32 %v5708_v58, 0.0  ;;  %v6258_v17 = vmax.f32 %v5785_v59, 0.0  ;;  %v5711_v40 = vpop.f32.mrf.mxu0  ;;  %v5788_v18 = vpop.f32.mrf.mxu1  ;;  %v6360_v38 = vld [vmem:[%s10232_s2 + $0x248] sm:$0xff]  ;;  %v6375_v59 = vld [vmem:[%s10232_s2 + $0x2c0] sm:$0xff] }
0x1272   :  { %v5712_v1 = vadd.f32 %v5711_v40, %v5556_v37  ;;  %v5789_v57 = vadd.f32 %v5788_v18, %v5564_v51  ;;  %v6410_v37 = vld [vmem:[%s10232_s2 + $0x3d8] sm:$0xff]  ;;  %v6392_v58 = vld [vmem:[%s10232_s2 + $0x348] sm:$0xff]  ;;  %v6391_v40 = vld [vmem:[%s10232_s2 + $0x340] sm:$0xff] }
0x1273   :  { %v5713_v49 = vpop.f32.mrf.mxu0  ;;  %v5790_v2 = vpop.f32.mrf.mxu1  ;;  %6614 = vmatprep.mubr.f32.mxu0 %v6256_v33  ;;  %6688 = vmatprep.mubr.f32.mxu1 %v6258_v17  ;;  %v6362_v51 = vld [vmem:[%s10232_s2 + $0x258] sm:$0xff]  ;;  %v6407_v33 = vld [vmem:[%s10232_s2 + $0x3c0] sm:$0xff] }
0x1274   :  { %v5714_v7 = vadd.f32 %v5713_v49, %v5560_v55  ;;  %v5791_v8 = vadd.f32 %v5790_v2, %v5568_v41  ;;  %6615 = vmatmul.mubr.f32.vlgmr.msra.gmra.mxu0 %v6255_v61  ;;  %6689 = vmatmul.mubr.f32.vlgmr.msra.gmra.mxu1 %v6257_v63  ;;  %v6271_v19 = vmax.f32 %v5712_v1, 0.0  ;;  %v6273_v42 = vmax.f32 %v5789_v57, 0.0  ;;  %v6394_v55 = vld [vmem:[%s10232_s2 + $0x358] sm:$0xff]  ;;  %v6377_v41 = vld [vmem:[%s10232_s2 + $0x2d0] sm:$0xff]  ;;  %v6359_v17 = vld [vmem:[%s10232_s2 + $0x240] sm:$0xff] }
0x1275   :  { %7925 = vmatpush3.msra.mxu0 %v6366_v0  ;;  %7963 = vmatpush3.msra.mxu1 %v6398_v53  ;;  %v6374_v18 = vld [vmem:[%s10232_s2 + $0x2b8] sm:$0xff]  ;;  %v6373_v53 = vld [vmem:[%s10232_s2 + $0x2b0] sm:$0xff]  ;;  %v6356_v57 = vld [vmem:[%s10232_s2 + $0x228] sm:$0xff] }
0x1276   :  { %v6272_v11 = vmax.f32 %v5714_v7, 0.0  ;;  %v6274_v13 = vmax.f32 %v5791_v8, 0.0  ;;  %7926 = vmatprep.subr.mxu0 %v6381_v3  ;;  %7964 = vmatprep.subr.mxu1 %v6413_v4  ;;  %v6406_v61 = vld [vmem:[%s10232_s2 + $0x3b8] sm:$0xff]  ;;  %v6405_v1 = vld [vmem:[%s10232_s2 + $0x3b0] sm:$0xff]  ;;  %v6372_v3 = vld [vmem:[%s10232_s2 + $0x2a8] sm:$0xff] }
0x1277   :  { %v9914_v16 = vpop.f32.mrf.mxu0  ;;  %v9916_v24 = vpop.f32.mrf.mxu1  ;;  %7927 = vmatpush3.msra.mxu0 %v6365_v9  ;;  %7965 = vmatpush3.msra.mxu1 %v6397_v10  ;;  %v6358_v63 = vld [vmem:[%s10232_s2 + $0x238] sm:$0xff]  ;;  %v6357_v49 = vld [vmem:[%s10232_s2 + $0x230] sm:$0xff]  ;;  %v6404_v4 = vld [vmem:[%s10232_s2 + $0x3a8] sm:$0xff] }
0x1278   :  { %6618 = vmatprep.mubr.f32.mxu0 %v6272_v11  ;;  %6692 = vmatprep.mubr.f32.mxu1 %v6274_v13  ;;  %v6390_v0 = vld [vmem:[%s10232_s2 + $0x338] sm:$0xff]  ;;  %v6389_v2 = vld [vmem:[%s10232_s2 + $0x330] sm:$0xff]  ;;  %v6388_v7 = vld [vmem:[%s10232_s2 + $0x328] sm:$0xff] }
0x1279   :  { %v5861_v27 = vpop.f32.mrf.mxu0  ;;  %v5938_v28 = vpop.f32.mrf.mxu1  ;;  %7928 = vmatprep.subr.mxu0 %v6380_v15  ;;  %7966 = vmatprep.subr.mxu1 %v6412_v56  ;;  %v6371_v9 = vld [vmem:[%s10232_s2 + $0x2a0] sm:$0xff]  ;;  %v6370_v56 = vld [vmem:[%s10232_s2 + $0x298] sm:$0xff] }
0x127a   :  { %v5862_v31 = vadd.f32 %v5861_v27, %v9906_v20  ;;  %v5939_v35 = vadd.f32 %v5938_v28, %v9910_v14  ;;  %6619 = vmatmul.mubr.f32.gmra.mxu0 %v6271_v19  ;;  %6693 = vmatmul.mubr.f32.gmra.mxu1 %v6273_v42  ;;  %v6403_v10 = vld [vmem:[%s10232_s2 + $0x3a0] sm:$0xff]  ;;  %v6402_v19 = vld [vmem:[%s10232_s2 + $0x398] sm:$0xff]  ;;  %v5572_v42 = vrot.slane %v9888_v45, %v9286_v12 }
0x127b   :  { %7929 = vmatpush3.msra.mxu0 %v6364_v22  ;;  %7967 = vmatpush3.msra.mxu1 %v6396_v26  ;;  %v6355_v13 = vld [vmem:[%s10232_s2 + $0x220] sm:$0xff]  ;;  %v5580_v22 = vrot.slane %v9888_v45, %v9289_v21  ;;  %v6354_v26 = vld [vmem:[%s10232_s2 + $0x218] sm:$0xff]  ;;  %v6385_v45 = vld [vmem:[%s10232_s2 + $0x310] sm:$0xff] }
0x127c   :  { %v6260_v52 = vmax.f32 %v5862_v31, 0.0  ;;  %v6262_v54 = vmax.f32 %v5939_v35, 0.0  ;;  %7930 = vmatprep.subr.mxu0 %v6379_v29  ;;  %7968 = vmatprep.subr.mxu1 %v6411_v36  ;;  %v6387_v15 = vld [vmem:[%s10232_s2 + $0x320] sm:$0xff]  ;;  %v6386_v27 = vld [vmem:[%s10232_s2 + $0x318] sm:$0xff]  ;;  %v6369_v29 = vld [vmem:[%s10232_s2 + $0x290] sm:$0xff] }
0x127d   :  { %7931 = vmatpush3.msra.mxu0 %v6363_v30  ;;  %7969 = vmatpush3.msra.mxu1 %v6395_v32  ;;  %v9954_v8 = vpop.f32.mrf.mxu0  ;;  %v5942_v11 = vpop.f32.mrf.mxu1  ;;  %v6401_v36 = vld [vmem:[%s10232_s2 + $0x390] sm:$0xff]  ;;  %v6368_v30 = vld [vmem:[%s10232_s2 + $0x288] sm:$0xff] }
0x127e   :  { %7932 = vmatprep.subr.mxu0 %v6378_v34  ;;  %6762 = vmatprep.mubr.f32.mxu0 %v6260_v52  ;;  %v6353_v35 = vld [vmem:[%s10232_s2 + $0x210] sm:$0xff]  ;;  %v6400_v32 = vld [vmem:[%s10232_s2 + $0x388] sm:$0xff]  ;;  %v5860_v34 = vadd.f32 %v9914_v16, %v5572_v42  ;;  %v5937_v52 = vadd.f32 %v9916_v24, %v5580_v22  ;;  %v6351_v24 = vld [vmem:[%s10232_s2 + $0x200] sm:$0xff] }
0x127f   :  { %7970 = vmatprep.subr.mxu1 %v6410_v37  ;;  %6836 = vmatprep.mubr.f32.mxu1 %v6262_v54  ;;  %v5867_v28 = vpop.f32.mrf.mxu0  ;;  %v5944_v31 = vpop.f32.mrf.mxu1  ;;  %v6352_v54 = vld [vmem:[%s10232_s2 + $0x208] sm:$0xff] }
0x1280   :  { %7933 = vmatpush3.msra.mxu0 %v6362_v51  ;;  %7971 = vmatpush3.msra.mxu1 %v6394_v55  ;;  %v6384_v37 = vld [vmem:[%s10232_s2 + $0x308] sm:$0xff]  ;;  %v6367_v55 = vld [vmem:[%s10232_s2 + $0x280] sm:$0xff]  ;;  %v5945_v16 = vadd.f32 %v5944_v31, %v9910_v14  ;;  %v6478_v14 = vld [vmem:[%s10232_s2 + $0x5f8] sm:$0xff] }
0x1281   :  { %7934 = vmatprep.subr.mxu0 %v6377_v41  ;;  %7972 = vmatprep.subr.mxu1 %v6409_v48  ;;  %v6399_v41 = vld [vmem:[%s10232_s2 + $0x380] sm:$0xff]  ;;  %v5868_v48 = vadd.f32 %v5867_v28, %v9906_v20  ;;  %v6446_v20 = vld [vmem:[%s10232_s2 + $0x4f8] sm:$0xff]  ;;  %v6425_v31 = vld [vmem:[%s10232_s2 + $0x450] sm:$0xff] }
0x1282   :  { %7935 = vmatpush3.msra.mxu0 %v6361_v50  ;;  %7973 = vmatpush3.msra.mxu1 %v6393_v60  ;;  %v6383_v60 = vld [vmem:[%s10232_s2 + $0x300] sm:$0xff]  ;;  %v6458_v28 = vld [vmem:[%s10232_s2 + $0x558] sm:$0xff] }
0x1283   :  { %7936 = vmatprep.subr.mxu0 %v6376_v62  ;;  %7974 = vmatprep.subr.mxu1 %v6408_v23  ;;  %v9978_v51 = vpop.f32.mrf.mxu0  ;;  %v9984_v50 = vpop.f32.mrf.mxu1  ;;  %v9989_v62 = vld [vmem:[%s10233_s7 + $0x8] sm:$0xff]  ;;  %v6259_v23 = vmax.f32 %v5860_v34, 0.0 }
0x1284   :  { %7937 = vmatpush3.msra.mxu0 %v6360_v38  ;;  %7975 = vmatpush3.msra.mxu1 %v6392_v58  ;;  %v6261_v38 = vmax.f32 %v5937_v52, 0.0  ;;  %v9993_v58 = vrot.slane %v9989_v62, %v9212_v46  ;;  %v5943_v46 = vadd.f32 %v5942_v11, %v5580_v22  ;;  %v6460_v11 = vld [vmem:[%s10232_s2 + $0x568] sm:$0xff]  ;;  %v6442_v22 = vld [vmem:[%s10232_s2 + $0x4d8] sm:$0xff]  ;;  %v6439_v52 = vld [vmem:[%s10232_s2 + $0x4c0] sm:$0xff] }
0x1285   :  { %7938 = vmatprep.subr.mxu0 %v6375_v59  ;;  %7976 = vmatprep.subr.mxu1 %v6407_v33  ;;  %v6015_v59 = vpop.f32.mrf.mxu0  ;;  %v9999_v33 = vrot.slane %v9989_v62, %v9215_v47  ;;  %v6445_v47 = vld [vmem:[%s10232_s2 + $0x4f0] sm:$0xff]  ;;  %v6456_v34 = vld [vmem:[%s10232_s2 + $0x548] sm:$0xff] }
0x1286   :  { %7939 = vmatpush3.msra.mxu0 %v6359_v17  ;;  %7977 = vmatpush3.msra.mxu1 %v6391_v40  ;;  %v5866_v17 = vadd.f32 %v9954_v8, %v5572_v42  ;;  %v6276_v40 = vmax.f32 %v5868_v48, 0.0  ;;  %v6476_v8 = vld [vmem:[%s10232_s2 + $0x5e8] sm:$0xff]  ;;  %v6459_v42 = vld [vmem:[%s10232_s2 + $0x560] sm:$0xff]  ;;  %v6470_v48 = vld [vmem:[%s10232_s2 + $0x5b8] sm:$0xff] }
0x1287   :  { %7940 = vmatprep.subr.mxu0 %v6374_v18  ;;  %7978 = vmatprep.subr.mxu1 %v6406_v61  ;;  %v6278_v18 = vmax.f32 %v5945_v16, 0.0  ;;  %v6092_v61 = vpop.f32.mrf.mxu1  ;;  %v6422_v16 = vld [vmem:[%s10232_s2 + $0x438] sm:$0xff] }
0x1288   :  { %7941 = vmatpush3.msra.mxu0 %v6358_v63  ;;  %7979 = vmatpush3.msra.mxu1 %v6390_v0  ;;  %v6430_v63 = vld [vmem:[%s10232_s2 + $0x478] sm:$0xff] }
0x1289   :  { %7942 = vmatprep.subr.mxu0 %v6373_v53  ;;  %7980 = vmatprep.subr.mxu1 %v6405_v1  ;;  %v6462_v0 = vld [vmem:[%s10232_s2 + $0x578] sm:$0xff]  ;;  %v6477_v53 = vld [vmem:[%s10232_s2 + $0x5f0] sm:$0xff]  ;;  %v6016_v1 = vadd.f32 %v6015_v59, %v9993_v58  ;;  %v6468_v59 = vld [vmem:[%s10232_s2 + $0x5a8] sm:$0xff] }
0x128a   :  { %7943 = vmatpush3.msra.mxu0 %v6357_v49  ;;  %7981 = vmatpush3.msra.mxu1 %v6389_v2  ;;  %v6429_v49 = vld [vmem:[%s10232_s2 + $0x470] sm:$0xff] }
0x128b   :  { %7944 = vmatprep.subr.mxu0 %v6372_v3  ;;  %7982 = vmatprep.subr.mxu1 %v6404_v4  ;;  %v6461_v2 = vld [vmem:[%s10232_s2 + $0x570] sm:$0xff]  ;;  %v6093_v3 = vadd.f32 %v6092_v61, %v9999_v33  ;;  %v6275_v4 = vmax.f32 %v5866_v17, 0.0  ;;  %v6420_v17 = vld [vmem:[%s10232_s2 + $0x428] sm:$0xff]  ;;  %v6467_v61 = vld [vmem:[%s10232_s2 + $0x5a0] sm:$0xff] }
0x128c   :  { %7945 = vmatpush3.msra.mxu0 %v6356_v57  ;;  %7983 = vmatpush3.msra.mxu1 %v6388_v7  ;;  %v6277_v57 = vmax.f32 %v5943_v46, 0.0  ;;  %v6444_v7 = vld [vmem:[%s10232_s2 + $0x4e8] sm:$0xff] }
0x128d   :  { %7946 = vmatprep.subr.mxu0 %v6371_v9  ;;  %7984 = vmatprep.subr.mxu1 %v6403_v10  ;;  %v6428_v9 = vld [vmem:[%s10232_s2 + $0x468] sm:$0xff]  ;;  %v6264_v10 = vmax.f32 %v6016_v1, 0.0  ;;  %v6466_v1 = vld [vmem:[%s10232_s2 + $0x598] sm:$0xff] }
0x128e   :  { %7947 = vmatpush3.msra.mxu0 %v6355_v13  ;;  %7985 = vmatpush3.msra.mxu1 %v6387_v15  ;;  %v6266_v13 = vmax.f32 %v6093_v3, 0.0  ;;  %v6443_v15 = vld [vmem:[%s10232_s2 + $0x4e0] sm:$0xff]  ;;  %v6452_v46 = vld [vmem:[%s10232_s2 + $0x528] sm:$0xff]  ;;  %v6418_v3 = vld [vmem:[%s10232_s2 + $0x418] sm:$0xff] }
0x128f   :  { %7948 = vmatprep.subr.mxu0 %v6370_v56  ;;  %7986 = vmatprep.subr.mxu1 %v6402_v19  ;;  %v6475_v56 = vld [vmem:[%s10232_s2 + $0x5e0] sm:$0xff] }
0x1290   :  { %7949 = vmatpush3.msra.mxu0 %v6354_v26  ;;  %7987 = vmatpush3.msra.mxu1 %v6386_v27  ;;  %v6427_v19 = vld [vmem:[%s10232_s2 + $0x460] sm:$0xff]  ;;  %v6474_v26 = vld [vmem:[%s10232_s2 + $0x5d8] sm:$0xff] }
0x1291   :  { %7950 = vmatprep.subr.mxu0 %v6369_v29  ;;  %7988 = vmatprep.subr.mxu1 %v6401_v36  ;;  %v6426_v27 = vld [vmem:[%s10232_s2 + $0x458] sm:$0xff]  ;;  %v6441_v29 = vld [vmem:[%s10232_s2 + $0x4d0] sm:$0xff] }
0x1292   :  { %7951 = vmatpush3.msra.mxu0 %v6353_v35  ;;  %7989 = vmatpush3.msra.mxu1 %v6385_v45  ;;  %v6473_v36 = vld [vmem:[%s10232_s2 + $0x5d0] sm:$0xff]  ;;  %v6440_v45 = vld [vmem:[%s10232_s2 + $0x4c8] sm:$0xff] }
0x1293   :  { %7952 = vmatprep.subr.mxu0 %v6368_v30  ;;  %7990 = vmatprep.subr.mxu1 %v6400_v32  ;;  %v6457_v35 = vld [vmem:[%s10232_s2 + $0x550] sm:$0xff]  ;;  %v6472_v30 = vld [vmem:[%s10232_s2 + $0x5c8] sm:$0xff] }
0x1294   :  { %7953 = vmatpush3.msra.mxu0 %v6352_v54  ;;  %7991 = vmatpush3.msra.mxu1 %v6384_v37  ;;  %v6424_v32 = vld [vmem:[%s10232_s2 + $0x448] sm:$0xff]  ;;  %v6471_v54 = vld [vmem:[%s10232_s2 + $0x5c0] sm:$0xff] }
0x1295   :  { %7954 = vmatprep.subr.mxu0 %v6367_v55  ;;  %7992 = vmatprep.subr.mxu1 %v6399_v41  ;;  %v6423_v37 = vld [vmem:[%s10232_s2 + $0x440] sm:$0xff]  ;;  %v6438_v41 = vld [vmem:[%s10232_s2 + $0x4b8] sm:$0xff] }
0x1296   :  { %7955 = vmatpush3.msra.mxu0 %v6351_v24  ;;  %7993 = vmatpush3.msra.mxu1 %v6383_v60  ;;  %v6455_v55 = vld [vmem:[%s10232_s2 + $0x540] sm:$0xff]  ;;  %v6454_v24 = vld [vmem:[%s10232_s2 + $0x538] sm:$0xff]  ;;  %v6437_v60 = vld [vmem:[%s10232_s2 + $0x4b0] sm:$0xff] }
0x1297   :  { %6763 = vmatmul.mubr.f32.vlgmr.msra.gmra.mxu0 %v6259_v23  ;;  %6837 = vmatmul.mubr.f32.vlgmr.msra.gmra.mxu1 %v6261_v38  ;;  %v6469_v23 = vld [vmem:[%s10232_s2 + $0x5b0] sm:$0xff] }
0x1298   :  { %8000 = vmatprep.subr.mxu0 %v6446_v20  ;;  %8038 = vmatprep.subr.mxu1 %v6478_v14  ;;  %v6421_v38 = vld [vmem:[%s10232_s2 + $0x430] sm:$0xff]  ;;  %v6436_v14 = vld [vmem:[%s10232_s2 + $0x4a8] sm:$0xff] }
0x1299   :  { %6766 = vmatprep.mubr.f32.mxu0 %v6276_v40  ;;  %6840 = vmatprep.mubr.f32.mxu1 %v6278_v18  ;;  %v6453_v20 = vld [vmem:[%s10232_s2 + $0x530] sm:$0xff]  ;;  %v10046_v40 = vpop.f32.mrf.mxu0  ;;  %v6435_v18 = vld [vmem:[%s10232_s2 + $0x4a0] sm:$0xff] }
0x129a   :  { %8001 = vmatpush3.msra.mxu0 %v6430_v63  ;;  %8039 = vmatpush3.msra.mxu1 %v6462_v0  ;;  %v6096_v63 = vpop.f32.mrf.mxu1  ;;  %v6419_v0 = vld [vmem:[%s10232_s2 + $0x420] sm:$0xff] }
0x129b   :  { %8002 = vmatprep.subr.mxu0 %v6445_v47  ;;  %8040 = vmatprep.subr.mxu1 %v6477_v53  ;;  %v6451_v47 = vld [vmem:[%s10232_s2 + $0x520] sm:$0xff]  ;;  %v6434_v53 = vld [vmem:[%s10232_s2 + $0x498] sm:$0xff] }
0x129c   :  { %8003 = vmatpush3.msra.mxu0 %v6429_v49  ;;  %8041 = vmatpush3.msra.mxu1 %v6461_v2  ;;  %v5588_v49 = vrot.slane %v9989_v62, %v9203_v43  ;;  %v5596_v2 = vrot.slane %v9989_v62, %v9206_v44  ;;  %v6417_v43 = vld [vmem:[%s10232_s2 + $0x410] sm:$0xff] }
0x129d   :  { %6767 = vmatmul.mubr.f32.gmra.mxu0 %v6275_v4  ;;  %6841 = vmatmul.mubr.f32.gmra.mxu1 %v6277_v57  ;;  %v6450_v4 = vld [vmem:[%s10232_s2 + $0x518] sm:$0xff]  ;;  %v6021_v57 = vpop.f32.mrf.mxu0  ;;  %v6449_v44 = vld [vmem:[%s10232_s2 + $0x510] sm:$0xff] }
0x129e   :  { %8004 = vmatprep.subr.mxu0 %v6444_v7  ;;  %8042 = vmatprep.subr.mxu1 %v6476_v8  ;;  %v6433_v7 = vld [vmem:[%s10232_s2 + $0x490] sm:$0xff] }
0x129f   :  { %8005 = vmatpush3.msra.mxu0 %v6428_v9  ;;  %6910 = vmatprep.mubr.f32.mxu0 %v6264_v10  ;;  %v6465_v8 = vld [vmem:[%s10232_s2 + $0x590] sm:$0xff]  ;;  %v6098_v9 = vpop.f32.mrf.mxu1  ;;  %v6432_v10 = vld [vmem:[%s10232_s2 + $0x488] sm:$0xff] }
0x12a0   :  { %8043 = vmatpush3.msra.mxu1 %v6460_v11  ;;  %6984 = vmatprep.mubr.f32.mxu1 %v6266_v13  ;;  %v6464_v11 = vld [vmem:[%s10232_s2 + $0x588] sm:$0xff]  ;;  %v6014_v13 = vadd.f32 %v9978_v51, %v5588_v49  ;;  %v6099_v51 = vadd.f32 %v6098_v9, %v9999_v33  ;;  %v6542_v33 = vld [vmem:[%s10232_s2 + $0x7f8] sm:$0xff] }
0x12a1   :  { %8006 = vmatprep.subr.mxu0 %v6443_v15  ;;  %8044 = vmatprep.subr.mxu1 %v6475_v56  ;;  %v6091_v15 = vadd.f32 %v9984_v50, %v5596_v2  ;;  %v6416_v56 = vld [vmem:[%s10232_s2 + $0x408] sm:$0xff]  ;;  %v6415_v50 = vld [vmem:[%s10232_s2 + $0x400] sm:$0xff] }
0x12a2   :  { %8007 = vmatpush3.msra.mxu0 %v6427_v19  ;;  %8045 = vmatpush3.msra.mxu1 %v6459_v42  ;;  %v6448_v19 = vld [vmem:[%s10232_s2 + $0x508] sm:$0xff]  ;;  %v10070_v42 = vpop.f32.mrf.mxu0 }
0x12a3   :  { %8008 = vmatprep.subr.mxu0 %v6442_v22  ;;  %8046 = vmatprep.subr.mxu1 %v6474_v26  ;;  %v6431_v22 = vld [vmem:[%s10232_s2 + $0x480] sm:$0xff]  ;;  %v6488_v9 = vld [vmem:[%s10232_s2 + $0x648] sm:$0xff] }
0x12a4   :  { %8009 = vmatpush3.msra.mxu0 %v6426_v27  ;;  %8047 = vmatpush3.msra.mxu1 %v6458_v28  ;;  %v6463_v26 = vld [vmem:[%s10232_s2 + $0x580] sm:$0xff]  ;;  %v6022_v27 = vadd.f32 %v6021_v57, %v9993_v58  ;;  %v10076_v28 = vpop.f32.mrf.mxu1  ;;  %v6510_v58 = vld [vmem:[%s10232_s2 + $0x6f8] sm:$0xff]  ;;  %v6521_v57 = vld [vmem:[%s10232_s2 + $0x750] sm:$0xff] }
0x12a5   :  { %8010 = vmatprep.subr.mxu0 %v6441_v29  ;;  %8048 = vmatprep.subr.mxu1 %v6473_v36  ;;  %v6447_v29 = vld [vmem:[%s10232_s2 + $0x500] sm:$0xff]  ;;  %v6263_v36 = vmax.f32 %v6014_v13, 0.0 }
0x12a6   :  { %8011 = vmatpush3.msra.mxu0 %v6425_v31  ;;  %8049 = vmatpush3.msra.mxu1 %v6457_v35  ;;  %v6265_v31 = vmax.f32 %v6091_v15, 0.0  ;;  %v10082_v35 = vrot.slane %v9989_v62, %v9228_v5  ;;  %v6097_v5 = vadd.f32 %v6096_v63, %v5596_v2  ;;  %v6491_v63 = vld [vmem:[%s10232_s2 + $0x660] sm:$0xff]  ;;  %v6505_v2 = vld [vmem:[%s10232_s2 + $0x6d0] sm:$0xff]  ;;  %v6502_v15 = vld [vmem:[%s10232_s2 + $0x6b8] sm:$0xff] }
0x12a7   :  { %8012 = vmatprep.subr.mxu0 %v6440_v45  ;;  %8050 = vmatprep.subr.mxu1 %v6472_v30  ;;  %v6169_v45 = vpop.f32.mrf.mxu0  ;;  %v10088_v30 = vrot.slane %v9989_v62, %v9231_v6  ;;  %v6509_v6 = vld [vmem:[%s10232_s2 + $0x6f0] sm:$0xff]  ;;  %v6519_v13 = vld [vmem:[%s10232_s2 + $0x740] sm:$0xff] }
0x12a8   :  { %8013 = vmatpush3.msra.mxu0 %v6424_v32  ;;  %8051 = vmatpush3.msra.mxu1 %v6456_v34  ;;  %v6020_v32 = vadd.f32 %v10046_v40, %v5588_v49  ;;  %v6280_v34 = vmax.f32 %v6022_v27, 0.0  ;;  %v6522_v49 = vld [vmem:[%s10232_s2 + $0x758] sm:$0xff]  ;;  %v6533_v27 = vld [vmem:[%s10232_s2 + $0x7b0] sm:$0xff] }
0x12a9   :  { %8014 = vmatprep.subr.mxu0 %v6439_v52  ;;  %8052 = vmatprep.subr.mxu1 %v6471_v54  ;;  %v6282_v52 = vmax.f32 %v6099_v51, 0.0  ;;  %v6246_v54 = vpop.f32.mrf.mxu1  ;;  %v6485_v51 = vld [vmem:[%s10232_s2 + $0x630] sm:$0xff] }
0x12aa   :  { %8015 = vmatpush3.msra.mxu0 %v6423_v37  ;;  %8053 = vmatpush3.msra.mxu1 %v6455_v55  ;;  %v6494_v37 = vld [vmem:[%s10232_s2 + $0x678] sm:$0xff] }
0x12ab   :  { %8016 = vmatprep.subr.mxu0 %v6438_v41  ;;  %8054 = vmatprep.subr.mxu1 %v6470_v48  ;;  %v6526_v55 = vld [vmem:[%s10232_s2 + $0x778] sm:$0xff]  ;;  %v6541_v41 = vld [vmem:[%s10232_s2 + $0x7f0] sm:$0xff]  ;;  %v6170_v48 = vadd.f32 %v6169_v45, %v10082_v35  ;;  %v6531_v45 = vld [vmem:[%s10232_s2 + $0x7a0] sm:$0xff] }
0x12ac   :  { %8017 = vmatpush3.msra.mxu0 %v6422_v16  ;;  %8055 = vmatpush3.msra.mxu1 %v6454_v24  ;;  %v6493_v16 = vld [vmem:[%s10232_s2 + $0x670] sm:$0xff] }
0x12ad   :  { %8018 = vmatprep.subr.mxu0 %v6437_v60  ;;  %8056 = vmatprep.subr.mxu1 %v6469_v23  ;;  %v6525_v24 = vld [vmem:[%s10232_s2 + $0x770] sm:$0xff]  ;;  %v6247_v60 = vadd.f32 %v6246_v54, %v10088_v30  ;;  %v6279_v23 = vmax.f32 %v6020_v32, 0.0  ;;  %v6173_v32 = vpop.f32.mrf.mxu0  ;;  %v6498_v54 = vld [vmem:[%s10232_s2 + $0x698] sm:$0xff] }
0x12ae   :  { %8019 = vmatpush3.msra.mxu0 %v6421_v38  ;;  %8057 = vmatpush3.msra.mxu1 %v6453_v20  ;;  %v6281_v38 = vmax.f32 %v6097_v5, 0.0  ;;  %v6508_v20 = vld [vmem:[%s10232_s2 + $0x6e8] sm:$0xff]  ;;  %v6250_v5 = vpop.f32.mrf.mxu1 }
0x12af   :  { %8020 = vmatprep.subr.mxu0 %v6436_v14  ;;  %8058 = vmatprep.subr.mxu1 %v6468_v59  ;;  %v6540_v14 = vld [vmem:[%s10232_s2 + $0x7e8] sm:$0xff]  ;;  %v6270_v40 = vmax.f32 %v6247_v60, 0.0  ;;  %v6175_v60 = vpop.f32.mrf.mxu0 }
0x12b0   :  { %8021 = vmatpush3.msra.mxu0 %v6420_v17  ;;  %8059 = vmatpush3.msra.mxu1 %v6452_v46  ;;  %v6492_v59 = vld [vmem:[%s10232_s2 + $0x668] sm:$0xff]  ;;  %v6268_v17 = vmax.f32 %v6170_v48, 0.0  ;;  %v6514_v48 = vld [vmem:[%s10232_s2 + $0x718] sm:$0xff] }
0x12b1   :  { %8022 = vmatprep.subr.mxu0 %v6435_v18  ;;  %8060 = vmatprep.subr.mxu1 %v6467_v61  ;;  %v6524_v46 = vld [vmem:[%s10232_s2 + $0x768] sm:$0xff]  ;;  %v6507_v18 = vld [vmem:[%s10232_s2 + $0x6e0] sm:$0xff] }
0x12b2   :  { %8023 = vmatpush3.msra.mxu0 %v6419_v0  ;;  %8061 = vmatpush3.msra.mxu1 %v6451_v47  ;;  %v6539_v61 = vld [vmem:[%s10232_s2 + $0x7e0] sm:$0xff]  ;;  %v6506_v47 = vld [vmem:[%s10232_s2 + $0x6d8] sm:$0xff] }
0x12b3   :  { %8024 = vmatprep.subr.mxu0 %v6434_v53  ;;  %8062 = vmatprep.subr.mxu1 %v6466_v1  ;;  %v6523_v0 = vld [vmem:[%s10232_s2 + $0x760] sm:$0xff]  ;;  %v6538_v53 = vld [vmem:[%s10232_s2 + $0x7d8] sm:$0xff] }
0x12b4   :  { %8025 = vmatpush3.msra.mxu0 %v6418_v3  ;;  %8063 = vmatpush3.msra.mxu1 %v6450_v4  ;;  %v6490_v1 = vld [vmem:[%s10232_s2 + $0x658] sm:$0xff]  ;;  %v6537_v3 = vld [vmem:[%s10232_s2 + $0x7d0] sm:$0xff] }
0x12b5   :  { %8026 = vmatprep.subr.mxu0 %v6433_v7  ;;  %8064 = vmatprep.subr.mxu1 %v6465_v8  ;;  %v6489_v4 = vld [vmem:[%s10232_s2 + $0x650] sm:$0xff]  ;;  %v6504_v7 = vld [vmem:[%s10232_s2 + $0x6c8] sm:$0xff] }
0x12b6   :  { %8027 = vmatpush3.msra.mxu0 %v6417_v43  ;;  %8065 = vmatpush3.msra.mxu1 %v6449_v44  ;;  %v6536_v8 = vld [vmem:[%s10232_s2 + $0x7c8] sm:$0xff]  ;;  %v6503_v44 = vld [vmem:[%s10232_s2 + $0x6c0] sm:$0xff] }
0x12b7   :  { %8028 = vmatprep.subr.mxu0 %v6432_v10  ;;  %8066 = vmatprep.subr.mxu1 %v6464_v11  ;;  %v6520_v43 = vld [vmem:[%s10232_s2 + $0x748] sm:$0xff]  ;;  %v6535_v10 = vld [vmem:[%s10232_s2 + $0x7c0] sm:$0xff] }
0x12b8   :  { %8029 = vmatpush3.msra.mxu0 %v6416_v56  ;;  %8067 = vmatpush3.msra.mxu1 %v6448_v19  ;;  %v6487_v11 = vld [vmem:[%s10232_s2 + $0x640] sm:$0xff]  ;;  %v6534_v56 = vld [vmem:[%s10232_s2 + $0x7b8] sm:$0xff] }
0x12b9   :  { %8030 = vmatprep.subr.mxu0 %v6431_v22  ;;  %8068 = vmatprep.subr.mxu1 %v6463_v26  ;;  %v6486_v19 = vld [vmem:[%s10232_s2 + $0x638] sm:$0xff]  ;;  %v6501_v26 = vld [vmem:[%s10232_s2 + $0x6b0] sm:$0xff] }
0x12ba   :  { %8031 = vmatpush3.msra.mxu0 %v6415_v50  ;;  %8069 = vmatpush3.msra.mxu1 %v6447_v29  ;;  %v6518_v22 = vld [vmem:[%s10232_s2 + $0x738] sm:$0xff]  ;;  %v6517_v50 = vld [vmem:[%s10232_s2 + $0x730] sm:$0xff]  ;;  %v6500_v29 = vld [vmem:[%s10232_s2 + $0x6a8] sm:$0xff] }
0x12bb   :  { %6911 = vmatmul.mubr.f32.vlgmr.msra.gmra.mxu0 %v6263_v36  ;;  %6985 = vmatmul.mubr.f32.vlgmr.msra.gmra.mxu1 %v6265_v31  ;;  %v6532_v36 = vld [vmem:[%s10232_s2 + $0x7a8] sm:$0xff] }
0x12bc   :  { %8076 = vmatprep.subr.mxu0 %v6510_v58  ;;  %8114 = vmatprep.subr.mxu1 %v6542_v33  ;;  %v6484_v31 = vld [vmem:[%s10232_s2 + $0x628] sm:$0xff]  ;;  %v6499_v33 = vld [vmem:[%s10232_s2 + $0x6a0] sm:$0xff] }
0x12bd   :  { %6914 = vmatprep.mubr.f32.mxu0 %v6280_v34  ;;  %6988 = vmatprep.mubr.f32.mxu1 %v6282_v52  ;;  %v6516_v58 = vld [vmem:[%s10232_s2 + $0x728] sm:$0xff]  ;;  %v6483_v34 = vld [vmem:[%s10232_s2 + $0x620] sm:$0xff] }
0x12be   :  { %8077 = vmatpush3.msra.mxu0 %v6494_v37  ;;  %8115 = vmatpush3.msra.mxu1 %v6526_v55  ;;  %v6515_v52 = vld [vmem:[%s10232_s2 + $0x720] sm:$0xff]  ;;  %v6530_v37 = vld [vmem:[%s10232_s2 + $0x798] sm:$0xff]  ;;  %v5604_v55 = vrot.slane %v9989_v62, %v9286_v12  ;;  %v6481_v12 = vld [vmem:[%s10232_s2 + $0x610] sm:$0xff] }
0x12bf   :  { %8078 = vmatprep.subr.mxu0 %v6509_v6  ;;  %8116 = vmatprep.subr.mxu1 %v6541_v41  ;;  %v5612_v6 = vrot.slane %v9989_v62, %v9289_v21  ;;  %v6482_v41 = vld [vmem:[%s10232_s2 + $0x618] sm:$0xff]  ;;  %v6496_v21 = vld [vmem:[%s10232_s2 + $0x688] sm:$0xff] }
0x12c0   :  { %8079 = vmatpush3.msra.mxu0 %v6493_v16  ;;  %8117 = vmatpush3.msra.mxu1 %v6525_v24  ;;  %v6497_v16 = vld [vmem:[%s10232_s2 + $0x690] sm:$0xff]  ;;  %v6528_v62 = vld [vmem:[%s10232_s2 + $0x788] sm:$0xff] }
0x12c1   :  { %6915 = vmatmul.mubr.f32.gmra.mxu0 %v6279_v23  ;;  %6989 = vmatmul.mubr.f32.gmra.mxu1 %v6281_v38  ;;  %v6529_v24 = vld [vmem:[%s10232_s2 + $0x790] sm:$0xff]  ;;  %v6252_v23 = vpop.f32.mrf.mxu1 }
0x12c2   :  { %8080 = vmatprep.subr.mxu0 %v6508_v20  ;;  %8118 = vmatprep.subr.mxu1 %v6540_v14  ;;  %v6513_v38 = vld [vmem:[%s10232_s2 + $0x710] sm:$0xff]  ;;  %v6168_v20 = vadd.f32 %v10070_v42, %v5604_v55  ;;  %v6245_v14 = vadd.f32 %v10076_v28, %v5612_v6 }
0x12c3   :  { %8081 = vmatpush3.msra.mxu0 %v6492_v59  ;;  %7058 = vmatprep.mubr.f32.mxu0 %v6268_v17  ;;  %v6480_v59 = vld [vmem:[%s10232_s2 + $0x608] sm:$0xff] }
0x12c4   :  { %8119 = vmatpush3.msra.mxu1 %v6524_v46  ;;  %7132 = vmatprep.mubr.f32.mxu1 %v6270_v40  ;;  %v6512_v17 = vld [vmem:[%s10232_s2 + $0x708] sm:$0xff]  ;;  %v6176_v46 = vadd.f32 %v6175_v60, %v10082_v35  ;;  %v6253_v40 = vadd.f32 %v6252_v23, %v10088_v30  ;;  %v6267_v42 = vmax.f32 %v6168_v20, 0.0  ;;  %v6269_v28 = vmax.f32 %v6245_v14, 0.0 }
0x12c5   :  { %8082 = vmatprep.subr.mxu0 %v6507_v18  ;;  %8120 = vmatprep.subr.mxu1 %v6539_v61  ;;  %v6495_v18 = vld [vmem:[%s10232_s2 + $0x680] sm:$0xff] }
0x12c6   :  { %8083 = vmatpush3.msra.mxu0 %v6491_v63  ;;  %8121 = vmatpush3.msra.mxu1 %v6523_v0  ;;  %v6527_v61 = vld [vmem:[%s10232_s2 + $0x780] sm:$0xff]  ;;  %v6286_v35 = vmax.f32 %v6253_v40, 0.0 }
0x12c7   :  { %8084 = vmatprep.subr.mxu0 %v6506_v47  ;;  %8122 = vmatprep.subr.mxu1 %v6538_v53  ;;  %v6479_v63 = vld [vmem:[%s10232_s2 + $0x600] sm:$0xff]  ;;  %v6174_v47 = vadd.f32 %v6173_v32, %v5604_v55  ;;  %v6251_v53 = vadd.f32 %v6250_v5, %v5612_v6 }
0x12c8   :  { %8085 = vmatpush3.msra.mxu0 %v6490_v1  ;;  %8123 = vmatpush3.msra.mxu1 %v6522_v49  ;;  %v6511_v0 = vld [vmem:[%s10232_s2 + $0x700] sm:$0xff]  ;;  %v6284_v1 = vmax.f32 %v6176_v46, 0.0 }
0x12c9   :  { %8086 = vmatprep.subr.mxu0 %v6505_v2  ;;  %8124 = vmatprep.subr.mxu1 %v6537_v3  ;;  %v6283_v30 = vmax.f32 %v6174_v47, 0.0  ;;  %v6285_v49 = vmax.f32 %v6251_v53, 0.0 }
0x12ca   :  { %8087 = vmatpush3.msra.mxu0 %v6489_v4  ;;  %8125 = vmatpush3.msra.mxu1 %v6521_v57 }
0x12cb   :  { %8088 = vmatprep.subr.mxu0 %v6504_v7  ;;  %8126 = vmatprep.subr.mxu1 %v6536_v8 }
0x12cc   :  { %8089 = vmatpush3.msra.mxu0 %v6488_v9  ;;  %8127 = vmatpush3.msra.mxu1 %v6520_v43  ;;  %v7423_v9 = vld [vmem:[%s8800_s21] ss:$0 sm:$0xff]  ;;  %s10234_s21 = sld [smem:[#allocation6_spill]] }
0x12cd   :  { %8090 = vmatprep.subr.mxu0 %v6503_v44  ;;  %8128 = vmatprep.subr.mxu1 %v6535_v10 }
0x12ce   :  { %8091 = vmatpush3.msra.mxu0 %v6487_v11  ;;  %8129 = vmatpush3.msra.mxu1 %v6519_v13 }
0x12cf   :  { %8092 = vmatprep.subr.mxu0 %v6502_v15  ;;  %8130 = vmatprep.subr.mxu1 %v6534_v56 }
0x12d0   :  { %8093 = vmatpush3.msra.mxu0 %v6486_v19  ;;  %8131 = vmatpush3.msra.mxu1 %v6518_v22 }
0x12d1   :  { %8094 = vmatprep.subr.mxu0 %v6501_v26  ;;  %8132 = vmatprep.subr.mxu1 %v6533_v27 }
0x12d2   :  { %8095 = vmatpush3.msra.mxu0 %v6485_v51  ;;  %8133 = vmatpush3.msra.mxu1 %v6517_v50  ;;  %v7175_v47 = vld [vmem:[%s10234_s21 + $0x18] sm:$0xff]  ;;  %v7174_v53 = vld [vmem:[%s10234_s21 + $0x10] sm:$0xff] }
0x12d3   :  { %8096 = vmatprep.subr.mxu0 %v6500_v29  ;;  %8134 = vmatprep.subr.mxu1 %v6532_v36 }
0x12d4   :  { %8097 = vmatpush3.msra.mxu0 %v6484_v31  ;;  %8135 = vmatpush3.msra.mxu1 %v6516_v58 }
0x12d5   :  { %8098 = vmatprep.subr.mxu0 %v6499_v33  ;;  %8136 = vmatprep.subr.mxu1 %v6531_v45 }
0x12d6   :  { %8099 = vmatpush3.msra.mxu0 %v6483_v34  ;;  %8137 = vmatpush3.msra.mxu1 %v6515_v52 }
0x12d7   :  { %8100 = vmatprep.subr.mxu0 %v6498_v54  ;;  %8138 = vmatprep.subr.mxu1 %v6530_v37 }
0x12d8   :  { %8101 = vmatpush3.msra.mxu0 %v6482_v41  ;;  %8139 = vmatpush3.msra.mxu1 %v6514_v48 }
0x12d9   :  { %8102 = vmatprep.subr.mxu0 %v6497_v16  ;;  %8140 = vmatprep.subr.mxu1 %v6529_v24 }
0x12da   :  { %8103 = vmatpush3.msra.mxu0 %v6481_v12  ;;  %8141 = vmatpush3.msra.mxu1 %v6513_v38 }
0x12db   :  { %8104 = vmatprep.subr.mxu0 %v6496_v21  ;;  %8142 = vmatprep.subr.mxu1 %v6528_v62 }
0x12dc   :  { %8105 = vmatpush3.msra.mxu0 %v6480_v59  ;;  %8143 = vmatpush3.msra.mxu1 %v6512_v17 }
0x12dd   :  { %8106 = vmatprep.subr.mxu0 %v6495_v18  ;;  %8144 = vmatprep.subr.mxu1 %v6527_v61 }
0x12de   :  { %8107 = vmatpush3.msra.mxu0 %v6479_v63  ;;  %8145 = vmatpush3.msra.mxu1 %v6511_v0 }
0x12df   :  { %7059 = vmatmul.mubr.f32.vlgmr.msra.gmra.mxu0 %v6267_v42  ;;  %7133 = vmatmul.mubr.f32.vlgmr.msra.gmra.mxu1 %v6269_v28 }
0x12e0   :  { %7062 = vmatprep.mubr.f32.mxu0 %v6284_v1  ;;  %7136 = vmatprep.mubr.f32.mxu1 %v6286_v35  ;;  %v7172_v1 = vld [vmem:[%s10234_s21] sm:$0xff] }
0x12e1   :  { %8412 = vmatprep.subr.mxu0 %v8608_v25 }
0x12e2   :  { %8413 = vmatpush3.msra.mxu0 %v7175_v47 }
0x12e3   :  { %7063 = vmatmul.mubr.f32.gmra.mxu0 %v6283_v30  ;;  %7137 = vmatmul.mubr.f32.gmra.mxu1 %v6285_v49 }
0x12e4   :  { %8420 = vmatprep.mubr.msk.f32.mxu0 %vm8609_vm2, %v8608_v25  ;;  %8414 = vmatprep.subr.mxu0 %v8608_v25 }
0x12e5   :  { %8415 = vmatpush3.msra.mxu0 %v7174_v53 }
0x12e6   :  { %8416 = vmatprep.subr.mxu0 %v8608_v25 }
0x1334   :  { %v7880_v2 = vpop.f32.mrf.mxu0  ;;  %v7918_v3 = vpop.f32.mrf.mxu1 }
0x1335   :  { %v7424_v3 = vld [vmem:[%s8805_s20] ss:$0 sm:$0xff] }
0x1336   :  { %v7881_v4 = vpop.f32.mrf.mxu0  ;;  %v7919_v57 = vpop.f32.mrf.mxu1 }
0x1337   :  { %v7425_v57 = vld [vmem:[%s8810_s4] ss:$0 sm:$0xff] }
0x133a   :  { %v7883_v7 = vpop.f32.mrf.mxu0  ;;  %v7921_v8 = vpop.f32.mrf.mxu1 }
0x133c   :  { %v7884_v43 = vpop.f32.mrf.mxu0  ;;  %v7922_v44 = vpop.f32.mrf.mxu1 }
0x133d   :  { %v7885_v10 = vadd.f32 %v7884_v43, %v7883_v7  ;;  %v7923_v11 = vadd.f32 %v7922_v44, %v7921_v8 }
0x133f   :  { %v6621_v13 = vadd.f32 %v7885_v10, %v7423_v9  ;;  %v7426_v9 = vld [vmem:[%s10235_s10] ss:$0 sm:$0xff] }
0x1341   :  { %v6695_v15 = vadd.f32 %v7923_v11, %v6621_v13 }
0x1357   :  { %v7956_v56 = vpop.f32.mrf.mxu0  ;;  %v7994_v19 = vpop.f32.mrf.mxu1 }
0x1359   :  { %v7957_v22 = vpop.f32.mrf.mxu0  ;;  %v7995_v26 = vpop.f32.mrf.mxu1 }
0x135d   :  { %v7959_v27 = vpop.f32.mrf.mxu0  ;;  %v7997_v51 = vpop.f32.mrf.mxu1 }
0x135f   :  { %v7960_v50 = vpop.f32.mrf.mxu0  ;;  %v7998_v29 = vpop.f32.mrf.mxu1 }
0x1360   :  { %v7961_v32 = vadd.f32 %v7960_v50, %v7959_v27  ;;  %v7999_v37 = vadd.f32 %v7998_v29, %v7997_v51 }
0x1362   :  { %v6769_v52 = vadd.f32 %v7961_v32, %v6695_v15 }
0x1364   :  { %v6843_v48 = vadd.f32 %v7999_v37, %v6769_v52 }
0x137b   :  { %v8032_v36 = vpop.f32.mrf.mxu0  ;;  %v8070_v31 = vpop.f32.mrf.mxu1 }
0x137d   :  { %v8033_v58 = vpop.f32.mrf.mxu0  ;;  %v8071_v33 = vpop.f32.mrf.mxu1 }
0x1381   :  { %v8035_v45 = vpop.f32.mrf.mxu0  ;;  %v8073_v5 = vpop.f32.mrf.mxu1 }
0x1383   :  { %v8036_v34 = vpop.f32.mrf.mxu0  ;;  %v8074_v54 = vpop.f32.mrf.mxu1 }
0x1384   :  { %v8037_v55 = vadd.f32 %v8036_v34, %v8035_v45  ;;  %v8075_v38 = vadd.f32 %v8074_v54, %v8073_v5 }
0x1386   :  { %v6917_v60 = vadd.f32 %v8037_v55, %v6843_v48 }
0x1388   :  { %v6991_v20 = vadd.f32 %v8075_v38, %v6917_v60 }
0x139f   :  { %v8108_v6 = vpop.f32.mrf.mxu0  ;;  %v8146_v41 = vpop.f32.mrf.mxu1 }
0x13a1   :  { %v8109_v16 = vpop.f32.mrf.mxu0  ;;  %v8147_v24 = vpop.f32.mrf.mxu1 }
0x13a3   :  { %v8111_v23 = vpop.f32.mrf.mxu0  ;;  %v8149_v12 = vpop.f32.mrf.mxu1 }
0x13a5   :  { %v8112_v21 = vpop.f32.mrf.mxu0  ;;  %v8150_v62 = vpop.f32.mrf.mxu1 }
0x13a6   :  { %v8113_v14 = vadd.f32 %v8112_v21, %v8111_v23  ;;  %v8151_v17 = vadd.f32 %v8150_v62, %v8149_v12 }
0x13a8   :  { %v7065_v59 = vadd.f32 %v8113_v14, %v6991_v20 }
0x13aa   :  { %v7139_v46 = vadd.f32 %v8151_v17, %v7065_v59 }
0x13ac   :  { %v7142_v40 = vadd.f32 %v7139_v46, %v9737_v39  ;;  %v7173_v39 = vld [vmem:[%s10234_s21 + $0x8] sm:$0xff] }
0x13ad   :  { %8417 = vmatpush3.msra.mxu0 %v7173_v39 }
0x13ae   :  { %v7145_v18 = vsel %vm267_vm1, %v7142_v40, 0.0  ;;  %8418 = vmatprep.subr.mxu0 %v8608_v25 }
0x13af   :  { %7146 = vadd.xlane.f32.xlu1 %v7145_v18  ;;  %8419 = vmatpush3.msra.mxu0 %v7172_v1 }
0x1438   :  { %v7147_v61 = vpop.xlane.xlu1 %7146 }
0x1439   :  { %v7148_v63 = vmul.f32 0.03125, %v7147_v61 }
0x143b   :  { %v7149_v0 = vsub.f32 %v7142_v40, %v7148_v63 }
0x143d   :  { %v7150_v42 = vmul.f32 %v7149_v0, %v7149_v0 }
0x143f   :  { %v7151_v28 = vsel %vm267_vm1, %v7150_v42, 0.0 }
0x1440   :  { %7152 = vadd.xlane.f32.xlu0 %v7151_v28 }
0x14c9   :  { %v7153_v35 = vpop.xlane.xlu0 %7152 }
0x14ca   :  { %v7154_v30 = vmul.f32 0.03125, %v7153_v35 }
0x14cc   :  { %v7155_v49 = vadd.f32 1e-05, %v7154_v30 }
0x14ce   :  { %8546 = vrsqrt.f32 %v7155_v49 }
0x14db   :  { %v8547_v2 = vpop.eup %8546 }
0x14dc   :  { %v7157_v4 = vmul.f32 %v8547_v2, %v7149_v0 }
0x14de   :  { %v7164_v7 = vmul.f32 %v7424_v3, %v7157_v4 }
0x14e0   :  { %v7171_v8 = vadd.f32 %v7425_v57, %v7164_v7 }
0x14e2   :  { %8421 = vmatmul.mubr.msk.f32.vlgmr.msra.gmra.mxu0 %vm267_vm1, %v7171_v8 }
0x15a2   :  { %v7252_v43 = vpop.f32.mrf.mxu0 }
0x15a3   :  { %v7253_v44 = vadd.f32 %v7426_v9, %v7252_v43 }
0x15a4   :  { %v8422_v25 = vpop.f32.mrf.mxu0 }
0x15a5   :  { %7256 = vst.msk [vmem:[#allocation3] sm:$0xff] %vm521_vm3, %v7253_v44 }
0x15a6   :  { %8559 = shalt.err (!%p8556_p4)
}
0x15a7   :  { %7266 = dma.vmem_to_hbm [thread:$0]  %s7264_s0, 128, %s8815_s25, [#allocation4]  }
0x15a8   :  { %8568 = dma.done.wait [#allocation4], 128  }
0x15a9   :  { %8569 = vsyncadd [#allocation4], 4294967168 }
0x15aa   :  { %7270 = vsyncpa [#allocation4], 1 }

</bundles_post_ra>
